<compile_context>
chip_gen: v6e
topology: v6e:2x2x1
jax: 0.10.0
libtpu: 0.0.40
codegen_flags: <defaults>
</compile_context>

<pallas_src>
import jax
import jax.numpy as jnp
import numpy as np
from jax.experimental import pallas as pl
from jax.experimental.pallas import tpu as pltpu

EPS = 1e-5          # nn.InstanceNorm2d default
NEG_SLOPE = 0.2     # LeakyReLU(0.2)


# ---------------------------------------------------------------------------
# Fused Pallas kernel: conv1+IN+LReLU, conv2+IN+LReLU, flatten, Linear+LReLU, Linear
# ---------------------------------------------------------------------------
def _in_lrelu(y):
    # InstanceNorm2d (biased var, eps=1e-5) over spatial axis 0, then LeakyReLU(0.2).
    mean = jnp.mean(y, axis=0, keepdims=True)
    var = jnp.mean(y * y, axis=0, keepdims=True) - mean * mean   # one-pass variance
    yn = (y - mean) * jax.lax.rsqrt(var + EPS)
    return jnp.where(yn >= 0, yn, NEG_SLOPE * yn)


def _fused_kernel(x_ref, s1_ref, w1_ref, b1_ref, s2_ref, w2_ref, b2_ref,
                  wl1_ref, bl1_ref, wl2_ref, bl2_ref, o_ref):
    # x_ref:  (1, Cin, H0*W0)   channels-first flattened image (one sample)
    # s1_ref: (9, HW1, HW0)     conv1 tap-selection matrices (0/1, zero rows = padding)
    # w1_ref: (9, Cin, C1)      conv1 per-tap weights
    # s2_ref: (9, HW2, HW1)     conv2 tap-selection matrices
    # w2_ref: (9, C1, C2)       conv2 per-tap weights
    # wl1_ref:(HW2, C2, NH)     Linear-1 rows grouped by spatial position (NCHW flatten folded in)
    # wl2_ref:(NH, NE)          Linear-2
    x = x_ref[0]                                       # [Cin, HW0]
    taps = s1_ref.shape[0]
    hw1, c1 = s1_ref.shape[1], w1_ref.shape[2]
    hw2, c2 = s2_ref.shape[1], w2_ref.shape[2]

    # ---- conv1 (ZeroPad(1) + 3x3 s2) as 9 accumulating matmul taps -> [HW1, C1] ----
    y1 = jnp.zeros((hw1, c1), jnp.float32)
    for t in range(taps):
        shifted = jax.lax.dot_general(                 # [HW1, Cin] = S1_t @ x^T
            s1_ref[t], x, (((1,), (1,)), ((), ())),
            preferred_element_type=jnp.float32)
        y1 = y1 + jnp.dot(shifted, w1_ref[t], preferred_element_type=jnp.float32)
    y1 = _in_lrelu(y1 + b1_ref[...])                   # bias + InstanceNorm + LeakyReLU

    # ---- conv2 -> [HW2, C2] ----
    y2 = jnp.zeros((hw2, c2), jnp.float32)
    for t in range(taps):
        shifted = jnp.dot(s2_ref[t], y1, preferred_element_type=jnp.float32)   # [HW2, C1]
        y2 = y2 + jnp.dot(shifted, w2_ref[t], preferred_element_type=jnp.float32)
    y2 = _in_lrelu(y2 + b2_ref[...])

    # ---- NCHW flatten + Linear1 (+bias) folded into per-spatial-row matmuls ----
    h = bl1_ref[...]                                   # [1, NH]
    for p in range(hw2):
        h = h + jnp.dot(y2[p:p + 1, :], wl1_ref[p], preferred_element_type=jnp.float32)
    h = jnp.where(h >= 0, h, NEG_SLOPE * h)            # LeakyReLU(0.2)

    # ---- Linear2 -> lane-dense [1, NE] output ----
    o_ref[0] = (jnp.dot(h, wl2_ref[...], preferred_element_type=jnp.float32)
                + bl2_ref[...])


# ---------------------------------------------------------------------------
# One-time (loop-invariant) parameter / selection-matrix preparation
# ---------------------------------------------------------------------------
def _shift_selection_matrices(H, W, k=3, stride=2, pad=1):
    """S[t, out_pos, in_pos] = 1 iff input pixel in_pos is tap t's source for out_pos."""
    Ho = (H + 2 * pad - k) // stride + 1
    Wo = (W + 2 * pad - k) // stride + 1
    S = np.zeros((k * k, Ho * Wo, H * W), np.float32)
    for di in range(k):
        for dj in range(k):
            t = di * k + dj
            for i in range(Ho):
                for j in range(Wo):
                    r = stride * i + di - pad
                    c = stride * j + dj - pad
                    if 0 <= r < H and 0 <= c < W:
                        S[t, i * Wo + j, r * W + c] = 1.0
    return S, Ho, Wo


def prepare_params(params, input_size):
    """Offline weight-layout transforms so the kernel does zero layout shuffles."""
    assert len(params["convs"]) == 2, "specialized to downsampling_nf with 2 convs"
    (w1c, b1c), (w2c, b2c) = params["convs"]
    wl1, bl1, wl2, bl2 = params["embeder"]
    C1, Cin, k, _ = w1c.shape
    C2 = w2c.shape[0]

    S1, H1, W1 = _shift_selection_matrices(input_size, input_size, k=k)
    S2, H2, W2 = _shift_selection_matrices(H1, W1, k=k)
    HW2 = H2 * W2
    n_hidden = wl1.shape[1]

    return dict(
        s1=jnp.asarray(S1),                                              # [9, HW1, HW0]
        w1=jnp.transpose(w1c, (2, 3, 1, 0)).reshape(k * k, Cin, C1),     # per-tap [Cin, C1]
        b1=b1c.reshape(1, C1),
        s2=jnp.asarray(S2),                                              # [9, HW2, HW1]
        w2=jnp.transpose(w2c, (2, 3, 1, 0)).reshape(k * k, C1, C2),      # per-tap [C1, C2]
        b2=b2c.reshape(1, C2),
        # torch flatten index = c*HW2 + p  ->  wl1_sp[p, c, :] = wl1[c*HW2 + p, :]
        wl1=wl1.reshape(C2, HW2, n_hidden).transpose(1, 0, 2),           # [HW2, C2, NH]
        bl1=bl1.reshape(1, -1),
        wl2=wl2,                                                         # [NH, NE]
        bl2=bl2.reshape(1, -1),
    )


# ---------------------------------------------------------------------------
# Fused forward: single pallas_call, grid over the batch ("parallel" for v7x 2-core)
# ---------------------------------------------------------------------------
@jax.jit
def embedding_discriminator_forward(img_nchw, kp):
    B, Cin, H, W = img_nchw.shape
    x = img_nchw.reshape(B, Cin, H * W)          # channels-first flatten, no transpose

    s1, w1, b1 = kp["s1"], kp["w1"], kp["b1"]
    s2, w2, b2 = kp["s2"], kp["w2"], kp["b2"]
    wl1, bl1, wl2, bl2 = kp["wl1"], kp["bl1"], kp["wl2"], kp["bl2"]
    taps, hw1, hw0 = s1.shape
    hw2 = s2.shape[1]
    c1, c2 = w1.shape[2], w2.shape[2]
    nh, ne = wl2.shape

    flops = 2 * B * (taps * (hw1 * Cin * hw0 + hw1 * Cin * c1)
                     + taps * (hw2 * hw1 * c1 + hw2 * c1 * c2)
                     + hw2 * c2 * nh + nh * ne)
    bytes_accessed = 4 * (x.size + s1.size + w1.size + b1.size + s2.size + w2.size
                          + b2.size + wl1.size + bl1.size + wl2.size + bl2.size + B * ne)

    out = pl.pallas_call(
        _fused_kernel,
        out_shape=jax.ShapeDtypeStruct((B, 1, ne), jnp.float32),
        grid=(B,),
        in_specs=[
            pl.BlockSpec((1, Cin, hw0), lambda i: (i, 0, 0)),
            pl.BlockSpec(s1.shape, lambda i: (0, 0, 0)),     # weights: constant block
            pl.BlockSpec(w1.shape, lambda i: (0, 0, 0)),     #   index -> stay in VMEM
            pl.BlockSpec(b1.shape, lambda i: (0, 0)),        #   across grid steps
            pl.BlockSpec(s2.shape, lambda i: (0, 0, 0)),
            pl.BlockSpec(w2.shape, lambda i: (0, 0, 0)),
            pl.BlockSpec(b2.shape, lambda i: (0, 0)),
            pl.BlockSpec(wl1.shape, lambda i: (0, 0, 0)),
            pl.BlockSpec(bl1.shape, lambda i: (0, 0)),
            pl.BlockSpec(wl2.shape, lambda i: (0, 0)),
            pl.BlockSpec(bl2.shape, lambda i: (0, 0)),
        ],
        out_specs=pl.BlockSpec((1, 1, ne), lambda i: (i, 0, 0)),   # lane-dense (128) store
        compiler_params=pltpu.CompilerParams(
            dimension_semantics=("parallel",),          # batch across v7x TensorCores
            vmem_limit_bytes=32 * 1024 * 1024),
        cost_estimate=pl.CostEstimate(
            flops=flops, transcendentals=B * (c1 + c2), bytes_accessed=bytes_accessed),
    )(x, s1, w1, b1, s2, w2, b2, wl1, bl1, wl2, bl2)
    return out.reshape(B, ne)


# ---------------------------------------------------------------------------
# Deterministic synthetic parameters (shapes per __init__; values are synthetic —
# fan-in scaled normals instead of xavier(gain=0.02) so activations stay O(1)).
# Linear weights stored already transposed as (in, out).
# ---------------------------------------------------------------------------
def init_params(key, input_nc=3, downsampling_nf=(64, 64), input_size=16,
                n_hidden=256, n_embedding=128):
    keys = iter(jax.random.split(key, 4 * len(downsampling_nf) + 4))
    convs = []
    cin = input_nc
    for cout in downsampling_nf:
        w = jax.random.normal(next(keys), (cout, cin, 3, 3), jnp.float32) / np.sqrt(cin * 9)
        b = jax.random.normal(next(keys), (cout,), jnp.float32) * 0.01
        convs.append((w, b))
        cin = cout
    fs = input_size
    for _ in downsampling_nf:
        fs = (fs - 1) // 2 + 1
    F = downsampling_nf[-1] * fs * fs
    w1 = jax.random.normal(next(keys), (F, n_hidden), jnp.float32) / np.sqrt(F)
    b1 = jax.random.normal(next(keys), (n_hidden,), jnp.float32) * 0.01
    w2 = jax.random.normal(next(keys), (n_hidden, n_embedding), jnp.float32) / np.sqrt(n_hidden)
    b2 = jax.random.normal(next(keys), (n_embedding,), jnp.float32) * 0.01
    return {"convs": convs, "embeder": (w1, b1, w2, b2)}


# ---------------------------------------------------------------------------
# Pure-JAX reference (mirrors the PyTorch forward) for a sanity check
# ---------------------------------------------------------------------------
def reference_forward(img_nchw, params):
    y = img_nchw
    for (w, b) in params["convs"]:
        y = jax.lax.conv_general_dilated(
            y, w, window_strides=(2, 2), padding=((1, 1), (1, 1)),
            dimension_numbers=("NCHW", "OIHW", "NCHW"),
            precision=jax.lax.Precision.HIGHEST)
        y = y + b[None, :, None, None]
        m = y.mean(axis=(2, 3), keepdims=True)
        v = ((y - m) ** 2).mean(axis=(2, 3), keepdims=True)
        y = (y - m) / jnp.sqrt(v + EPS)
        y = jnp.where(y >= 0, y, NEG_SLOPE * y)
    feat = y.reshape(y.shape[0], -1)
    w1, b1, w2, b2 = params["embeder"]
    h = feat @ w1 + b1
    h = jnp.where(h >= 0, h, NEG_SLOPE * h)
    return h @ w2 + b2


if __name__ == "__main__":
    key = jax.random.PRNGKey(0)
    k_img, k_par = jax.random.split(key)

    B, C, S = 2, 3, 16                         # small input_size=16 (f_size: 16 -> 8 -> 4)
    img = jax.random.normal(k_img, (B, C, S, S), jnp.float32)
    params = init_params(k_par, input_nc=C, downsampling_nf=(64, 64),
                         input_size=S, n_hidden=256, n_embedding=128)
    kparams = prepare_params(params, input_size=S)   # one-time, loop-invariant transforms

    out = embedding_discriminator_forward(img, kparams)
    out = jax.block_until_ready(out)
    assert out.shape == (B, 128), out.shape

    ref = jax.block_until_ready(reference_forward(img, params))
    np.testing.assert_allclose(np.asarray(out), np.asarray(ref), rtol=2e-2, atol=2e-2)

    print("KERNEL_OK")
</pallas_src>

<mosaic_0001>
module attributes {stable_mosaic.version = 11 : i64} {
  func.func @_fused_kernel(%arg0: i32, %arg1: memref<1x3x256xf32, #tpu.memory_space<vmem>>, %arg2: memref<9x64x256xf32, #tpu.memory_space<vmem>>, %arg3: memref<9x3x64xf32, #tpu.memory_space<vmem>>, %arg4: memref<1x64xf32, #tpu.memory_space<vmem>>, %arg5: memref<9x16x64xf32, #tpu.memory_space<vmem>>, %arg6: memref<9x64x64xf32, #tpu.memory_space<vmem>>, %arg7: memref<1x64xf32, #tpu.memory_space<vmem>>, %arg8: memref<16x64x256xf32, #tpu.memory_space<vmem>>, %arg9: memref<1x256xf32, #tpu.memory_space<vmem>>, %arg10: memref<256x128xf32, #tpu.memory_space<vmem>>, %arg11: memref<1x128xf32, #tpu.memory_space<vmem>>, %arg12: memref<1x1x128xf32, #tpu.memory_space<vmem>>) attributes {dimension_semantics = [#tpu.dimension_semantics<parallel>], iteration_bounds = array<i64: 2>, scalar_prefetch = 0 : i64, scratch_operands = 0 : i64, tpu.core_type = #tpu.core_type<tc>, window_params = [{transform_indices = @transform_0, window_bounds = array<i64: 1, 3, 256>}, {pipeline_mode = #tpu.pipeline_mode<synchronous>, transform_indices = @transform_1, window_bounds = array<i64: 9, 64, 256>}, {pipeline_mode = #tpu.pipeline_mode<synchronous>, transform_indices = @transform_2, window_bounds = array<i64: 9, 3, 64>}, {pipeline_mode = #tpu.pipeline_mode<synchronous>, transform_indices = @transform_3, window_bounds = array<i64: 1, 64>}, {pipeline_mode = #tpu.pipeline_mode<synchronous>, transform_indices = @transform_4, window_bounds = array<i64: 9, 16, 64>}, {pipeline_mode = #tpu.pipeline_mode<synchronous>, transform_indices = @transform_5, window_bounds = array<i64: 9, 64, 64>}, {pipeline_mode = #tpu.pipeline_mode<synchronous>, transform_indices = @transform_6, window_bounds = array<i64: 1, 64>}, {pipeline_mode = #tpu.pipeline_mode<synchronous>, transform_indices = @transform_7, window_bounds = array<i64: 16, 64, 256>}, {pipeline_mode = #tpu.pipeline_mode<synchronous>, transform_indices = @transform_8, window_bounds = array<i64: 1, 256>}, {pipeline_mode = #tpu.pipeline_mode<synchronous>, transform_indices = @transform_9, window_bounds = array<i64: 256, 128>}, {pipeline_mode = #tpu.pipeline_mode<synchronous>, transform_indices = @transform_10, window_bounds = array<i64: 1, 128>}, {transform_indices = @transform_11, window_bounds = array<i64: 1, 1, 128>}]} {
    %c0 = arith.constant 0 : index
    %c0_0 = arith.constant 0 : index
    %c0_1 = arith.constant 0 : index
    %0 = vector.load %arg1[%c0, %c0_0, %c0_1] : memref<1x3x256xf32, #tpu.memory_space<vmem>>, vector<1x3x256xf32>
    %1 = vector.shape_cast %0 : vector<1x3x256xf32> to vector<3x256xf32>
    %cst = arith.constant 0.000000e+00 : f32
    %2 = vector.broadcast %cst : f32 to vector<64x64xf32>
    %c0_2 = arith.constant 0 : index
    %c0_3 = arith.constant 0 : index
    %c0_4 = arith.constant 0 : index
    %3 = vector.load %arg2[%c0_2, %c0_3, %c0_4] : memref<9x64x256xf32, #tpu.memory_space<vmem>>, vector<1x64x256xf32>
    %4 = vector.shape_cast %3 : vector<1x64x256xf32> to vector<64x256xf32>
    %cst_5 = arith.constant dense<0.000000e+00> : vector<64x3xf32>
    %5 = tpu.matmul %4, %1, %cst_5 {dimension_numbers = #tpu.dot_dimension_numbers<[1], [1], [0], [0], [0, 0, 1, 0], [], []>} : vector<64x256xf32>, vector<3x256xf32>, vector<64x3xf32> -> vector<64x3xf32>
    %c0_6 = arith.constant 0 : index
    %c0_7 = arith.constant 0 : index
    %c0_8 = arith.constant 0 : index
    %6 = vector.load %arg3[%c0_6, %c0_7, %c0_8] : memref<9x3x64xf32, #tpu.memory_space<vmem>>, vector<1x3x64xf32>
    %7 = vector.shape_cast %6 : vector<1x3x64xf32> to vector<3x64xf32>
    %cst_9 = arith.constant dense<0.000000e+00> : vector<64x64xf32>
    %8 = tpu.matmul %5, %7, %cst_9 {dimension_numbers = #tpu.dot_dimension_numbers<[1], [0], [0], [1], [0, 0, 1, 1], [], []>} : vector<64x3xf32>, vector<3x64xf32>, vector<64x64xf32> -> vector<64x64xf32>
    %9 = arith.addf %2, %8 : vector<64x64xf32>
    %c1 = arith.constant 1 : index
    %c0_10 = arith.constant 0 : index
    %c0_11 = arith.constant 0 : index
    %10 = vector.load %arg2[%c1, %c0_10, %c0_11] : memref<9x64x256xf32, #tpu.memory_space<vmem>>, vector<1x64x256xf32>
    %11 = vector.shape_cast %10 : vector<1x64x256xf32> to vector<64x256xf32>
    %cst_12 = arith.constant dense<0.000000e+00> : vector<64x3xf32>
    %12 = tpu.matmul %11, %1, %cst_12 {dimension_numbers = #tpu.dot_dimension_numbers<[1], [1], [0], [0], [0, 0, 1, 0], [], []>} : vector<64x256xf32>, vector<3x256xf32>, vector<64x3xf32> -> vector<64x3xf32>
    %c1_13 = arith.constant 1 : index
    %c0_14 = arith.constant 0 : index
    %c0_15 = arith.constant 0 : index
    %13 = vector.load %arg3[%c1_13, %c0_14, %c0_15] : memref<9x3x64xf32, #tpu.memory_space<vmem>>, vector<1x3x64xf32>
    %14 = vector.shape_cast %13 : vector<1x3x64xf32> to vector<3x64xf32>
    %cst_16 = arith.constant dense<0.000000e+00> : vector<64x64xf32>
    %15 = tpu.matmul %12, %14, %cst_16 {dimension_numbers = #tpu.dot_dimension_numbers<[1], [0], [0], [1], [0, 0, 1, 1], [], []>} : vector<64x3xf32>, vector<3x64xf32>, vector<64x64xf32> -> vector<64x64xf32>
    %16 = arith.addf %9, %15 : vector<64x64xf32>
    %c2 = arith.constant 2 : index
    %c0_17 = arith.constant 0 : index
    %c0_18 = arith.constant 0 : index
    %17 = vector.load %arg2[%c2, %c0_17, %c0_18] : memref<9x64x256xf32, #tpu.memory_space<vmem>>, vector<1x64x256xf32>
    %18 = vector.shape_cast %17 : vector<1x64x256xf32> to vector<64x256xf32>
    %cst_19 = arith.constant dense<0.000000e+00> : vector<64x3xf32>
    %19 = tpu.matmul %18, %1, %cst_19 {dimension_numbers = #tpu.dot_dimension_numbers<[1], [1], [0], [0], [0, 0, 1, 0], [], []>} : vector<64x256xf32>, vector<3x256xf32>, vector<64x3xf32> -> vector<64x3xf32>
    %c2_20 = arith.constant 2 : index
    %c0_21 = arith.constant 0 : index
    %c0_22 = arith.constant 0 : index
    %20 = vector.load %arg3[%c2_20, %c0_21, %c0_22] : memref<9x3x64xf32, #tpu.memory_space<vmem>>, vector<1x3x64xf32>
    %21 = vector.shape_cast %20 : vector<1x3x64xf32> to vector<3x64xf32>
    %cst_23 = arith.constant dense<0.000000e+00> : vector<64x64xf32>
    %22 = tpu.matmul %19, %21, %cst_23 {dimension_numbers = #tpu.dot_dimension_numbers<[1], [0], [0], [1], [0, 0, 1, 1], [], []>} : vector<64x3xf32>, vector<3x64xf32>, vector<64x64xf32> -> vector<64x64xf32>
    %23 = arith.addf %16, %22 : vector<64x64xf32>
    %c3 = arith.constant 3 : index
    %c0_24 = arith.constant 0 : index
    %c0_25 = arith.constant 0 : index
    %24 = vector.load %arg2[%c3, %c0_24, %c0_25] : memref<9x64x256xf32, #tpu.memory_space<vmem>>, vector<1x64x256xf32>
    %25 = vector.shape_cast %24 : vector<1x64x256xf32> to vector<64x256xf32>
    %cst_26 = arith.constant dense<0.000000e+00> : vector<64x3xf32>
    %26 = tpu.matmul %25, %1, %cst_26 {dimension_numbers = #tpu.dot_dimension_numbers<[1], [1], [0], [0], [0, 0, 1, 0], [], []>} : vector<64x256xf32>, vector<3x256xf32>, vector<64x3xf32> -> vector<64x3xf32>
    %c3_27 = arith.constant 3 : index
    %c0_28 = arith.constant 0 : index
    %c0_29 = arith.constant 0 : index
    %27 = vector.load %arg3[%c3_27, %c0_28, %c0_29] : memref<9x3x64xf32, #tpu.memory_space<vmem>>, vector<1x3x64xf32>
    %28 = vector.shape_cast %27 : vector<1x3x64xf32> to vector<3x64xf32>
    %cst_30 = arith.constant dense<0.000000e+00> : vector<64x64xf32>
    %29 = tpu.matmul %26, %28, %cst_30 {dimension_numbers = #tpu.dot_dimension_numbers<[1], [0], [0], [1], [0, 0, 1, 1], [], []>} : vector<64x3xf32>, vector<3x64xf32>, vector<64x64xf32> -> vector<64x64xf32>
    %30 = arith.addf %23, %29 : vector<64x64xf32>
    %c4 = arith.constant 4 : index
    %c0_31 = arith.constant 0 : index
    %c0_32 = arith.constant 0 : index
    %31 = vector.load %arg2[%c4, %c0_31, %c0_32] : memref<9x64x256xf32, #tpu.memory_space<vmem>>, vector<1x64x256xf32>
    %32 = vector.shape_cast %31 : vector<1x64x256xf32> to vector<64x256xf32>
    %cst_33 = arith.constant dense<0.000000e+00> : vector<64x3xf32>
    %33 = tpu.matmul %32, %1, %cst_33 {dimension_numbers = #tpu.dot_dimension_numbers<[1], [1], [0], [0], [0, 0, 1, 0], [], []>} : vector<64x256xf32>, vector<3x256xf32>, vector<64x3xf32> -> vector<64x3xf32>
    %c4_34 = arith.constant 4 : index
    %c0_35 = arith.constant 0 : index
    %c0_36 = arith.constant 0 : index
    %34 = vector.load %arg3[%c4_34, %c0_35, %c0_36] : memref<9x3x64xf32, #tpu.memory_space<vmem>>, vector<1x3x64xf32>
    %35 = vector.shape_cast %34 : vector<1x3x64xf32> to vector<3x64xf32>
    %cst_37 = arith.constant dense<0.000000e+00> : vector<64x64xf32>
    %36 = tpu.matmul %33, %35, %cst_37 {dimension_numbers = #tpu.dot_dimension_numbers<[1], [0], [0], [1], [0, 0, 1, 1], [], []>} : vector<64x3xf32>, vector<3x64xf32>, vector<64x64xf32> -> vector<64x64xf32>
    %37 = arith.addf %30, %36 : vector<64x64xf32>
    %c5 = arith.constant 5 : index
    %c0_38 = arith.constant 0 : index
    %c0_39 = arith.constant 0 : index
    %38 = vector.load %arg2[%c5, %c0_38, %c0_39] : memref<9x64x256xf32, #tpu.memory_space<vmem>>, vector<1x64x256xf32>
    %39 = vector.shape_cast %38 : vector<1x64x256xf32> to vector<64x256xf32>
    %cst_40 = arith.constant dense<0.000000e+00> : vector<64x3xf32>
    %40 = tpu.matmul %39, %1, %cst_40 {dimension_numbers = #tpu.dot_dimension_numbers<[1], [1], [0], [0], [0, 0, 1, 0], [], []>} : vector<64x256xf32>, vector<3x256xf32>, vector<64x3xf32> -> vector<64x3xf32>
    %c5_41 = arith.constant 5 : index
    %c0_42 = arith.constant 0 : index
    %c0_43 = arith.constant 0 : index
    %41 = vector.load %arg3[%c5_41, %c0_42, %c0_43] : memref<9x3x64xf32, #tpu.memory_space<vmem>>, vector<1x3x64xf32>
    %42 = vector.shape_cast %41 : vector<1x3x64xf32> to vector<3x64xf32>
    %cst_44 = arith.constant dense<0.000000e+00> : vector<64x64xf32>
    %43 = tpu.matmul %40, %42, %cst_44 {dimension_numbers = #tpu.dot_dimension_numbers<[1], [0], [0], [1], [0, 0, 1, 1], [], []>} : vector<64x3xf32>, vector<3x64xf32>, vector<64x64xf32> -> vector<64x64xf32>
    %44 = arith.addf %37, %43 : vector<64x64xf32>
    %c6 = arith.constant 6 : index
    %c0_45 = arith.constant 0 : index
    %c0_46 = arith.constant 0 : index
    %45 = vector.load %arg2[%c6, %c0_45, %c0_46] : memref<9x64x256xf32, #tpu.memory_space<vmem>>, vector<1x64x256xf32>
    %46 = vector.shape_cast %45 : vector<1x64x256xf32> to vector<64x256xf32>
    %cst_47 = arith.constant dense<0.000000e+00> : vector<64x3xf32>
    %47 = tpu.matmul %46, %1, %cst_47 {dimension_numbers = #tpu.dot_dimension_numbers<[1], [1], [0], [0], [0, 0, 1, 0], [], []>} : vector<64x256xf32>, vector<3x256xf32>, vector<64x3xf32> -> vector<64x3xf32>
    %c6_48 = arith.constant 6 : index
    %c0_49 = arith.constant 0 : index
    %c0_50 = arith.constant 0 : index
    %48 = vector.load %arg3[%c6_48, %c0_49, %c0_50] : memref<9x3x64xf32, #tpu.memory_space<vmem>>, vector<1x3x64xf32>
    %49 = vector.shape_cast %48 : vector<1x3x64xf32> to vector<3x64xf32>
    %cst_51 = arith.constant dense<0.000000e+00> : vector<64x64xf32>
    %50 = tpu.matmul %47, %49, %cst_51 {dimension_numbers = #tpu.dot_dimension_numbers<[1], [0], [0], [1], [0, 0, 1, 1], [], []>} : vector<64x3xf32>, vector<3x64xf32>, vector<64x64xf32> -> vector<64x64xf32>
    %51 = arith.addf %44, %50 : vector<64x64xf32>
    %c7 = arith.constant 7 : index
    %c0_52 = arith.constant 0 : index
    %c0_53 = arith.constant 0 : index
    %52 = vector.load %arg2[%c7, %c0_52, %c0_53] : memref<9x64x256xf32, #tpu.memory_space<vmem>>, vector<1x64x256xf32>
    %53 = vector.shape_cast %52 : vector<1x64x256xf32> to vector<64x256xf32>
    %cst_54 = arith.constant dense<0.000000e+00> : vector<64x3xf32>
    %54 = tpu.matmul %53, %1, %cst_54 {dimension_numbers = #tpu.dot_dimension_numbers<[1], [1], [0], [0], [0, 0, 1, 0], [], []>} : vector<64x256xf32>, vector<3x256xf32>, vector<64x3xf32> -> vector<64x3xf32>
    %c7_55 = arith.constant 7 : index
    %c0_56 = arith.constant 0 : index
    %c0_57 = arith.constant 0 : index
    %55 = vector.load %arg3[%c7_55, %c0_56, %c0_57] : memref<9x3x64xf32, #tpu.memory_space<vmem>>, vector<1x3x64xf32>
    %56 = vector.shape_cast %55 : vector<1x3x64xf32> to vector<3x64xf32>
    %cst_58 = arith.constant dense<0.000000e+00> : vector<64x64xf32>
    %57 = tpu.matmul %54, %56, %cst_58 {dimension_numbers = #tpu.dot_dimension_numbers<[1], [0], [0], [1], [0, 0, 1, 1], [], []>} : vector<64x3xf32>, vector<3x64xf32>, vector<64x64xf32> -> vector<64x64xf32>
    %58 = arith.addf %51, %57 : vector<64x64xf32>
    %c8 = arith.constant 8 : index
    %c0_59 = arith.constant 0 : index
    %c0_60 = arith.constant 0 : index
    %59 = vector.load %arg2[%c8, %c0_59, %c0_60] : memref<9x64x256xf32, #tpu.memory_space<vmem>>, vector<1x64x256xf32>
    %60 = vector.shape_cast %59 : vector<1x64x256xf32> to vector<64x256xf32>
    %cst_61 = arith.constant dense<0.000000e+00> : vector<64x3xf32>
    %61 = tpu.matmul %60, %1, %cst_61 {dimension_numbers = #tpu.dot_dimension_numbers<[1], [1], [0], [0], [0, 0, 1, 0], [], []>} : vector<64x256xf32>, vector<3x256xf32>, vector<64x3xf32> -> vector<64x3xf32>
    %c8_62 = arith.constant 8 : index
    %c0_63 = arith.constant 0 : index
    %c0_64 = arith.constant 0 : index
    %62 = vector.load %arg3[%c8_62, %c0_63, %c0_64] : memref<9x3x64xf32, #tpu.memory_space<vmem>>, vector<1x3x64xf32>
    %63 = vector.shape_cast %62 : vector<1x3x64xf32> to vector<3x64xf32>
    %cst_65 = arith.constant dense<0.000000e+00> : vector<64x64xf32>
    %64 = tpu.matmul %61, %63, %cst_65 {dimension_numbers = #tpu.dot_dimension_numbers<[1], [0], [0], [1], [0, 0, 1, 1], [], []>} : vector<64x3xf32>, vector<3x64xf32>, vector<64x64xf32> -> vector<64x64xf32>
    %65 = arith.addf %58, %64 : vector<64x64xf32>
    %c0_66 = arith.constant 0 : index
    %c0_67 = arith.constant 0 : index
    %66 = vector.load %arg4[%c0_66, %c0_67] : memref<1x64xf32, #tpu.memory_space<vmem>>, vector<1x64xf32>
    %67 = vector.broadcast %66 : vector<1x64xf32> to vector<64x64xf32>
    %68 = arith.addf %65, %67 : vector<64x64xf32>
    %cst_68 = arith.constant dense<0.000000e+00> : vector<64xf32>
    %69 = vector.multi_reduction <add>, %68, %cst_68 [0] : vector<64x64xf32> to vector<64xf32>
    %70 = vector.shape_cast %69 : vector<64xf32> to vector<1x64xf32>
    %cst_69 = arith.constant 6.400000e+01 : f32
    %71 = vector.broadcast %cst_69 : f32 to vector<1x64xf32>
    %72 = arith.divf %70, %71 : vector<1x64xf32>
    %73 = arith.mulf %68, %68 : vector<64x64xf32>
    %cst_70 = arith.constant dense<0.000000e+00> : vector<64xf32>
    %74 = vector.multi_reduction <add>, %73, %cst_70 [0] : vector<64x64xf32> to vector<64xf32>
    %75 = vector.shape_cast %74 : vector<64xf32> to vector<1x64xf32>
    %cst_71 = arith.constant 6.400000e+01 : f32
    %76 = vector.broadcast %cst_71 : f32 to vector<1x64xf32>
    %77 = arith.divf %75, %76 : vector<1x64xf32>
    %78 = arith.mulf %72, %72 : vector<1x64xf32>
    %79 = arith.subf %77, %78 : vector<1x64xf32>
    %80 = vector.broadcast %72 : vector<1x64xf32> to vector<64x64xf32>
    %81 = arith.subf %68, %80 : vector<64x64xf32>
    %cst_72 = arith.constant 9.99999974E-6 : f32
    %82 = vector.broadcast %cst_72 : f32 to vector<1x64xf32>
    %83 = arith.addf %79, %82 : vector<1x64xf32>
    %84 = math.rsqrt %83 : vector<1x64xf32>
    %85 = vector.broadcast %84 : vector<1x64xf32> to vector<64x64xf32>
    %86 = arith.mulf %81, %85 : vector<64x64xf32>
    %cst_73 = arith.constant 0.000000e+00 : f32
    %87 = vector.broadcast %cst_73 : f32 to vector<64x64xf32>
    %88 = arith.cmpf oge, %86, %87 : vector<64x64xf32>
    %cst_74 = arith.constant 2.000000e-01 : f32
    %89 = vector.broadcast %cst_74 : f32 to vector<64x64xf32>
    %90 = arith.mulf %89, %86 : vector<64x64xf32>
    %91 = arith.select %88, %86, %90 : vector<64x64xi1>, vector<64x64xf32>
    %cst_75 = arith.constant 0.000000e+00 : f32
    %92 = vector.broadcast %cst_75 : f32 to vector<16x64xf32>
    %c0_76 = arith.constant 0 : index
    %c0_77 = arith.constant 0 : index
    %c0_78 = arith.constant 0 : index
    %93 = vector.load %arg5[%c0_76, %c0_77, %c0_78] : memref<9x16x64xf32, #tpu.memory_space<vmem>>, vector<1x16x64xf32>
    %94 = vector.shape_cast %93 : vector<1x16x64xf32> to vector<16x64xf32>
    %cst_79 = arith.constant dense<0.000000e+00> : vector<16x64xf32>
    %95 = tpu.matmul %94, %91, %cst_79 {dimension_numbers = #tpu.dot_dimension_numbers<[1], [0], [0], [1], [0, 0, 1, 1], [], []>} : vector<16x64xf32>, vector<64x64xf32>, vector<16x64xf32> -> vector<16x64xf32>
    %c0_80 = arith.constant 0 : index
    %c0_81 = arith.constant 0 : index
    %c0_82 = arith.constant 0 : index
    %96 = vector.load %arg6[%c0_80, %c0_81, %c0_82] : memref<9x64x64xf32, #tpu.memory_space<vmem>>, vector<1x64x64xf32>
    %97 = vector.shape_cast %96 : vector<1x64x64xf32> to vector<64x64xf32>
    %cst_83 = arith.constant dense<0.000000e+00> : vector<16x64xf32>
    %98 = tpu.matmul %95, %97, %cst_83 {dimension_numbers = #tpu.dot_dimension_numbers<[1], [0], [0], [1], [0, 0, 1, 1], [], []>} : vector<16x64xf32>, vector<64x64xf32>, vector<16x64xf32> -> vector<16x64xf32>
    %99 = arith.addf %92, %98 : vector<16x64xf32>
    %c1_84 = arith.constant 1 : index
    %c0_85 = arith.constant 0 : index
    %c0_86 = arith.constant 0 : index
    %100 = vector.load %arg5[%c1_84, %c0_85, %c0_86] : memref<9x16x64xf32, #tpu.memory_space<vmem>>, vector<1x16x64xf32>
    %101 = vector.shape_cast %100 : vector<1x16x64xf32> to vector<16x64xf32>
    %cst_87 = arith.constant dense<0.000000e+00> : vector<16x64xf32>
    %102 = tpu.matmul %101, %91, %cst_87 {dimension_numbers = #tpu.dot_dimension_numbers<[1], [0], [0], [1], [0, 0, 1, 1], [], []>} : vector<16x64xf32>, vector<64x64xf32>, vector<16x64xf32> -> vector<16x64xf32>
    %c1_88 = arith.constant 1 : index
    %c0_89 = arith.constant 0 : index
    %c0_90 = arith.constant 0 : index
    %103 = vector.load %arg6[%c1_88, %c0_89, %c0_90] : memref<9x64x64xf32, #tpu.memory_space<vmem>>, vector<1x64x64xf32>
    %104 = vector.shape_cast %103 : vector<1x64x64xf32> to vector<64x64xf32>
    %cst_91 = arith.constant dense<0.000000e+00> : vector<16x64xf32>
    %105 = tpu.matmul %102, %104, %cst_91 {dimension_numbers = #tpu.dot_dimension_numbers<[1], [0], [0], [1], [0, 0, 1, 1], [], []>} : vector<16x64xf32>, vector<64x64xf32>, vector<16x64xf32> -> vector<16x64xf32>
    %106 = arith.addf %99, %105 : vector<16x64xf32>
    %c2_92 = arith.constant 2 : index
    %c0_93 = arith.constant 0 : index
    %c0_94 = arith.constant 0 : index
    %107 = vector.load %arg5[%c2_92, %c0_93, %c0_94] : memref<9x16x64xf32, #tpu.memory_space<vmem>>, vector<1x16x64xf32>
    %108 = vector.shape_cast %107 : vector<1x16x64xf32> to vector<16x64xf32>
    %cst_95 = arith.constant dense<0.000000e+00> : vector<16x64xf32>
    %109 = tpu.matmul %108, %91, %cst_95 {dimension_numbers = #tpu.dot_dimension_numbers<[1], [0], [0], [1], [0, 0, 1, 1], [], []>} : vector<16x64xf32>, vector<64x64xf32>, vector<16x64xf32> -> vector<16x64xf32>
    %c2_96 = arith.constant 2 : index
    %c0_97 = arith.constant 0 : index
    %c0_98 = arith.constant 0 : index
    %110 = vector.load %arg6[%c2_96, %c0_97, %c0_98] : memref<9x64x64xf32, #tpu.memory_space<vmem>>, vector<1x64x64xf32>
    %111 = vector.shape_cast %110 : vector<1x64x64xf32> to vector<64x64xf32>
    %cst_99 = arith.constant dense<0.000000e+00> : vector<16x64xf32>
    %112 = tpu.matmul %109, %111, %cst_99 {dimension_numbers = #tpu.dot_dimension_numbers<[1], [0], [0], [1], [0, 0, 1, 1], [], []>} : vector<16x64xf32>, vector<64x64xf32>, vector<16x64xf32> -> vector<16x64xf32>
    %113 = arith.addf %106, %112 : vector<16x64xf32>
    %c3_100 = arith.constant 3 : index
    %c0_101 = arith.constant 0 : index
    %c0_102 = arith.constant 0 : index
    %114 = vector.load %arg5[%c3_100, %c0_101, %c0_102] : memref<9x16x64xf32, #tpu.memory_space<vmem>>, vector<1x16x64xf32>
    %115 = vector.shape_cast %114 : vector<1x16x64xf32> to vector<16x64xf32>
    %cst_103 = arith.constant dense<0.000000e+00> : vector<16x64xf32>
    %116 = tpu.matmul %115, %91, %cst_103 {dimension_numbers = #tpu.dot_dimension_numbers<[1], [0], [0], [1], [0, 0, 1, 1], [], []>} : vector<16x64xf32>, vector<64x64xf32>, vector<16x64xf32> -> vector<16x64xf32>
    %c3_104 = arith.constant 3 : index
    %c0_105 = arith.constant 0 : index
    %c0_106 = arith.constant 0 : index
    %117 = vector.load %arg6[%c3_104, %c0_105, %c0_106] : memref<9x64x64xf32, #tpu.memory_space<vmem>>, vector<1x64x64xf32>
    %118 = vector.shape_cast %117 : vector<1x64x64xf32> to vector<64x64xf32>
    %cst_107 = arith.constant dense<0.000000e+00> : vector<16x64xf32>
    %119 = tpu.matmul %116, %118, %cst_107 {dimension_numbers = #tpu.dot_dimension_numbers<[1], [0], [0], [1], [0, 0, 1, 1], [], []>} : vector<16x64xf32>, vector<64x64xf32>, vector<16x64xf32> -> vector<16x64xf32>
    %120 = arith.addf %113, %119 : vector<16x64xf32>
    %c4_108 = arith.constant 4 : index
    %c0_109 = arith.constant 0 : index
    %c0_110 = arith.constant 0 : index
    %121 = vector.load %arg5[%c4_108, %c0_109, %c0_110] : memref<9x16x64xf32, #tpu.memory_space<vmem>>, vector<1x16x64xf32>
    %122 = vector.shape_cast %121 : vector<1x16x64xf32> to vector<16x64xf32>
    %cst_111 = arith.constant dense<0.000000e+00> : vector<16x64xf32>
    %123 = tpu.matmul %122, %91, %cst_111 {dimension_numbers = #tpu.dot_dimension_numbers<[1], [0], [0], [1], [0, 0, 1, 1], [], []>} : vector<16x64xf32>, vector<64x64xf32>, vector<16x64xf32> -> vector<16x64xf32>
    %c4_112 = arith.constant 4 : index
    %c0_113 = arith.constant 0 : index
    %c0_114 = arith.constant 0 : index
    %124 = vector.load %arg6[%c4_112, %c0_113, %c0_114] : memref<9x64x64xf32, #tpu.memory_space<vmem>>, vector<1x64x64xf32>
    %125 = vector.shape_cast %124 : vector<1x64x64xf32> to vector<64x64xf32>
    %cst_115 = arith.constant dense<0.000000e+00> : vector<16x64xf32>
    %126 = tpu.matmul %123, %125, %cst_115 {dimension_numbers = #tpu.dot_dimension_numbers<[1], [0], [0], [1], [0, 0, 1, 1], [], []>} : vector<16x64xf32>, vector<64x64xf32>, vector<16x64xf32> -> vector<16x64xf32>
    %127 = arith.addf %120, %126 : vector<16x64xf32>
    %c5_116 = arith.constant 5 : index
    %c0_117 = arith.constant 0 : index
    %c0_118 = arith.constant 0 : index
    %128 = vector.load %arg5[%c5_116, %c0_117, %c0_118] : memref<9x16x64xf32, #tpu.memory_space<vmem>>, vector<1x16x64xf32>
    %129 = vector.shape_cast %128 : vector<1x16x64xf32> to vector<16x64xf32>
    %cst_119 = arith.constant dense<0.000000e+00> : vector<16x64xf32>
    %130 = tpu.matmul %129, %91, %cst_119 {dimension_numbers = #tpu.dot_dimension_numbers<[1], [0], [0], [1], [0, 0, 1, 1], [], []>} : vector<16x64xf32>, vector<64x64xf32>, vector<16x64xf32> -> vector<16x64xf32>
    %c5_120 = arith.constant 5 : index
    %c0_121 = arith.constant 0 : index
    %c0_122 = arith.constant 0 : index
    %131 = vector.load %arg6[%c5_120, %c0_121, %c0_122] : memref<9x64x64xf32, #tpu.memory_space<vmem>>, vector<1x64x64xf32>
    %132 = vector.shape_cast %131 : vector<1x64x64xf32> to vector<64x64xf32>
    %cst_123 = arith.constant dense<0.000000e+00> : vector<16x64xf32>
    %133 = tpu.matmul %130, %132, %cst_123 {dimension_numbers = #tpu.dot_dimension_numbers<[1], [0], [0], [1], [0, 0, 1, 1], [], []>} : vector<16x64xf32>, vector<64x64xf32>, vector<16x64xf32> -> vector<16x64xf32>
    %134 = arith.addf %127, %133 : vector<16x64xf32>
    %c6_124 = arith.constant 6 : index
    %c0_125 = arith.constant 0 : index
    %c0_126 = arith.constant 0 : index
    %135 = vector.load %arg5[%c6_124, %c0_125, %c0_126] : memref<9x16x64xf32, #tpu.memory_space<vmem>>, vector<1x16x64xf32>
    %136 = vector.shape_cast %135 : vector<1x16x64xf32> to vector<16x64xf32>
    %cst_127 = arith.constant dense<0.000000e+00> : vector<16x64xf32>
    %137 = tpu.matmul %136, %91, %cst_127 {dimension_numbers = #tpu.dot_dimension_numbers<[1], [0], [0], [1], [0, 0, 1, 1], [], []>} : vector<16x64xf32>, vector<64x64xf32>, vector<16x64xf32> -> vector<16x64xf32>
    %c6_128 = arith.constant 6 : index
    %c0_129 = arith.constant 0 : index
    %c0_130 = arith.constant 0 : index
    %138 = vector.load %arg6[%c6_128, %c0_129, %c0_130] : memref<9x64x64xf32, #tpu.memory_space<vmem>>, vector<1x64x64xf32>
    %139 = vector.shape_cast %138 : vector<1x64x64xf32> to vector<64x64xf32>
    %cst_131 = arith.constant dense<0.000000e+00> : vector<16x64xf32>
    %140 = tpu.matmul %137, %139, %cst_131 {dimension_numbers = #tpu.dot_dimension_numbers<[1], [0], [0], [1], [0, 0, 1, 1], [], []>} : vector<16x64xf32>, vector<64x64xf32>, vector<16x64xf32> -> vector<16x64xf32>
    %141 = arith.addf %134, %140 : vector<16x64xf32>
    %c7_132 = arith.constant 7 : index
    %c0_133 = arith.constant 0 : index
    %c0_134 = arith.constant 0 : index
    %142 = vector.load %arg5[%c7_132, %c0_133, %c0_134] : memref<9x16x64xf32, #tpu.memory_space<vmem>>, vector<1x16x64xf32>
    %143 = vector.shape_cast %142 : vector<1x16x64xf32> to vector<16x64xf32>
    %cst_135 = arith.constant dense<0.000000e+00> : vector<16x64xf32>
    %144 = tpu.matmul %143, %91, %cst_135 {dimension_numbers = #tpu.dot_dimension_numbers<[1], [0], [0], [1], [0, 0, 1, 1], [], []>} : vector<16x64xf32>, vector<64x64xf32>, vector<16x64xf32> -> vector<16x64xf32>
    %c7_136 = arith.constant 7 : index
    %c0_137 = arith.constant 0 : index
    %c0_138 = arith.constant 0 : index
    %145 = vector.load %arg6[%c7_136, %c0_137, %c0_138] : memref<9x64x64xf32, #tpu.memory_space<vmem>>, vector<1x64x64xf32>
    %146 = vector.shape_cast %145 : vector<1x64x64xf32> to vector<64x64xf32>
    %cst_139 = arith.constant dense<0.000000e+00> : vector<16x64xf32>
    %147 = tpu.matmul %144, %146, %cst_139 {dimension_numbers = #tpu.dot_dimension_numbers<[1], [0], [0], [1], [0, 0, 1, 1], [], []>} : vector<16x64xf32>, vector<64x64xf32>, vector<16x64xf32> -> vector<16x64xf32>
    %148 = arith.addf %141, %147 : vector<16x64xf32>
    %c8_140 = arith.constant 8 : index
    %c0_141 = arith.constant 0 : index
    %c0_142 = arith.constant 0 : index
    %149 = vector.load %arg5[%c8_140, %c0_141, %c0_142] : memref<9x16x64xf32, #tpu.memory_space<vmem>>, vector<1x16x64xf32>
    %150 = vector.shape_cast %149 : vector<1x16x64xf32> to vector<16x64xf32>
    %cst_143 = arith.constant dense<0.000000e+00> : vector<16x64xf32>
    %151 = tpu.matmul %150, %91, %cst_143 {dimension_numbers = #tpu.dot_dimension_numbers<[1], [0], [0], [1], [0, 0, 1, 1], [], []>} : vector<16x64xf32>, vector<64x64xf32>, vector<16x64xf32> -> vector<16x64xf32>
    %c8_144 = arith.constant 8 : index
    %c0_145 = arith.constant 0 : index
    %c0_146 = arith.constant 0 : index
    %152 = vector.load %arg6[%c8_144, %c0_145, %c0_146] : memref<9x64x64xf32, #tpu.memory_space<vmem>>, vector<1x64x64xf32>
    %153 = vector.shape_cast %152 : vector<1x64x64xf32> to vector<64x64xf32>
    %cst_147 = arith.constant dense<0.000000e+00> : vector<16x64xf32>
    %154 = tpu.matmul %151, %153, %cst_147 {dimension_numbers = #tpu.dot_dimension_numbers<[1], [0], [0], [1], [0, 0, 1, 1], [], []>} : vector<16x64xf32>, vector<64x64xf32>, vector<16x64xf32> -> vector<16x64xf32>
    %155 = arith.addf %148, %154 : vector<16x64xf32>
    %c0_148 = arith.constant 0 : index
    %c0_149 = arith.constant 0 : index
    %156 = vector.load %arg7[%c0_148, %c0_149] : memref<1x64xf32, #tpu.memory_space<vmem>>, vector<1x64xf32>
    %157 = vector.broadcast %156 : vector<1x64xf32> to vector<16x64xf32>
    %158 = arith.addf %155, %157 : vector<16x64xf32>
    %cst_150 = arith.constant dense<0.000000e+00> : vector<64xf32>
    %159 = vector.multi_reduction <add>, %158, %cst_150 [0] : vector<16x64xf32> to vector<64xf32>
    %160 = vector.shape_cast %159 : vector<64xf32> to vector<1x64xf32>
    %cst_151 = arith.constant 1.600000e+01 : f32
    %161 = vector.broadcast %cst_151 : f32 to vector<1x64xf32>
    %162 = arith.divf %160, %161 : vector<1x64xf32>
    %163 = arith.mulf %158, %158 : vector<16x64xf32>
    %cst_152 = arith.constant dense<0.000000e+00> : vector<64xf32>
    %164 = vector.multi_reduction <add>, %163, %cst_152 [0] : vector<16x64xf32> to vector<64xf32>
    %165 = vector.shape_cast %164 : vector<64xf32> to vector<1x64xf32>
    %cst_153 = arith.constant 1.600000e+01 : f32
    %166 = vector.broadcast %cst_153 : f32 to vector<1x64xf32>
    %167 = arith.divf %165, %166 : vector<1x64xf32>
    %168 = arith.mulf %162, %162 : vector<1x64xf32>
    %169 = arith.subf %167, %168 : vector<1x64xf32>
    %170 = vector.broadcast %162 : vector<1x64xf32> to vector<16x64xf32>
    %171 = arith.subf %158, %170 : vector<16x64xf32>
    %cst_154 = arith.constant 9.99999974E-6 : f32
    %172 = vector.broadcast %cst_154 : f32 to vector<1x64xf32>
    %173 = arith.addf %169, %172 : vector<1x64xf32>
    %174 = math.rsqrt %173 : vector<1x64xf32>
    %175 = vector.broadcast %174 : vector<1x64xf32> to vector<16x64xf32>
    %176 = arith.mulf %171, %175 : vector<16x64xf32>
    %cst_155 = arith.constant 0.000000e+00 : f32
    %177 = vector.broadcast %cst_155 : f32 to vector<16x64xf32>
    %178 = arith.cmpf oge, %176, %177 : vector<16x64xf32>
    %cst_156 = arith.constant 2.000000e-01 : f32
    %179 = vector.broadcast %cst_156 : f32 to vector<16x64xf32>
    %180 = arith.mulf %179, %176 : vector<16x64xf32>
    %181 = arith.select %178, %176, %180 : vector<16x64xi1>, vector<16x64xf32>
    %c0_157 = arith.constant 0 : index
    %c0_158 = arith.constant 0 : index
    %182 = vector.load %arg9[%c0_157, %c0_158] : memref<1x256xf32, #tpu.memory_space<vmem>>, vector<1x256xf32>
    %183 = vector.extract_strided_slice %181 {offsets = [0, 0], sizes = [1, 64], strides = [1, 1]} : vector<16x64xf32> to vector<1x64xf32>
    %c0_159 = arith.constant 0 : index
    %c0_160 = arith.constant 0 : index
    %c0_161 = arith.constant 0 : index
    %184 = vector.load %arg8[%c0_159, %c0_160, %c0_161] : memref<16x64x256xf32, #tpu.memory_space<vmem>>, vector<1x64x256xf32>
    %185 = vector.shape_cast %184 : vector<1x64x256xf32> to vector<64x256xf32>
    %cst_162 = arith.constant dense<0.000000e+00> : vector<1x256xf32>
    %186 = tpu.matmul %183, %185, %cst_162 {dimension_numbers = #tpu.dot_dimension_numbers<[1], [0], [0], [1], [0, 0, 1, 1], [], []>} : vector<1x64xf32>, vector<64x256xf32>, vector<1x256xf32> -> vector<1x256xf32>
    %187 = arith.addf %182, %186 : vector<1x256xf32>
    %188 = vector.extract_strided_slice %181 {offsets = [1, 0], sizes = [1, 64], strides = [1, 1]} : vector<16x64xf32> to vector<1x64xf32>
    %c1_163 = arith.constant 1 : index
    %c0_164 = arith.constant 0 : index
    %c0_165 = arith.constant 0 : index
    %189 = vector.load %arg8[%c1_163, %c0_164, %c0_165] : memref<16x64x256xf32, #tpu.memory_space<vmem>>, vector<1x64x256xf32>
    %190 = vector.shape_cast %189 : vector<1x64x256xf32> to vector<64x256xf32>
    %cst_166 = arith.constant dense<0.000000e+00> : vector<1x256xf32>
    %191 = tpu.matmul %188, %190, %cst_166 {dimension_numbers = #tpu.dot_dimension_numbers<[1], [0], [0], [1], [0, 0, 1, 1], [], []>} : vector<1x64xf32>, vector<64x256xf32>, vector<1x256xf32> -> vector<1x256xf32>
    %192 = arith.addf %187, %191 : vector<1x256xf32>
    %193 = vector.extract_strided_slice %181 {offsets = [2, 0], sizes = [1, 64], strides = [1, 1]} : vector<16x64xf32> to vector<1x64xf32>
    %c2_167 = arith.constant 2 : index
    %c0_168 = arith.constant 0 : index
    %c0_169 = arith.constant 0 : index
    %194 = vector.load %arg8[%c2_167, %c0_168, %c0_169] : memref<16x64x256xf32, #tpu.memory_space<vmem>>, vector<1x64x256xf32>
    %195 = vector.shape_cast %194 : vector<1x64x256xf32> to vector<64x256xf32>
    %cst_170 = arith.constant dense<0.000000e+00> : vector<1x256xf32>
    %196 = tpu.matmul %193, %195, %cst_170 {dimension_numbers = #tpu.dot_dimension_numbers<[1], [0], [0], [1], [0, 0, 1, 1], [], []>} : vector<1x64xf32>, vector<64x256xf32>, vector<1x256xf32> -> vector<1x256xf32>
    %197 = arith.addf %192, %196 : vector<1x256xf32>
    %198 = vector.extract_strided_slice %181 {offsets = [3, 0], sizes = [1, 64], strides = [1, 1]} : vector<16x64xf32> to vector<1x64xf32>
    %c3_171 = arith.constant 3 : index
    %c0_172 = arith.constant 0 : index
    %c0_173 = arith.constant 0 : index
    %199 = vector.load %arg8[%c3_171, %c0_172, %c0_173] : memref<16x64x256xf32, #tpu.memory_space<vmem>>, vector<1x64x256xf32>
    %200 = vector.shape_cast %199 : vector<1x64x256xf32> to vector<64x256xf32>
    %cst_174 = arith.constant dense<0.000000e+00> : vector<1x256xf32>
    %201 = tpu.matmul %198, %200, %cst_174 {dimension_numbers = #tpu.dot_dimension_numbers<[1], [0], [0], [1], [0, 0, 1, 1], [], []>} : vector<1x64xf32>, vector<64x256xf32>, vector<1x256xf32> -> vector<1x256xf32>
    %202 = arith.addf %197, %201 : vector<1x256xf32>
    %203 = vector.extract_strided_slice %181 {offsets = [4, 0], sizes = [1, 64], strides = [1, 1]} : vector<16x64xf32> to vector<1x64xf32>
    %c4_175 = arith.constant 4 : index
    %c0_176 = arith.constant 0 : index
    %c0_177 = arith.constant 0 : index
    %204 = vector.load %arg8[%c4_175, %c0_176, %c0_177] : memref<16x64x256xf32, #tpu.memory_space<vmem>>, vector<1x64x256xf32>
    %205 = vector.shape_cast %204 : vector<1x64x256xf32> to vector<64x256xf32>
    %cst_178 = arith.constant dense<0.000000e+00> : vector<1x256xf32>
    %206 = tpu.matmul %203, %205, %cst_178 {dimension_numbers = #tpu.dot_dimension_numbers<[1], [0], [0], [1], [0, 0, 1, 1], [], []>} : vector<1x64xf32>, vector<64x256xf32>, vector<1x256xf32> -> vector<1x256xf32>
    %207 = arith.addf %202, %206 : vector<1x256xf32>
    %208 = vector.extract_strided_slice %181 {offsets = [5, 0], sizes = [1, 64], strides = [1, 1]} : vector<16x64xf32> to vector<1x64xf32>
    %c5_179 = arith.constant 5 : index
    %c0_180 = arith.constant 0 : index
    %c0_181 = arith.constant 0 : index
    %209 = vector.load %arg8[%c5_179, %c0_180, %c0_181] : memref<16x64x256xf32, #tpu.memory_space<vmem>>, vector<1x64x256xf32>
    %210 = vector.shape_cast %209 : vector<1x64x256xf32> to vector<64x256xf32>
    %cst_182 = arith.constant dense<0.000000e+00> : vector<1x256xf32>
    %211 = tpu.matmul %208, %210, %cst_182 {dimension_numbers = #tpu.dot_dimension_numbers<[1], [0], [0], [1], [0, 0, 1, 1], [], []>} : vector<1x64xf32>, vector<64x256xf32>, vector<1x256xf32> -> vector<1x256xf32>
    %212 = arith.addf %207, %211 : vector<1x256xf32>
    %213 = vector.extract_strided_slice %181 {offsets = [6, 0], sizes = [1, 64], strides = [1, 1]} : vector<16x64xf32> to vector<1x64xf32>
    %c6_183 = arith.constant 6 : index
    %c0_184 = arith.constant 0 : index
    %c0_185 = arith.constant 0 : index
    %214 = vector.load %arg8[%c6_183, %c0_184, %c0_185] : memref<16x64x256xf32, #tpu.memory_space<vmem>>, vector<1x64x256xf32>
    %215 = vector.shape_cast %214 : vector<1x64x256xf32> to vector<64x256xf32>
    %cst_186 = arith.constant dense<0.000000e+00> : vector<1x256xf32>
    %216 = tpu.matmul %213, %215, %cst_186 {dimension_numbers = #tpu.dot_dimension_numbers<[1], [0], [0], [1], [0, 0, 1, 1], [], []>} : vector<1x64xf32>, vector<64x256xf32>, vector<1x256xf32> -> vector<1x256xf32>
    %217 = arith.addf %212, %216 : vector<1x256xf32>
    %218 = vector.extract_strided_slice %181 {offsets = [7, 0], sizes = [1, 64], strides = [1, 1]} : vector<16x64xf32> to vector<1x64xf32>
    %c7_187 = arith.constant 7 : index
    %c0_188 = arith.constant 0 : index
    %c0_189 = arith.constant 0 : index
    %219 = vector.load %arg8[%c7_187, %c0_188, %c0_189] : memref<16x64x256xf32, #tpu.memory_space<vmem>>, vector<1x64x256xf32>
    %220 = vector.shape_cast %219 : vector<1x64x256xf32> to vector<64x256xf32>
    %cst_190 = arith.constant dense<0.000000e+00> : vector<1x256xf32>
    %221 = tpu.matmul %218, %220, %cst_190 {dimension_numbers = #tpu.dot_dimension_numbers<[1], [0], [0], [1], [0, 0, 1, 1], [], []>} : vector<1x64xf32>, vector<64x256xf32>, vector<1x256xf32> -> vector<1x256xf32>
    %222 = arith.addf %217, %221 : vector<1x256xf32>
    %223 = vector.extract_strided_slice %181 {offsets = [8, 0], sizes = [1, 64], strides = [1, 1]} : vector<16x64xf32> to vector<1x64xf32>
    %c8_191 = arith.constant 8 : index
    %c0_192 = arith.constant 0 : index
    %c0_193 = arith.constant 0 : index
    %224 = vector.load %arg8[%c8_191, %c0_192, %c0_193] : memref<16x64x256xf32, #tpu.memory_space<vmem>>, vector<1x64x256xf32>
    %225 = vector.shape_cast %224 : vector<1x64x256xf32> to vector<64x256xf32>
    %cst_194 = arith.constant dense<0.000000e+00> : vector<1x256xf32>
    %226 = tpu.matmul %223, %225, %cst_194 {dimension_numbers = #tpu.dot_dimension_numbers<[1], [0], [0], [1], [0, 0, 1, 1], [], []>} : vector<1x64xf32>, vector<64x256xf32>, vector<1x256xf32> -> vector<1x256xf32>
    %227 = arith.addf %222, %226 : vector<1x256xf32>
    %228 = vector.extract_strided_slice %181 {offsets = [9, 0], sizes = [1, 64], strides = [1, 1]} : vector<16x64xf32> to vector<1x64xf32>
    %c9 = arith.constant 9 : index
    %c0_195 = arith.constant 0 : index
    %c0_196 = arith.constant 0 : index
    %229 = vector.load %arg8[%c9, %c0_195, %c0_196] : memref<16x64x256xf32, #tpu.memory_space<vmem>>, vector<1x64x256xf32>
    %230 = vector.shape_cast %229 : vector<1x64x256xf32> to vector<64x256xf32>
    %cst_197 = arith.constant dense<0.000000e+00> : vector<1x256xf32>
    %231 = tpu.matmul %228, %230, %cst_197 {dimension_numbers = #tpu.dot_dimension_numbers<[1], [0], [0], [1], [0, 0, 1, 1], [], []>} : vector<1x64xf32>, vector<64x256xf32>, vector<1x256xf32> -> vector<1x256xf32>
    %232 = arith.addf %227, %231 : vector<1x256xf32>
    %233 = vector.extract_strided_slice %181 {offsets = [10, 0], sizes = [1, 64], strides = [1, 1]} : vector<16x64xf32> to vector<1x64xf32>
    %c10 = arith.constant 10 : index
    %c0_198 = arith.constant 0 : index
    %c0_199 = arith.constant 0 : index
    %234 = vector.load %arg8[%c10, %c0_198, %c0_199] : memref<16x64x256xf32, #tpu.memory_space<vmem>>, vector<1x64x256xf32>
    %235 = vector.shape_cast %234 : vector<1x64x256xf32> to vector<64x256xf32>
    %cst_200 = arith.constant dense<0.000000e+00> : vector<1x256xf32>
    %236 = tpu.matmul %233, %235, %cst_200 {dimension_numbers = #tpu.dot_dimension_numbers<[1], [0], [0], [1], [0, 0, 1, 1], [], []>} : vector<1x64xf32>, vector<64x256xf32>, vector<1x256xf32> -> vector<1x256xf32>
    %237 = arith.addf %232, %236 : vector<1x256xf32>
    %238 = vector.extract_strided_slice %181 {offsets = [11, 0], sizes = [1, 64], strides = [1, 1]} : vector<16x64xf32> to vector<1x64xf32>
    %c11 = arith.constant 11 : index
    %c0_201 = arith.constant 0 : index
    %c0_202 = arith.constant 0 : index
    %239 = vector.load %arg8[%c11, %c0_201, %c0_202] : memref<16x64x256xf32, #tpu.memory_space<vmem>>, vector<1x64x256xf32>
    %240 = vector.shape_cast %239 : vector<1x64x256xf32> to vector<64x256xf32>
    %cst_203 = arith.constant dense<0.000000e+00> : vector<1x256xf32>
    %241 = tpu.matmul %238, %240, %cst_203 {dimension_numbers = #tpu.dot_dimension_numbers<[1], [0], [0], [1], [0, 0, 1, 1], [], []>} : vector<1x64xf32>, vector<64x256xf32>, vector<1x256xf32> -> vector<1x256xf32>
    %242 = arith.addf %237, %241 : vector<1x256xf32>
    %243 = vector.extract_strided_slice %181 {offsets = [12, 0], sizes = [1, 64], strides = [1, 1]} : vector<16x64xf32> to vector<1x64xf32>
    %c12 = arith.constant 12 : index
    %c0_204 = arith.constant 0 : index
    %c0_205 = arith.constant 0 : index
    %244 = vector.load %arg8[%c12, %c0_204, %c0_205] : memref<16x64x256xf32, #tpu.memory_space<vmem>>, vector<1x64x256xf32>
    %245 = vector.shape_cast %244 : vector<1x64x256xf32> to vector<64x256xf32>
    %cst_206 = arith.constant dense<0.000000e+00> : vector<1x256xf32>
    %246 = tpu.matmul %243, %245, %cst_206 {dimension_numbers = #tpu.dot_dimension_numbers<[1], [0], [0], [1], [0, 0, 1, 1], [], []>} : vector<1x64xf32>, vector<64x256xf32>, vector<1x256xf32> -> vector<1x256xf32>
    %247 = arith.addf %242, %246 : vector<1x256xf32>
    %248 = vector.extract_strided_slice %181 {offsets = [13, 0], sizes = [1, 64], strides = [1, 1]} : vector<16x64xf32> to vector<1x64xf32>
    %c13 = arith.constant 13 : index
    %c0_207 = arith.constant 0 : index
    %c0_208 = arith.constant 0 : index
    %249 = vector.load %arg8[%c13, %c0_207, %c0_208] : memref<16x64x256xf32, #tpu.memory_space<vmem>>, vector<1x64x256xf32>
    %250 = vector.shape_cast %249 : vector<1x64x256xf32> to vector<64x256xf32>
    %cst_209 = arith.constant dense<0.000000e+00> : vector<1x256xf32>
    %251 = tpu.matmul %248, %250, %cst_209 {dimension_numbers = #tpu.dot_dimension_numbers<[1], [0], [0], [1], [0, 0, 1, 1], [], []>} : vector<1x64xf32>, vector<64x256xf32>, vector<1x256xf32> -> vector<1x256xf32>
    %252 = arith.addf %247, %251 : vector<1x256xf32>
    %253 = vector.extract_strided_slice %181 {offsets = [14, 0], sizes = [1, 64], strides = [1, 1]} : vector<16x64xf32> to vector<1x64xf32>
    %c14 = arith.constant 14 : index
    %c0_210 = arith.constant 0 : index
    %c0_211 = arith.constant 0 : index
    %254 = vector.load %arg8[%c14, %c0_210, %c0_211] : memref<16x64x256xf32, #tpu.memory_space<vmem>>, vector<1x64x256xf32>
    %255 = vector.shape_cast %254 : vector<1x64x256xf32> to vector<64x256xf32>
    %cst_212 = arith.constant dense<0.000000e+00> : vector<1x256xf32>
    %256 = tpu.matmul %253, %255, %cst_212 {dimension_numbers = #tpu.dot_dimension_numbers<[1], [0], [0], [1], [0, 0, 1, 1], [], []>} : vector<1x64xf32>, vector<64x256xf32>, vector<1x256xf32> -> vector<1x256xf32>
    %257 = arith.addf %252, %256 : vector<1x256xf32>
    %258 = vector.extract_strided_slice %181 {offsets = [15, 0], sizes = [1, 64], strides = [1, 1]} : vector<16x64xf32> to vector<1x64xf32>
    %c15 = arith.constant 15 : index
    %c0_213 = arith.constant 0 : index
    %c0_214 = arith.constant 0 : index
    %259 = vector.load %arg8[%c15, %c0_213, %c0_214] : memref<16x64x256xf32, #tpu.memory_space<vmem>>, vector<1x64x256xf32>
    %260 = vector.shape_cast %259 : vector<1x64x256xf32> to vector<64x256xf32>
    %cst_215 = arith.constant dense<0.000000e+00> : vector<1x256xf32>
    %261 = tpu.matmul %258, %260, %cst_215 {dimension_numbers = #tpu.dot_dimension_numbers<[1], [0], [0], [1], [0, 0, 1, 1], [], []>} : vector<1x64xf32>, vector<64x256xf32>, vector<1x256xf32> -> vector<1x256xf32>
    %262 = arith.addf %257, %261 : vector<1x256xf32>
    %cst_216 = arith.constant 0.000000e+00 : f32
    %263 = vector.broadcast %cst_216 : f32 to vector<1x256xf32>
    %264 = arith.cmpf oge, %262, %263 : vector<1x256xf32>
    %cst_217 = arith.constant 2.000000e-01 : f32
    %265 = vector.broadcast %cst_217 : f32 to vector<1x256xf32>
    %266 = arith.mulf %265, %262 : vector<1x256xf32>
    %267 = arith.select %264, %262, %266 : vector<1x256xi1>, vector<1x256xf32>
    %c0_218 = arith.constant 0 : index
    %c0_219 = arith.constant 0 : index
    %268 = vector.load %arg10[%c0_218, %c0_219] : memref<256x128xf32, #tpu.memory_space<vmem>>, vector<256x128xf32>
    %cst_220 = arith.constant dense<0.000000e+00> : vector<1x128xf32>
    %269 = tpu.matmul %267, %268, %cst_220 {dimension_numbers = #tpu.dot_dimension_numbers<[1], [0], [0], [1], [0, 0, 1, 1], [], []>} : vector<1x256xf32>, vector<256x128xf32>, vector<1x128xf32> -> vector<1x128xf32>
    %c0_221 = arith.constant 0 : index
    %c0_222 = arith.constant 0 : index
    %270 = vector.load %arg11[%c0_221, %c0_222] : memref<1x128xf32, #tpu.memory_space<vmem>>, vector<1x128xf32>
    %271 = arith.addf %269, %270 : vector<1x128xf32>
    %c0_223 = arith.constant 0 : index
    %c0_224 = arith.constant 0 : index
    %c0_225 = arith.constant 0 : index
    %272 = vector.load %arg12[%c0_223, %c0_224, %c0_225] : memref<1x1x128xf32, #tpu.memory_space<vmem>>, vector<1x1x128xf32>
    %273 = vector.shape_cast %272 : vector<1x1x128xf32> to vector<1x128xf32>
    %274 = vector.shape_cast %271 : vector<1x128xf32> to vector<1x1x128xf32>
    tpu.vector_store %arg12[%c0_223, %c0_224, %c0_225], %274 {strides = array<i32>} : memref<1x1x128xf32, #tpu.memory_space<vmem>>, vector<1x1x128xf32>,
    return
  }
  func.func @transform_0(%arg0: i32) -> (i32, i32, i32) {
    %c0_i32 = arith.constant 0 : i32
    %c0_i32_0 = arith.constant 0 : i32
    %c0_i32_1 = arith.constant 0 : i32
    return %arg0, %c0_i32, %c0_i32_0 : i32, i32, i32
  }
  func.func @transform_1(%arg0: i32) -> (i32, i32, i32) {
    %c0_i32 = arith.constant 0 : i32
    %c0_i32_0 = arith.constant 0 : i32
    %c0_i32_1 = arith.constant 0 : i32
    %c0_i32_2 = arith.constant 0 : i32
    return %c0_i32, %c0_i32_0, %c0_i32_1 : i32, i32, i32
  }
  func.func @transform_2(%arg0: i32) -> (i32, i32, i32) {
    %c0_i32 = arith.constant 0 : i32
    %c0_i32_0 = arith.constant 0 : i32
    %c0_i32_1 = arith.constant 0 : i32
    %c0_i32_2 = arith.constant 0 : i32
    return %c0_i32, %c0_i32_0, %c0_i32_1 : i32, i32, i32
  }
  func.func @transform_3(%arg0: i32) -> (i32, i32) {
    %c0_i32 = arith.constant 0 : i32
    %c0_i32_0 = arith.constant 0 : i32
    %c0_i32_1 = arith.constant 0 : i32
    return %c0_i32, %c0_i32_0 : i32, i32
  }
  func.func @transform_4(%arg0: i32) -> (i32, i32, i32) {
    %c0_i32 = arith.constant 0 : i32
    %c0_i32_0 = arith.constant 0 : i32
    %c0_i32_1 = arith.constant 0 : i32
    %c0_i32_2 = arith.constant 0 : i32
    return %c0_i32, %c0_i32_0, %c0_i32_1 : i32, i32, i32
  }
  func.func @transform_5(%arg0: i32) -> (i32, i32, i32) {
    %c0_i32 = arith.constant 0 : i32
    %c0_i32_0 = arith.constant 0 : i32
    %c0_i32_1 = arith.constant 0 : i32
    %c0_i32_2 = arith.constant 0 : i32
    return %c0_i32, %c0_i32_0, %c0_i32_1 : i32, i32, i32
  }
  func.func @transform_6(%arg0: i32) -> (i32, i32) {
    %c0_i32 = arith.constant 0 : i32
    %c0_i32_0 = arith.constant 0 : i32
    %c0_i32_1 = arith.constant 0 : i32
    return %c0_i32, %c0_i32_0 : i32, i32
  }
  func.func @transform_7(%arg0: i32) -> (i32, i32, i32) {
    %c0_i32 = arith.constant 0 : i32
    %c0_i32_0 = arith.constant 0 : i32
    %c0_i32_1 = arith.constant 0 : i32
    %c0_i32_2 = arith.constant 0 : i32
    return %c0_i32, %c0_i32_0, %c0_i32_1 : i32, i32, i32
  }
  func.func @transform_8(%arg0: i32) -> (i32, i32) {
    %c0_i32 = arith.constant 0 : i32
    %c0_i32_0 = arith.constant 0 : i32
    %c0_i32_1 = arith.constant 0 : i32
    return %c0_i32, %c0_i32_0 : i32, i32
  }
  func.func @transform_9(%arg0: i32) -> (i32, i32) {
    %c0_i32 = arith.constant 0 : i32
    %c0_i32_0 = arith.constant 0 : i32
    %c0_i32_1 = arith.constant 0 : i32
    return %c0_i32, %c0_i32_0 : i32, i32
  }
  func.func @transform_10(%arg0: i32) -> (i32, i32) {
    %c0_i32 = arith.constant 0 : i32
    %c0_i32_0 = arith.constant 0 : i32
    %c0_i32_1 = arith.constant 0 : i32
    return %c0_i32, %c0_i32_0 : i32, i32
  }
  func.func @transform_11(%arg0: i32) -> (i32, i32, i32) {
    %c0_i32 = arith.constant 0 : i32
    %c0_i32_0 = arith.constant 0 : i32
    %c0_i32_1 = arith.constant 0 : i32
    return %arg0, %c0_i32, %c0_i32_0 : i32, i32, i32
  }
}

</mosaic_0001>

<bundles_post_ra>
// kernel: embedding_discriminator_forward.1
= control target key start
LH: loop header
LB: loop body
LE: loop exit
PB: predicated region body
PF: predicated region fallthrough
CT: control target
= control target key end

     0   :  { %16 = vsyncpa [#allocation3], 0  ;;  %s8699_s0 = inlined_call_operand.vmem [shape: f32[2,3,256], index: 0, kind: input, shape index: {}]   ;;  %s8700_s1 = inlined_call_operand.hbm [shape: f32[9,64,256], index: 1, kind: input, shape index: {}]   ;;  %s8701_s2 = inlined_call_operand.vmem [shape: f32[9,3,64], index: 2, kind: input, shape index: {}]   ;;  %s8702_s3 = inlined_call_operand.vmem [shape: f32[1,64], index: 3, kind: input, shape index: {}]   ;;  %s8703_s4 = inlined_call_operand.hbm [shape: f32[9,16,64], index: 4, kind: input, shape index: {}]   ;;  %s8704_s5 = inlined_call_operand.hbm [shape: f32[9,64,64], index: 5, kind: input, shape index: {}]   ;;  %s8705_s6 = inlined_call_operand.vmem [shape: f32[1,64], index: 6, kind: input, shape index: {}]   ;;  %s8706_s7 = inlined_call_operand.hbm [shape: f32[16,64,256], index: 7, kind: input, shape index: {}]   ;;  %s8707_s8 = inlined_call_operand.vmem [shape: f32[1,256], index: 8, kind: input, shape index: {}]   ;;  %s8708_s9 = inlined_call_operand.hbm [shape: f32[256,128], index: 9, kind: input, shape index: {}]   ;;  %s8709_s10 = inlined_call_operand.vmem [shape: f32[1,128], index: 10, kind: input, shape index: {}]   ;;  %s8710_s11 = inlined_call_operand.hbm [shape: f32[2,1,128], index: 11, kind: output, shape index: {}]  }
   0x1   :  { %17 = vsyncpa [#allocation6], 0 }
   0x2   :  { %18 = vsyncpa [#allocation9], 0 }
   0x3   :  { %19 = vsyncpa [#allocation4], 0 }
   0x4   :  { %21 = vsyncpa [#allocation4 + $0x1], 0  ;;  %s7861_s17 = smov 0   ;;  %s7863_s18 = smov 0  }
   0x5   :  { %s7865_s19 = smov 0   ;;  %s7867_s20 = smov 0  }
   0x6 LB: > { %8720 = sst [smem:[#allocation16_spill]] %s7783_s19  ;;  %s7882_s21 = sadd.s32 4294967295, %s7787_s20   ;;  %s7787_s20 = sphi %s7867_s20, %s8739_s20   ;;  %s7783_s19 = sphi %s7865_s19, %s8741_s19   ;;  %s7779_s18 = sphi %s7863_s18, %s8743_s18   ;;  %s7775_s17 = sphi %s7861_s17, %s8742_s17  }
   0x7   : > { %s6554_s22 = sadd.s32 4294967294, %s7787_s20   ;;  %s7886_s23 = sadd.s32 1, %s7787_s20  }
   0x8   : > { %8721 = sst [smem:[#allocation17_spill]] %s7886_s23  ;;  %s270_s24 = sadd.s32 1, %s7783_s19 }
   0x9   : > { %s267_s25 = ssub.s32 %s7787_s20, %s7886_s23  ;;  %p280_p0 = scmp.ne.s32.totalorder %s7783_s19, %s7779_s18 }
   0xa   : > { %p268_p1 = scmp.eq.s32.totalorder %s267_s25, 0  ;;  %p281_p2 = scmp.eq.s32.totalorder %s7882_s21, 1 }
   0xb   : > { %p286_p3 = scmp.ne.s32.totalorder %s7779_s18, %s7775_s17  ;;  %p287_p4 = scmp.eq.s32.totalorder %s6554_s22, 1 }
   0xc   : > { %s7897_s26 = scalar_select %p268_p1, %s7783_s19, %s270_s24  }
   0xd   : > { %p7899_p5 = por %p281_p2, %p280_p0  ;;  %p7903_p6 = por %p287_p4, %p286_p3 }
   0xe   : > { %8722 = sst [smem:[#allocation18_spill]] %s7897_s26  ;;  %p6555_p7 = scmp.ge.s32.totalorder %s7787_s20, 1 }
   0xf   : > { %s8724_s28 = scalar_select %p7903_p6, 1, 0 }
  0x10   : > { %p294_p8 = scmp.lt.s32.totalorder %s7787_s20, 3  ;;  %p8715_p9 = scmp.eq.s32.totalorder %s7882_s21, 0 }
  0x11   : > { %8725 = sst [smem:[#allocation19_spill]] %s8724_s28  ;;  %s7789_s30 = smov [#allocation5]  }
  0x12   : > { %p7910_p10 = pnand %p6555_p7, %p294_p8  ;;  %s325_s12 = sshll.u32 %s7789_s30, 4  ;;  %s326_s12 = int_to_ptr.vmem [resolvable:$true] %s325_s12 }
  0x13   : > { %s7790_s14 = smov [#allocation8]   ;;  %s7596_s22 = scalar_lea.vmem %s326_s12, 2304 }
  0x14   : > { %p7505_p11 = pneg %p7910_p10  ;;  %s354_s15 = sshll.u32 %s7790_s14, 4  ;;  %s355_s15 = int_to_ptr.vmem [resolvable:$true] %s354_s15 }
  0x15   : > { %p7597_p0 = scmp.ne.s32.totalorder %s326_s12, %s7596_s22  ;;  %p7604_p3 = scmp.lt.s32.totalorder %s326_s12, %s326_s12 }
  0x16   : > { %p7918_p12 = pnand %p8715_p9, %p7505_p11  ;;  %p7605_p4 = scmp.lt.s32.totalorder %s7596_s22, %s7596_s22 }
  0x18   : > { %p7924_p13 = pneg %p7918_p12  ;;  %p7606_p7 = por %p7605_p4, %p7604_p3 }
  0x1a   : > { %p7599_p1 = pnand %p7597_p0, %p7924_p13 }
  0x1c   : > { %p7600_p2 = pneg %p7599_p1 }
  0x1e   : > { %p7607_p8 = pnand %p7606_p7, %p7600_p2 }
  0x20   : > { %7610 = shalt.err (!%p7607_p8)
}
  0x21   : > { %s8716_s24 = smov 128   ;;  %s8718_s25 = smov 8  }
  0x22   : > { %7511 = dma.hbm_to_vmem [thread:$0]  (!%p7918_p12), %s8703_s4, 2304, %s326_s12, [#allocation6], %s8716_s24, %s8716_s24, %s8718_s25  }
  0x23   : > { %s7793_s26 = smov [#allocation2]   ;;  %s7622_s23 = scalar_lea.vmem %s355_s15, 32768 }
  0x24   : > { %s306_s19 = sshll.u32 %s7793_s26, 4  ;;  %p7623_p11 = scmp.ne.s32.totalorder %s355_s15, %s7622_s23  ;;  %s307_s19 = int_to_ptr.vmem [resolvable:$true] %s306_s19 }
  0x25   : > { %p7630_p2 = scmp.lt.s32.totalorder %s355_s15, %s355_s15  ;;  %p7631_p3 = scmp.lt.s32.totalorder %s7622_s23, %s7622_s23 }
  0x26   : > { %p7625_p0 = pnand %p7623_p11, %p7924_p13 }
  0x27   : > { %p7632_p4 = por %p7631_p3, %p7630_p2 }
  0x28   : > { %p7626_p1 = pneg %p7625_p0 }
  0x2a   : > { %p7633_p7 = pnand %p7632_p4, %p7626_p1 }
  0x2c   : > { %7636 = shalt.err (!%p7633_p7)
}
  0x2d   : > { %s7794_s22 = smov 256   ;;  %s7795_s28 = smov 16  }
  0x2e   : > { %7517 = dma.hbm_to_vmem [thread:$0]  (!%p7918_p12), %s8706_s7, 32768, %s355_s15, [#allocation9], %s7794_s22, %s7794_s22, %s7795_s28  }
  0x2f   : > { %s7648_s26 = scalar_lea.vmem %s307_s19, 18432  ;;  %p7656_p9 = scmp.lt.s32.totalorder %s307_s19, %s307_s19 }
  0x30   : > { %p7649_p8 = scmp.ne.s32.totalorder %s307_s19, %s7648_s26  ;;  %p7657_p6 = scmp.lt.s32.totalorder %s7648_s26, %s7648_s26 }
  0x32   : > { %p7651_p11 = pnand %p7649_p8, %p7924_p13  ;;  %p7658_p2 = por %p7657_p6, %p7656_p9 }
  0x34   : > { %p7652_p0 = pneg %p7651_p11 }
  0x36   : > { %p7659_p1 = pnand %p7658_p2, %p7652_p0 }
  0x38   : > { %7662 = shalt.err (!%p7659_p1)
}
  0x39   : > { %7508 = dma.hbm_to_vmem [thread:$0]  (!%p7918_p12), %s8700_s1, 18432, %s307_s19, [#allocation3], %s7794_s22, %s7794_s22, %s7795_s28  }
  0x3a   : > { %s7796_s30 = smov [#allocation7]   ;;  %s7797_s12 = smov [#allocation10]  }
  0x3b   : > { %s338_s15 = sshll.u32 %s7796_s30, 4  ;;  %s370_s24 = sshll.u32 %s7797_s12, 4  ;;  %s339_s15 = int_to_ptr.vmem [resolvable:$true] %s338_s15  ;;  %s371_s24 = int_to_ptr.vmem [resolvable:$true] %s370_s24 }
  0x3c   : > { %s7674_s25 = scalar_lea.vmem %s339_s15, 9216  ;;  %p7682_p6 = scmp.lt.s32.totalorder %s339_s15, %s339_s15 }
  0x3d   : > { %p7675_p3 = scmp.ne.s32.totalorder %s339_s15, %s7674_s25  ;;  %p7683_p9 = scmp.lt.s32.totalorder %s7674_s25, %s7674_s25 }
  0x3f   : > { %p7677_p4 = pnand %p7675_p3, %p7924_p13  ;;  %p7684_p8 = por %p7683_p9, %p7682_p6 }
  0x41   : > { %p7678_p7 = pneg %p7677_p4 }
  0x43   : > { %p7685_p11 = pnand %p7684_p8, %p7678_p7 }
  0x45   : > { %7688 = shalt.err (!%p7685_p11)
}
  0x46   : > { %s8729_s26 = smov 8   ;;  %s8730_s23 = smov 128  }
  0x47   : > { %7514 = dma.hbm_to_vmem [thread:$0]  (!%p7918_p12), %s8704_s5, 9216, %s339_s15, [#allocation6], %s8730_s23, %s8730_s23, %s8729_s26  }
  0x48   : > { %s7700_s22 = scalar_lea.vmem %s371_s24, 4096  ;;  %p7708_p3 = scmp.lt.s32.totalorder %s371_s24, %s371_s24 }
  0x49   : > { %p7701_p0 = scmp.ne.s32.totalorder %s371_s24, %s7700_s22  ;;  %p7709_p4 = scmp.lt.s32.totalorder %s7700_s22, %s7700_s22 }
  0x4b   : > { %p7703_p2 = pnand %p7701_p0, %p7924_p13  ;;  %p7710_p7 = por %p7709_p4, %p7708_p3 }
  0x4d   : > { %p7704_p1 = pneg %p7703_p2 }
  0x4f   : > { %p7711_p6 = pnand %p7710_p7, %p7704_p1 }
  0x51   : > { %7714 = shalt.err (!%p7711_p6)
}
  0x52   : > { %7520 = dma.hbm_to_vmem [thread:$0]  (!%p7918_p12), %s8708_s9, 4096, %s371_s24, [#allocation9], %s8730_s23, %s8730_s23, %s8729_s26  }
  0x53   : > { %397 = sbr.rel (%p7910_p10) target bundleno = 3477 (0xd95), region = 64  ;;  %p8731_p13 = scmp.eq.s32.totalorder (!%p7910_p10), %s7882_s21, 0 }
  0x58   : > { %7758 = dma.done.wait (%p8731_p13), [#allocation3], 18432   ;;  %p8732_p9 = pmov %p8731_p13 }
  0x5a   : > { %7760 = vsyncadd (%p8732_p9), [#allocation3], 4294948864  ;;  %p8733_p8 = pmov %p8732_p9 }
  0x5c   : > { %7762 = dma.done.wait (%p8733_p8), [#allocation6], 11520   ;;  %p8734_p11 = pmov %p8733_p8 }
  0x5d   : > { %p8735_p0 = pmov %p8733_p8 }
  0x5e   : > { %7764 = vsyncadd (%p8734_p11), [#allocation6], 4294955776 }
  0x5f   : > { %7766 = dma.done.wait (%p8735_p0), [#allocation9], 36864   ;;  %p8736_p12 = pmov %p8735_p0 }
  0x60   : > { %p452_p10 = scmp.lt.s32.totalorder %s7882_s21, 1  ;;  %v459_v1 = vld [vmem:[#allocation2 + $0x8] sm:$0xff]  ;;  %v458_v3 = vld [vmem:[#allocation2] sm:$0xff]  ;;  %v461_v4 = vld [vmem:[#allocation2 + $0x18] sm:$0xff]  ;;  %vm732_vm0 = vcmask 1042432   ;;  %vm707_vm1 = vcmask 23552  }
  0x61   : > { %7768 = vsyncadd (%p8736_p12), [#allocation9], 4294930432  ;;  %541 = vmatprep.mubr.f32.mxu0 %v459_v1  ;;  %v589_v5 = vld [vmem:[#allocation2 + $0xa8] sm:$0xff]  ;;  %v588_v6 = vld [vmem:[#allocation2 + $0xa0] sm:$0xff]  ;;  %vm2836_vm2 = vcmask 523264   ;;  %s6713_s15 = sshll.u32 %s7882_s21, 4 }
  0x62   : > { %s453_s29 = scalar_select %p452_p10, %s7882_s21, 1  ;;  %674 = vmatprep.mubr.f32.mxu1 %v589_v5  ;;  %v591_v7 = vld [vmem:[#allocation2 + $0xb8] sm:$0xff]  ;;  %v460_v8 = vld [vmem:[#allocation2 + $0x10] sm:$0xff]  ;;  %v463_v10 = vld [vmem:[#allocation2 + $0x28] sm:$0xff] }
  0x63   : > { %v590_v9 = vld [vmem:[#allocation2 + $0xb0] sm:$0xff]  ;;  %v593_v11 = vld [vmem:[#allocation2 + $0xc8] sm:$0xff]  ;;  %v462_v12 = vld [vmem:[#allocation2 + $0x20] sm:$0xff]  ;;  %s6447_s19 = scalar_lea.hbm %s8710_s11, %s6713_s15  ;;  %s7800_s25 = smov [#allocation11]  }
  0x64   : > { %s6716_s13 = sshll.u32 %s453_s29, 3  ;;  %v592_v13 = vld [vmem:[#allocation2 + $0xc0] sm:$0xff]  ;;  %v465_v14 = vld [vmem:[#allocation2 + $0x38] sm:$0xff]  ;;  %v464_v16 = vld [vmem:[#allocation2 + $0x30] sm:$0xff]  ;;  %s7719_s14 = sshll.u32 %s7800_s25, 4  ;;  %s7720_s14 = int_to_ptr.vmem [resolvable:$false] %s7719_s14 }
  0x65   : > { %s7991_s30 = scalar_lea.vmem %s8699_s0, %s6716_s13  ;;  %v595_v15 = vld [vmem:[#allocation2 + $0xd8] sm:$0xff]  ;;  %v594_v17 = vld [vmem:[#allocation2 + $0xd0] sm:$0xff]  ;;  %v467_v18 = vld [vmem:[#allocation2 + $0x48] sm:$0xff]  ;;  %s450_s13 = sand.u32 1, %s7779_s18  }
  0x66   : > { %v7994_v0 = vld [vmem:[%s7991_s30] sm:$0x77]  ;;  %v597_v19 = vld [vmem:[#allocation2 + $0xe8] sm:$0xff]  ;;  %v469_v22 = vld [vmem:[#allocation2 + $0x58] sm:$0xff]  ;;  %s451_s12 = scalar_lea.vmem [#allocation11], %s450_s13  ;;  %s6437_s28 = scalar_lea.sflag [#allocation4], %s450_s13 }
  0x67   : > { %v7998_v2 = vcombine.high %v7994_v0, %v7994_v0  ;;  %v466_v20 = vld [vmem:[#allocation2 + $0x40] sm:$0xff]  ;;  %v599_v23 = vld [vmem:[#allocation2 + $0xf8] sm:$0xff]  ;;  %v468_v24 = vld [vmem:[#allocation2 + $0x50] sm:$0xff]  ;;  %s6449_s26 = sshll.u32 %s451_s12, 4  ;;  %s7721_s21 = scalar_lea.vmem %s7720_s14, 32  ;;  %s6450_s26 = int_to_ptr.vmem [resolvable:$true] %s6449_s26 }
  0x68   : > { %v596_v21 = vld [vmem:[#allocation2 + $0xe0] sm:$0xff]  ;;  %v598_v25 = vld [vmem:[#allocation2 + $0xf0] sm:$0xff]  ;;  %v471_v26 = vld [vmem:[#allocation2 + $0x68] sm:$0xff]  ;;  %s7715_s22 = scalar_lea.vmem %s6450_s26, 16  ;;  %p7722_p4 = scmp.lt.s32.totalorder %s6450_s26, %s7720_s14 }
  0x69   : > { %507 = vmatprep.subr.mxu0 %v7998_v2  ;;  %7481 = vmatprep.subr.mxu1 %v7998_v2  ;;  %v470_v27 = vld [vmem:[#allocation2 + $0x60] sm:$0xff]  ;;  %v473_v28 = vld [vmem:[#allocation2 + $0x78] sm:$0xff]  ;;  %v472_v29 = vld [vmem:[#allocation2 + $0x70] sm:$0xff]  ;;  %p7716_p2 = scmp.ne.s32.totalorder %s6450_s26, %s7715_s22  ;;  %p7723_p7 = scmp.lt.s32.totalorder %s7721_s21, %s7715_s22 }
  0x6a   : > { %508 = vmatpush1.xpose.msra.mxu0 %v7994_v0  ;;  %7482 = vmatpush1.xpose.msra.mxu1 %v7994_v0  ;;  %v585_v30 = vld [vmem:[#allocation2 + $0x88] sm:$0xff]  ;;  %v584_v31 = vld [vmem:[#allocation2 + $0x80] sm:$0xff]  ;;  %v587_v32 = vld [vmem:[#allocation2 + $0x98] sm:$0xff] }
  0x6b   : > { %630 = vmatprep.subr.mxu0 %v7998_v2  ;;  %v586_v33 = vld [vmem:[#allocation2 + $0x90] sm:$0xff]  ;;  %v582_v34 = vld [vmem:[%s8701_s2] sm:$0x7]  ;;  %v6570_v35 = vld [vmem:[%s8701_s2 + $0x4] sm:$0x7]  ;;  %p7717_p1 = pnand %p7716_p2, %p7899_p5  ;;  %p7724_p6 = por %p7723_p7, %p7722_p4 }
  0x6c   : > { %7027 = vmatprep.subr.msk.mxu1 %vm732_vm0, %v582_v34 }
  0x6d   : > { %542 = vmatmul.mubr.f32.vlgmr.msra.gmra.mxu0 %v458_v3  ;;  %675 = vmatmul.mubr.f32.vlgmr.msra.gmra.mxu1 %v588_v6  ;;  %v975_v6 = vld [vmem:[#allocation2 + $0x108] sm:$0xff]  ;;  %p7718_p3 = pneg %p7717_p1 }
  0x6e   : > { %546 = vmatprep.mubr.f32.mxu0 %v461_v4  ;;  %631 = vmatpush1.xpose.msra.mxu0 %v7994_v0 }
  0x6f   : > { %679 = vmatprep.mubr.f32.mxu1 %v591_v7  ;;  %7028 = vmatpush3.msk.msra.mxu1 %vm732_vm0, %v582_v34  ;;  %v974_v7 = vld [vmem:[#allocation2 + $0x100] sm:$0xff]  ;;  %p7725_p13 = pnand %p7724_p6, %p7718_p3 }
  0x70   : > { %7013 = vmatprep.subr.msk.mxu0 %vm732_vm0, %v6570_v35 }
  0x71   : > { %547 = vmatmul.mubr.f32.gmra.mxu0 %v460_v8  ;;  %680 = vmatmul.mubr.f32.gmra.mxu1 %v590_v9  ;;  %v977_v8 = vld [vmem:[#allocation2 + $0x118] sm:$0xff]  ;;  %v976_v9 = vld [vmem:[#allocation2 + $0x110] sm:$0xff] }
  0x72   : > { %551 = vmatprep.mubr.f32.mxu0 %v463_v10  ;;  %684 = vmatprep.mubr.f32.mxu1 %v593_v11  ;;  %v979_v10 = vld [vmem:[#allocation2 + $0x128] sm:$0xff]  ;;  %v978_v11 = vld [vmem:[#allocation2 + $0x120] sm:$0xff] }
  0x75   : > { %552 = vmatmul.mubr.f32.gmra.mxu0 %v462_v12  ;;  %685 = vmatmul.mubr.f32.gmra.mxu1 %v592_v13  ;;  %v981_v12 = vld [vmem:[#allocation2 + $0x138] sm:$0xff]  ;;  %v980_v13 = vld [vmem:[#allocation2 + $0x130] sm:$0xff] }
  0x76   : > { %556 = vmatprep.mubr.f32.mxu0 %v465_v14  ;;  %689 = vmatprep.mubr.f32.mxu1 %v595_v15  ;;  %v983_v14 = vld [vmem:[#allocation2 + $0x148] sm:$0xff]  ;;  %v982_v15 = vld [vmem:[#allocation2 + $0x140] sm:$0xff] }
  0x79   : > { %557 = vmatmul.mubr.f32.gmra.mxu0 %v464_v16  ;;  %690 = vmatmul.mubr.f32.gmra.mxu1 %v594_v17  ;;  %v985_v16 = vld [vmem:[#allocation2 + $0x158] sm:$0xff]  ;;  %v984_v17 = vld [vmem:[#allocation2 + $0x150] sm:$0xff] }
  0x7a   : > { %561 = vmatprep.mubr.f32.mxu0 %v467_v18  ;;  %694 = vmatprep.mubr.f32.mxu1 %v597_v19  ;;  %v987_v18 = vld [vmem:[#allocation2 + $0x168] sm:$0xff]  ;;  %v986_v19 = vld [vmem:[#allocation2 + $0x160] sm:$0xff] }
  0x7d   : > { %562 = vmatmul.mubr.f32.gmra.mxu0 %v466_v20  ;;  %695 = vmatmul.mubr.f32.gmra.mxu1 %v596_v21  ;;  %v989_v20 = vld [vmem:[#allocation2 + $0x178] sm:$0xff]  ;;  %v988_v21 = vld [vmem:[#allocation2 + $0x170] sm:$0xff] }
  0x7e   : > { %566 = vmatprep.mubr.f32.mxu0 %v469_v22  ;;  %699 = vmatprep.mubr.f32.mxu1 %v599_v23  ;;  %v6589_v22 = vld [vmem:[%s8701_s2 + $0x8] sm:$0x7] }
  0x7f   : > { %7041 = vmatprep.subr.msk.mxu1 %vm732_vm0, %v6589_v22 }
  0x81   : > { %567 = vmatmul.mubr.f32.gmra.mxu0 %v468_v24  ;;  %700 = vmatmul.mubr.f32.gmra.mxu1 %v598_v25 }
  0x82   : > { %571 = vmatprep.mubr.f32.mxu0 %v471_v26 }
  0x85   : > { %572 = vmatmul.mubr.f32.gmra.mxu0 %v470_v27 }
  0x86   : > { %576 = vmatprep.mubr.f32.mxu0 %v473_v28 }
  0x89   : > { %577 = vmatmul.mubr.f32.gmra.mxu0 %v472_v29 }
  0x8a   : > { %664 = vmatprep.mubr.f32.mxu0 %v585_v30 }
  0x8d   : > { %665 = vmatmul.mubr.f32.vlgmr.msra.gmra.mxu0 %v584_v31 }
  0x8e   : > { %669 = vmatprep.mubr.f32.mxu0 %v587_v32  ;;  %7014 = vmatpush3.msk.msra.mxu0 %vm732_vm0, %v6570_v35 }
  0x8f   : > { %1020 = vmatprep.subr.mxu0 %v7998_v2 }
  0x91   : > { %670 = vmatmul.mubr.f32.gmra.mxu0 %v586_v33 }
 0x12d   : > { %v543_v36 = vpop.f32.mrf.mxu0  ;;  %v676_v37 = vpop.f32.mrf.mxu1 }
 0x12e   : > { %7029 = vmatprep.mubr.msk.f32.mxu1 %vm707_vm1, %v543_v36 }
 0x12f   : > { %v545_v38 = vpop.f32.mrf.mxu0  ;;  %v678_v39 = vpop.f32.mrf.mxu1 }
 0x131   : > { %v548_v40 = vpop.f32.mrf.mxu0  ;;  %v681_v41 = vpop.f32.mrf.mxu1 }
 0x132   : > { %7030 = vmatmul.mubr.msk.f32.vlgmr.msra.gmra.mxu1 %vm707_vm1, %v548_v40 }
 0x133   : > { %v550_v42 = vpop.f32.mrf.mxu0  ;;  %v683_v43 = vpop.f32.mrf.mxu1  ;;  %7042 = vmatpush3.msk.msra.mxu1 %vm732_vm0, %v6589_v22 }
 0x134   : > { %1284 = vmatprep.subr.mxu1 %v7998_v2 }
 0x135   : > { %v553_v44 = vpop.f32.mrf.mxu0  ;;  %v686_v45 = vpop.f32.mrf.mxu1 }
 0x136   : > { %7032 = vmatprep.mubr.msk.f32.mxu1 %vm707_vm1, %v553_v44 }
 0x137   : > { %v555_v46 = vpop.f32.mrf.mxu0  ;;  %v688_v47 = vpop.f32.mrf.mxu1 }
 0x139   : > { %v558_v48 = vpop.f32.mrf.mxu0  ;;  %v691_v49 = vpop.f32.mrf.mxu1 }
 0x13a   : > { %7033 = vmatmul.mubr.msk.f32.gmra.mxu1 %vm707_vm1, %v558_v48 }
 0x13b   : > { %v560_v50 = vpop.f32.mrf.mxu0  ;;  %v693_v51 = vpop.f32.mrf.mxu1 }
 0x13d   : > { %v563_v52 = vpop.f32.mrf.mxu0  ;;  %v696_v53 = vpop.f32.mrf.mxu1 }
 0x13e   : > { %7035 = vmatprep.mubr.msk.f32.mxu1 %vm707_vm1, %v563_v52 }
 0x13f   : > { %v565_v54 = vpop.f32.mrf.mxu0  ;;  %v698_v55 = vpop.f32.mrf.mxu1 }
 0x141   : > { %v568_v56 = vpop.f32.mrf.mxu0  ;;  %v701_v57 = vpop.f32.mrf.mxu1 }
 0x142   : > { %7036 = vmatmul.mubr.msk.f32.gmra.mxu1 %vm707_vm1, %v568_v56  ;;  %v1239_v56 = vld [vmem:[#allocation2 + $0x188] sm:$0xff] }
 0x143   : > { %v570_v58 = vpop.f32.mrf.mxu0  ;;  %v703_v59 = vpop.f32.mrf.mxu1 }
 0x144   : > { %v1238_v59 = vld [vmem:[#allocation2 + $0x180] sm:$0xff] }
 0x145   : > { %v573_v60 = vpop.f32.mrf.mxu0 }
 0x146   : > { %7038 = vmatprep.mubr.msk.f32.mxu1 %vm707_vm1, %v573_v60  ;;  %v1241_v60 = vld [vmem:[#allocation2 + $0x198] sm:$0xff] }
 0x147   : > { %v575_v61 = vpop.f32.mrf.mxu0 }
 0x148   : > { %v1240_v61 = vld [vmem:[#allocation2 + $0x190] sm:$0xff] }
 0x149   : > { %v578_v62 = vpop.f32.mrf.mxu0 }
 0x14a   : > { %7039 = vmatmul.mubr.msk.f32.gmra.mxu1 %vm707_vm1, %v578_v62  ;;  %v1243_v62 = vld [vmem:[#allocation2 + $0x1a8] sm:$0xff] }
 0x14b   : > { %v580_v63 = vpop.f32.mrf.mxu0 }
 0x14c   : > { %v1242_v63 = vld [vmem:[#allocation2 + $0x1a0] sm:$0xff] }
 0x14d   : > { %v666_v1 = vpop.f32.mrf.mxu0 }
 0x14e   : > { %7015 = vmatprep.mubr.msk.f32.mxu0 %vm707_vm1, %v666_v1  ;;  %v1245_v1 = vld [vmem:[#allocation2 + $0x1b8] sm:$0xff] }
 0x14f   : > { %v668_v3 = vpop.f32.mrf.mxu0 }
 0x150   : > { %v1244_v3 = vld [vmem:[#allocation2 + $0x1b0] sm:$0xff] }
 0x151   : > { %v671_v4 = vpop.f32.mrf.mxu0 }
 0x152   : > { %7016 = vmatmul.mubr.msk.f32.vlgmr.msra.gmra.mxu0 %vm707_vm1, %v671_v4  ;;  %v1247_v4 = vld [vmem:[#allocation2 + $0x1c8] sm:$0xff] }
 0x153   : > { %v673_v5 = vpop.f32.mrf.mxu0  ;;  %7018 = vmatprep.mubr.msk.f32.mxu0 %vm707_vm1, %v676_v37  ;;  %1021 = vmatpush1.xpose.msra.mxu0 %v7994_v0 }
 0x154   : > { %v1246_v5 = vld [vmem:[#allocation2 + $0x1c0] sm:$0xff] }
 0x156   : > { %7019 = vmatmul.mubr.msk.f32.gmra.mxu0 %vm707_vm1, %v681_v41 }
 0x157   : > { %7021 = vmatprep.mubr.msk.f32.mxu0 %vm707_vm1, %v686_v45 }
 0x15a   : > { %7022 = vmatmul.mubr.msk.f32.gmra.mxu0 %vm707_vm1, %v691_v49 }
 0x15b   : > { %7024 = vmatprep.mubr.msk.f32.mxu0 %vm707_vm1, %v696_v53 }
 0x15e   : > { %7025 = vmatmul.mubr.msk.f32.gmra.mxu0 %vm707_vm1, %v701_v57 }
 0x15f   : > { %1054 = vmatprep.mubr.f32.mxu0 %v975_v6  ;;  %v1249_v6 = vld [vmem:[#allocation2 + $0x1d8] sm:$0xff] }
 0x162   : > { %1055 = vmatmul.mubr.f32.vlgmr.msra.gmra.mxu0 %v974_v7  ;;  %v1248_v7 = vld [vmem:[#allocation2 + $0x1d0] sm:$0xff] }
 0x163   : > { %1059 = vmatprep.mubr.f32.mxu0 %v977_v8  ;;  %v1251_v8 = vld [vmem:[#allocation2 + $0x1e8] sm:$0xff] }
 0x166   : > { %1060 = vmatmul.mubr.f32.gmra.mxu0 %v976_v9  ;;  %v1250_v9 = vld [vmem:[#allocation2 + $0x1e0] sm:$0xff] }
 0x167   : > { %1064 = vmatprep.mubr.f32.mxu0 %v979_v10  ;;  %v1253_v10 = vld [vmem:[#allocation2 + $0x1f8] sm:$0xff] }
 0x16a   : > { %1065 = vmatmul.mubr.f32.gmra.mxu0 %v978_v11  ;;  %v1252_v11 = vld [vmem:[#allocation2 + $0x1f0] sm:$0xff] }
 0x16b   : > { %1069 = vmatprep.mubr.f32.mxu0 %v981_v12  ;;  %v6599_v12 = vld [vmem:[%s8701_s2 + $0xc] sm:$0x7] }
 0x16c   : > { %7055 = vmatprep.subr.msk.mxu0 %vm732_vm0, %v6599_v12 }
 0x16d   : > { %7056 = vmatpush3.msk.msra.mxu0 %vm732_vm0, %v6599_v12 }
 0x16e   : > { %1070 = vmatmul.mubr.f32.gmra.mxu0 %v980_v13  ;;  %1548 = vmatprep.subr.mxu0 %v7998_v2 }
 0x16f   : > { %1074 = vmatprep.mubr.f32.mxu0 %v983_v14 }
 0x172   : > { %1075 = vmatmul.mubr.f32.gmra.mxu0 %v982_v15 }
 0x173   : > { %1079 = vmatprep.mubr.f32.mxu0 %v985_v16 }
 0x176   : > { %1080 = vmatmul.mubr.f32.gmra.mxu0 %v984_v17 }
 0x177   : > { %1084 = vmatprep.mubr.f32.mxu0 %v987_v18 }
 0x17a   : > { %1085 = vmatmul.mubr.f32.gmra.mxu0 %v986_v19 }
 0x17b   : > { %1089 = vmatprep.mubr.f32.mxu0 %v989_v20 }
 0x17e   : > { %1090 = vmatmul.mubr.f32.gmra.mxu0 %v988_v21 }
 0x1f2   : > { %v7031_v23 = vpop.f32.mrf.mxu1 }
 0x1f4   : > { %v8040_v24 = vpop.f32.mrf.mxu1 }
 0x1fa   : > { %v7034_v25 = vpop.f32.mrf.mxu1 }
 0x1fc   : > { %v8046_v29 = vpop.f32.mrf.mxu1 }
 0x202   : > { %v7037_v32 = vpop.f32.mrf.mxu1 }
 0x204   : > { %v8054_v36 = vpop.f32.mrf.mxu1 }
 0x20a   : > { %v7040_v38 = vpop.f32.mrf.mxu1 }
 0x20c   : > { %v8077_v13 = vpop.f32.mrf.mxu1 }
 0x212   : > { %v7017_v26 = vpop.f32.mrf.mxu0 }
 0x213   : > { %v8042_v27 = vadd.f32 %v7031_v23, %v7017_v26 }
 0x214   : > { %v8044_v28 = vpop.f32.mrf.mxu0 }
 0x216   : > { %v7020_v30 = vpop.f32.mrf.mxu0 }
 0x217   : > { %v8048_v31 = vadd.f32 %v7034_v25, %v7020_v30 }
 0x218   : > { %v8050_v33 = vpop.f32.mrf.mxu0 }
 0x21a   : > { %v7023_v34 = vpop.f32.mrf.mxu0 }
 0x21b   : > { %v8052_v35 = vadd.f32 %v7037_v32, %v7023_v34 }
 0x21c   : > { %v8056_v37 = vpop.f32.mrf.mxu0 }
 0x21e   : > { %v7026_v39 = vpop.f32.mrf.mxu0 }
 0x21f   : > { %v8058_v40 = vadd.f32 %v7040_v38, %v7026_v39 }
 0x220   : > { %v8060_v41 = vpop.f32.mrf.mxu0 }
 0x222   : > { %v1056_v42 = vpop.f32.mrf.mxu0 }
 0x223   : > { %7043 = vmatprep.mubr.msk.f32.mxu1 %vm707_vm1, %v1056_v42 }
 0x224   : > { %v1058_v43 = vpop.f32.mrf.mxu0 }
 0x226   : > { %v1061_v44 = vpop.f32.mrf.mxu0 }
 0x227   : > { %7044 = vmatmul.mubr.msk.f32.vlgmr.msra.gmra.mxu1 %vm707_vm1, %v1061_v44 }
 0x228   : > { %v1063_v45 = vpop.f32.mrf.mxu0  ;;  %1285 = vmatpush1.xpose.msra.mxu1 %v7994_v0 }
 0x22a   : > { %v1066_v46 = vpop.f32.mrf.mxu0 }
 0x22b   : > { %7046 = vmatprep.mubr.msk.f32.mxu1 %vm707_vm1, %v1066_v46 }
 0x22c   : > { %v1068_v47 = vpop.f32.mrf.mxu0 }
 0x22d   : > { %v1503_v47 = vld [vmem:[#allocation2 + $0x208] sm:$0xff] }
 0x22e   : > { %v1071_v48 = vpop.f32.mrf.mxu0 }
 0x22f   : > { %7047 = vmatmul.mubr.msk.f32.gmra.mxu1 %vm707_vm1, %v1071_v48 }
 0x230   : > { %v1073_v49 = vpop.f32.mrf.mxu0 }
 0x232   : > { %v1076_v50 = vpop.f32.mrf.mxu0 }
 0x233   : > { %7049 = vmatprep.mubr.msk.f32.mxu1 %vm707_vm1, %v1076_v50  ;;  %v1502_v50 = vld [vmem:[#allocation2 + $0x200] sm:$0xff] }
 0x234   : > { %v1078_v51 = vpop.f32.mrf.mxu0 }
 0x235   : > { %v1505_v51 = vld [vmem:[#allocation2 + $0x218] sm:$0xff] }
 0x236   : > { %v1081_v52 = vpop.f32.mrf.mxu0 }
 0x237   : > { %7050 = vmatmul.mubr.msk.f32.gmra.mxu1 %vm707_vm1, %v1081_v52  ;;  %v1504_v52 = vld [vmem:[#allocation2 + $0x210] sm:$0xff] }
 0x238   : > { %v1083_v53 = vpop.f32.mrf.mxu0 }
 0x239   : > { %v1507_v53 = vld [vmem:[#allocation2 + $0x228] sm:$0xff] }
 0x23a   : > { %v1086_v54 = vpop.f32.mrf.mxu0 }
 0x23b   : > { %7052 = vmatprep.mubr.msk.f32.mxu1 %vm707_vm1, %v1086_v54  ;;  %v1506_v54 = vld [vmem:[#allocation2 + $0x220] sm:$0xff] }
 0x23c   : > { %v1088_v55 = vpop.f32.mrf.mxu0 }
 0x23d   : > { %v1509_v55 = vld [vmem:[#allocation2 + $0x238] sm:$0xff] }
 0x23e   : > { %v1091_v57 = vpop.f32.mrf.mxu0 }
 0x23f   : > { %7053 = vmatmul.mubr.msk.f32.gmra.mxu1 %vm707_vm1, %v1091_v57  ;;  %v1511_v57 = vld [vmem:[#allocation2 + $0x248] sm:$0xff] }
 0x240   : > { %v1093_v58 = vpop.f32.mrf.mxu0  ;;  %1318 = vmatprep.mubr.f32.mxu1 %v1239_v56  ;;  %v1508_v56 = vld [vmem:[#allocation2 + $0x230] sm:$0xff] }
 0x241   : > { %v1510_v58 = vld [vmem:[#allocation2 + $0x240] sm:$0xff] }
 0x243   : > { %1319 = vmatmul.mubr.f32.vlgmr.msra.gmra.mxu1 %v1238_v59  ;;  %v1513_v59 = vld [vmem:[#allocation2 + $0x258] sm:$0xff] }
 0x244   : > { %1323 = vmatprep.mubr.f32.mxu1 %v1241_v60  ;;  %v1512_v60 = vld [vmem:[#allocation2 + $0x250] sm:$0xff] }
 0x247   : > { %1324 = vmatmul.mubr.f32.gmra.mxu1 %v1240_v61  ;;  %v1515_v61 = vld [vmem:[#allocation2 + $0x268] sm:$0xff] }
 0x248   : > { %1328 = vmatprep.mubr.f32.mxu1 %v1243_v62  ;;  %v1514_v62 = vld [vmem:[#allocation2 + $0x260] sm:$0xff] }
 0x24b   : > { %1329 = vmatmul.mubr.f32.gmra.mxu1 %v1242_v63  ;;  %v1517_v63 = vld [vmem:[#allocation2 + $0x278] sm:$0xff] }
 0x24c   : > { %1333 = vmatprep.mubr.f32.mxu1 %v1245_v1  ;;  %v1516_v1 = vld [vmem:[#allocation2 + $0x270] sm:$0xff] }
 0x24f   : > { %1334 = vmatmul.mubr.f32.gmra.mxu1 %v1244_v3  ;;  %v6609_v3 = vld [vmem:[%s8701_s2 + $0x10] sm:$0x7] }
 0x250   : > { %1338 = vmatprep.mubr.f32.mxu1 %v1247_v4  ;;  %7069 = vmatprep.subr.msk.mxu1 %vm732_vm0, %v6609_v3 }
 0x251   : > { %7070 = vmatpush3.msk.msra.mxu1 %vm732_vm0, %v6609_v3 }
 0x252   : > { %1812 = vmatprep.subr.mxu1 %v7998_v2 }
 0x253   : > { %1339 = vmatmul.mubr.f32.gmra.mxu1 %v1246_v5 }
 0x254   : > { %1343 = vmatprep.mubr.f32.mxu1 %v1249_v6 }
 0x257   : > { %1344 = vmatmul.mubr.f32.gmra.mxu1 %v1248_v7 }
 0x258   : > { %1348 = vmatprep.mubr.f32.mxu1 %v1251_v8 }
 0x25b   : > { %1349 = vmatmul.mubr.f32.gmra.mxu1 %v1250_v9 }
 0x25c   : > { %1353 = vmatprep.mubr.f32.mxu1 %v1253_v10  ;;  %v955_v10 = vadd.f32 %v8054_v36, %v8056_v37 }
 0x25f   : > { %1354 = vmatmul.mubr.f32.gmra.mxu1 %v1252_v11 }
 0x2e7   : > { %v7045_v14 = vpop.f32.mrf.mxu1 }
 0x2e8   : > { %v8080_v15 = vadd.f32 %v7045_v14, %v8042_v27 }
 0x2e9   : > { %v8082_v16 = vpop.f32.mrf.mxu1 }
 0x2ef   : > { %v7048_v17 = vpop.f32.mrf.mxu1 }
 0x2f0   : > { %v8085_v18 = vadd.f32 %v7048_v17, %v8048_v31 }
 0x2f1   : > { %v8087_v19 = vpop.f32.mrf.mxu1 }
 0x2f7   : > { %v7051_v20 = vpop.f32.mrf.mxu1 }
 0x2f8   : > { %v8090_v21 = vadd.f32 %v7051_v20, %v8052_v35  ;;  %v965_v20 = vadd.f32 %v8077_v13, %v8060_v41 }
 0x2f9   : > { %v8092_v22 = vpop.f32.mrf.mxu1 }
 0x2fa   : > { %v1233_v12 = vadd.f32 %v8092_v22, %v955_v10  ;;  %v945_v10 = vadd.f32 %v8046_v29, %v8050_v33 }
 0x2ff   : > { %v7054_v23 = vpop.f32.mrf.mxu1 }
 0x300   : > { %v8095_v25 = vadd.f32 %v7054_v23, %v8058_v40 }
 0x301   : > { %v8097_v26 = vpop.f32.mrf.mxu1 }
 0x303   : > { %v1320_v27 = vpop.f32.mrf.mxu1 }
 0x304   : > { %7057 = vmatprep.mubr.msk.f32.mxu0 %vm707_vm1, %v1320_v27 }
 0x305   : > { %v1322_v30 = vpop.f32.mrf.mxu1 }
 0x307   : > { %v1325_v31 = vpop.f32.mrf.mxu1 }
 0x308   : > { %7058 = vmatmul.mubr.msk.f32.vlgmr.msra.gmra.mxu0 %vm707_vm1, %v1325_v31 }
 0x309   : > { %v1327_v32 = vpop.f32.mrf.mxu1  ;;  %1549 = vmatpush1.xpose.msra.mxu0 %v7994_v0 }
 0x30b   : > { %v1330_v34 = vpop.f32.mrf.mxu1 }
 0x30c   : > { %7060 = vmatprep.mubr.msk.f32.mxu0 %vm707_vm1, %v1330_v34 }
 0x30d   : > { %v1332_v35 = vpop.f32.mrf.mxu1 }
 0x30f   : > { %v1335_v38 = vpop.f32.mrf.mxu1 }
 0x310   : > { %7061 = vmatmul.mubr.msk.f32.gmra.mxu0 %vm707_vm1, %v1335_v38 }
 0x311   : > { %v1337_v39 = vpop.f32.mrf.mxu1 }
 0x313   : > { %v1340_v40 = vpop.f32.mrf.mxu1 }
 0x314   : > { %7063 = vmatprep.mubr.msk.f32.mxu0 %vm707_vm1, %v1340_v40 }
 0x315   : > { %v1342_v42 = vpop.f32.mrf.mxu1 }
 0x316   : > { %v1767_v42 = vld [vmem:[#allocation2 + $0x288] sm:$0xff] }
 0x317   : > { %v1345_v43 = vpop.f32.mrf.mxu1 }
 0x318   : > { %7064 = vmatmul.mubr.msk.f32.gmra.mxu0 %vm707_vm1, %v1345_v43 }
 0x319   : > { %v1347_v44 = vpop.f32.mrf.mxu1 }
 0x31b   : > { %v1350_v45 = vpop.f32.mrf.mxu1 }
 0x31c   : > { %7066 = vmatprep.mubr.msk.f32.mxu0 %vm707_vm1, %v1350_v45  ;;  %v1766_v45 = vld [vmem:[#allocation2 + $0x280] sm:$0xff] }
 0x31d   : > { %v1352_v46 = vpop.f32.mrf.mxu1 }
 0x31e   : > { %v1769_v46 = vld [vmem:[#allocation2 + $0x298] sm:$0xff] }
 0x31f   : > { %v1355_v48 = vpop.f32.mrf.mxu1 }
 0x320   : > { %7067 = vmatmul.mubr.msk.f32.gmra.mxu0 %vm707_vm1, %v1355_v48  ;;  %v1771_v48 = vld [vmem:[#allocation2 + $0x2a8] sm:$0xff] }
 0x321   : > { %v1357_v49 = vpop.f32.mrf.mxu1  ;;  %1582 = vmatprep.mubr.f32.mxu0 %v1503_v47  ;;  %v1768_v47 = vld [vmem:[#allocation2 + $0x290] sm:$0xff] }
 0x322   : > { %v1770_v49 = vld [vmem:[#allocation2 + $0x2a0] sm:$0xff] }
 0x324   : > { %1583 = vmatmul.mubr.f32.vlgmr.msra.gmra.mxu0 %v1502_v50  ;;  %v1773_v50 = vld [vmem:[#allocation2 + $0x2b8] sm:$0xff] }
 0x325   : > { %1587 = vmatprep.mubr.f32.mxu0 %v1505_v51  ;;  %v1772_v51 = vld [vmem:[#allocation2 + $0x2b0] sm:$0xff] }
 0x328   : > { %1588 = vmatmul.mubr.f32.gmra.mxu0 %v1504_v52  ;;  %v1775_v52 = vld [vmem:[#allocation2 + $0x2c8] sm:$0xff] }
 0x329   : > { %1592 = vmatprep.mubr.f32.mxu0 %v1507_v53  ;;  %v1774_v53 = vld [vmem:[#allocation2 + $0x2c0] sm:$0xff] }
 0x32c   : > { %1593 = vmatmul.mubr.f32.gmra.mxu0 %v1506_v54  ;;  %v1777_v54 = vld [vmem:[#allocation2 + $0x2d8] sm:$0xff] }
 0x32d   : > { %1597 = vmatprep.mubr.f32.mxu0 %v1509_v55  ;;  %v1776_v55 = vld [vmem:[#allocation2 + $0x2d0] sm:$0xff] }
 0x330   : > { %1598 = vmatmul.mubr.f32.gmra.mxu0 %v1508_v56  ;;  %v1779_v56 = vld [vmem:[#allocation2 + $0x2e8] sm:$0xff] }
 0x331   : > { %1602 = vmatprep.mubr.f32.mxu0 %v1511_v57  ;;  %v1778_v57 = vld [vmem:[#allocation2 + $0x2e0] sm:$0xff] }
 0x334   : > { %1603 = vmatmul.mubr.f32.gmra.mxu0 %v1510_v58  ;;  %v1781_v58 = vld [vmem:[#allocation2 + $0x2f8] sm:$0xff] }
 0x335   : > { %1607 = vmatprep.mubr.f32.mxu0 %v1513_v59  ;;  %v1780_v59 = vld [vmem:[#allocation2 + $0x2f0] sm:$0xff] }
 0x338   : > { %1608 = vmatmul.mubr.f32.gmra.mxu0 %v1512_v60  ;;  %v6619_v60 = vld [vmem:[%s8701_s2 + $0x14] sm:$0x7] }
 0x339   : > { %1612 = vmatprep.mubr.f32.mxu0 %v1515_v61  ;;  %7083 = vmatprep.subr.msk.mxu0 %vm732_vm0, %v6619_v60  ;;  %v935_v61 = vadd.f32 %v8040_v24, %v8044_v28 }
 0x33a   : > { %7084 = vmatpush3.msk.msra.mxu0 %vm732_vm0, %v6619_v60 }
 0x33b   : > { %2076 = vmatprep.subr.mxu0 %v7998_v2 }
 0x33c   : > { %1613 = vmatmul.mubr.f32.gmra.mxu0 %v1514_v62  ;;  %v1229_v62 = vadd.f32 %v8082_v16, %v935_v61 }
 0x33d   : > { %1617 = vmatprep.mubr.f32.mxu0 %v1517_v63 }
 0x340   : > { %1618 = vmatmul.mubr.f32.gmra.mxu0 %v1516_v1 }
 0x3c8   : > { %v7059_v4 = vpop.f32.mrf.mxu0 }
 0x3c9   : > { %v8115_v5 = vadd.f32 %v7059_v4, %v8080_v15 }
 0x3ca   : > { %v8117_v6 = vpop.f32.mrf.mxu0 }
 0x3cb   : > { %v1493_v1 = vadd.f32 %v8117_v6, %v1229_v62 }
 0x3d0   : > { %v7062_v7 = vpop.f32.mrf.mxu0 }
 0x3d1   : > { %v8120_v8 = vadd.f32 %v7062_v7, %v8085_v18  ;;  %v1235_v18 = vadd.f32 %v8097_v26, %v965_v20 }
 0x3d2   : > { %v8122_v9 = vpop.f32.mrf.mxu0 }
 0x3d8   : > { %v7065_v11 = vpop.f32.mrf.mxu0 }
 0x3d9   : > { %v8128_v14 = vadd.f32 %v7065_v11, %v8090_v21  ;;  %v1231_v11 = vadd.f32 %v8087_v19, %v945_v10 }
 0x3da   : > { %v1474_v17 = vpop.f32.mrf.mxu0 }
 0x3db   : > { %v8130_v15 = vadd.f32 %v1474_v17, %v1233_v12  ;;  %v1495_v17 = vadd.f32 %v8122_v9, %v1231_v11 }
 0x3e0   : > { %v7068_v23 = vpop.f32.mrf.mxu0 }
 0x3e1   : > { %v8136_v27 = vadd.f32 %v7068_v23, %v8095_v25 }
 0x3e2   : > { %v1484_v30 = vpop.f32.mrf.mxu0 }
 0x3e3   : > { %v8138_v36 = vadd.f32 %v1484_v30, %v1235_v18 }
 0x3e4   : > { %v1584_v37 = vpop.f32.mrf.mxu0 }
 0x3e5   : > { %7071 = vmatprep.mubr.msk.f32.mxu1 %vm707_vm1, %v1584_v37 }
 0x3e6   : > { %v1586_v21 = vpop.f32.mrf.mxu0 }
 0x3e8   : > { %v1589_v22 = vpop.f32.mrf.mxu0 }
 0x3e9   : > { %7072 = vmatmul.mubr.msk.f32.vlgmr.msra.gmra.mxu1 %vm707_vm1, %v1589_v22 }
 0x3ea   : > { %v1591_v31 = vpop.f32.mrf.mxu0  ;;  %1813 = vmatpush1.xpose.msra.mxu1 %v7994_v0 }
 0x3ec   : > { %v1594_v41 = vpop.f32.mrf.mxu0 }
 0x3ed   : > { %7074 = vmatprep.mubr.msk.f32.mxu1 %vm707_vm1, %v1594_v41 }
 0x3ee   : > { %v1596_v13 = vpop.f32.mrf.mxu0 }
 0x3f0   : > { %v1599_v26 = vpop.f32.mrf.mxu0 }
 0x3f1   : > { %7075 = vmatmul.mubr.msk.f32.gmra.mxu1 %vm707_vm1, %v1599_v26 }
 0x3f2   : > { %v1601_v25 = vpop.f32.mrf.mxu0 }
 0x3f3   : > { %v2031_v25 = vld [vmem:[#allocation2 + $0x308] sm:$0xff] }
 0x3f4   : > { %v1604_v32 = vpop.f32.mrf.mxu0 }
 0x3f5   : > { %7077 = vmatprep.mubr.msk.f32.mxu1 %vm707_vm1, %v1604_v32 }
 0x3f6   : > { %v1606_v34 = vpop.f32.mrf.mxu0 }
 0x3f8   : > { %v1609_v35 = vpop.f32.mrf.mxu0 }
 0x3f9   : > { %7078 = vmatmul.mubr.msk.f32.gmra.mxu1 %vm707_vm1, %v1609_v35  ;;  %v2030_v35 = vld [vmem:[#allocation2 + $0x300] sm:$0xff] }
 0x3fa   : > { %v1611_v38 = vpop.f32.mrf.mxu0 }
 0x3fb   : > { %v2033_v38 = vld [vmem:[#allocation2 + $0x318] sm:$0xff] }
 0x3fc   : > { %v1614_v39 = vpop.f32.mrf.mxu0 }
 0x3fd   : > { %7080 = vmatprep.mubr.msk.f32.mxu1 %vm707_vm1, %v1614_v39  ;;  %v2032_v39 = vld [vmem:[#allocation2 + $0x310] sm:$0xff] }
 0x3fe   : > { %v1616_v40 = vpop.f32.mrf.mxu0 }
 0x3ff   : > { %v2035_v40 = vld [vmem:[#allocation2 + $0x328] sm:$0xff] }
 0x400   : > { %v1619_v43 = vpop.f32.mrf.mxu0 }
 0x401   : > { %7081 = vmatmul.mubr.msk.f32.gmra.mxu1 %vm707_vm1, %v1619_v43  ;;  %v2037_v43 = vld [vmem:[#allocation2 + $0x338] sm:$0xff] }
 0x402   : > { %v1621_v44 = vpop.f32.mrf.mxu0  ;;  %1846 = vmatprep.mubr.f32.mxu1 %v1767_v42  ;;  %v2034_v42 = vld [vmem:[#allocation2 + $0x320] sm:$0xff] }
 0x403   : > { %v2036_v44 = vld [vmem:[#allocation2 + $0x330] sm:$0xff] }
 0x405   : > { %1847 = vmatmul.mubr.f32.vlgmr.msra.gmra.mxu1 %v1766_v45  ;;  %v2039_v45 = vld [vmem:[#allocation2 + $0x348] sm:$0xff] }
 0x406   : > { %1851 = vmatprep.mubr.f32.mxu1 %v1769_v46  ;;  %v2038_v46 = vld [vmem:[#allocation2 + $0x340] sm:$0xff] }
 0x409   : > { %1852 = vmatmul.mubr.f32.gmra.mxu1 %v1768_v47  ;;  %v2041_v47 = vld [vmem:[#allocation2 + $0x358] sm:$0xff] }
 0x40a   : > { %1856 = vmatprep.mubr.f32.mxu1 %v1771_v48  ;;  %v2040_v48 = vld [vmem:[#allocation2 + $0x350] sm:$0xff] }
 0x40d   : > { %1857 = vmatmul.mubr.f32.gmra.mxu1 %v1770_v49  ;;  %v2043_v49 = vld [vmem:[#allocation2 + $0x368] sm:$0xff] }
 0x40e   : > { %1861 = vmatprep.mubr.f32.mxu1 %v1773_v50  ;;  %v2042_v50 = vld [vmem:[#allocation2 + $0x360] sm:$0xff] }
 0x411   : > { %1862 = vmatmul.mubr.f32.gmra.mxu1 %v1772_v51  ;;  %v2045_v51 = vld [vmem:[#allocation2 + $0x378] sm:$0xff] }
 0x412   : > { %1866 = vmatprep.mubr.f32.mxu1 %v1775_v52  ;;  %v2044_v52 = vld [vmem:[#allocation2 + $0x370] sm:$0xff] }
 0x415   : > { %1867 = vmatmul.mubr.f32.gmra.mxu1 %v1774_v53  ;;  %v6629_v53 = vld [vmem:[%s8701_s2 + $0x18] sm:$0x7] }
 0x416   : > { %1871 = vmatprep.mubr.f32.mxu1 %v1777_v54  ;;  %7097 = vmatprep.subr.msk.mxu1 %vm732_vm0, %v6629_v53 }
 0x417   : > { %7098 = vmatpush3.msk.msra.mxu1 %vm732_vm0, %v6629_v53 }
 0x418   : > { %2340 = vmatprep.subr.mxu1 %v7998_v2 }
 0x419   : > { %1872 = vmatmul.mubr.f32.gmra.mxu1 %v1776_v55 }
 0x41a   : > { %1876 = vmatprep.mubr.f32.mxu1 %v1779_v56 }
 0x41d   : > { %1877 = vmatmul.mubr.f32.gmra.mxu1 %v1778_v57 }
 0x41e   : > { %1881 = vmatprep.mubr.f32.mxu1 %v1781_v58 }
 0x421   : > { %1882 = vmatmul.mubr.f32.gmra.mxu1 %v1780_v59 }
 0x4a9   : > { %v7073_v63 = vpop.f32.mrf.mxu1 }
 0x4aa   : > { %v8160_v3 = vadd.f32 %v7073_v63, %v8115_v5 }
 0x4ab   : > { %v1718_v4 = vpop.f32.mrf.mxu1 }
 0x4ac   : > { %v8162_v7 = vadd.f32 %v1718_v4, %v1493_v1 }
 0x4b1   : > { %v7076_v12 = vpop.f32.mrf.mxu1 }
 0x4b2   : > { %v8169_v24 = vadd.f32 %v7076_v12, %v8120_v8 }
 0x4b3   : > { %v1728_v28 = vpop.f32.mrf.mxu1 }
 0x4b4   : > { %v8171_v16 = vadd.f32 %v1728_v28, %v1495_v17 }
 0x4b9   : > { %v7079_v6 = vpop.f32.mrf.mxu1 }
 0x4ba   : > { %v8174_v5 = vadd.f32 %v7079_v6, %v8128_v14 }
 0x4bb   : > { %v1738_v20 = vpop.f32.mrf.mxu1 }
 0x4bc   : > { %v8177_v23 = vadd.f32 %v1738_v20, %v8130_v15 }
 0x4c1   : > { %v7082_v29 = vpop.f32.mrf.mxu1 }
 0x4c2   : > { %v8180_v33 = vadd.f32 %v7082_v29, %v8136_v27 }
 0x4c3   : > { %v1748_v19 = vpop.f32.mrf.mxu1 }
 0x4c4   : > { %v8183_v9 = vadd.f32 %v1748_v19, %v8138_v36 }
 0x4c5   : > { %v1848_v8 = vpop.f32.mrf.mxu1 }
 0x4c6   : > { %7085 = vmatprep.mubr.msk.f32.mxu0 %vm707_vm1, %v1848_v8  ;;  %v2295_v8 = vld [vmem:[#allocation2 + $0x388] sm:$0xff] }
 0x4c7   : > { %v1850_v18 = vpop.f32.mrf.mxu1 }
 0x4c9   : > { %v1853_v30 = vpop.f32.mrf.mxu1 }
 0x4ca   : > { %7086 = vmatmul.mubr.msk.f32.vlgmr.msra.gmra.mxu0 %vm707_vm1, %v1853_v30 }
 0x4cb   : > { %v1855_v14 = vpop.f32.mrf.mxu1  ;;  %2077 = vmatpush1.xpose.msra.mxu0 %v7994_v0 }
 0x4cc   : > { %v2294_v14 = vld [vmem:[#allocation2 + $0x380] sm:$0xff] }
 0x4cd   : > { %v1858_v15 = vpop.f32.mrf.mxu1 }
 0x4ce   : > { %7088 = vmatprep.mubr.msk.f32.mxu0 %vm707_vm1, %v1858_v15  ;;  %v2297_v15 = vld [vmem:[#allocation2 + $0x398] sm:$0xff] }
 0x4cf   : > { %v1860_v37 = vpop.f32.mrf.mxu1 }
 0x4d0   : > { %v2296_v37 = vld [vmem:[#allocation2 + $0x390] sm:$0xff] }
 0x4d1   : > { %v1863_v27 = vpop.f32.mrf.mxu1 }
 0x4d2   : > { %7089 = vmatmul.mubr.msk.f32.gmra.mxu0 %vm707_vm1, %v1863_v27  ;;  %v2299_v27 = vld [vmem:[#allocation2 + $0x3a8] sm:$0xff] }
 0x4d3   : > { %v1865_v21 = vpop.f32.mrf.mxu1 }
 0x4d4   : > { %v2298_v21 = vld [vmem:[#allocation2 + $0x3a0] sm:$0xff] }
 0x4d5   : > { %v1868_v36 = vpop.f32.mrf.mxu1 }
 0x4d6   : > { %7091 = vmatprep.mubr.msk.f32.mxu0 %vm707_vm1, %v1868_v36  ;;  %v2301_v36 = vld [vmem:[#allocation2 + $0x3b8] sm:$0xff] }
 0x4d7   : > { %v1870_v22 = vpop.f32.mrf.mxu1 }
 0x4d8   : > { %v2300_v22 = vld [vmem:[#allocation2 + $0x3b0] sm:$0xff] }
 0x4d9   : > { %v1873_v31 = vpop.f32.mrf.mxu1 }
 0x4da   : > { %7092 = vmatmul.mubr.msk.f32.gmra.mxu0 %vm707_vm1, %v1873_v31  ;;  %v2303_v31 = vld [vmem:[#allocation2 + $0x3c8] sm:$0xff] }
 0x4db   : > { %v1875_v41 = vpop.f32.mrf.mxu1 }
 0x4dc   : > { %v2302_v41 = vld [vmem:[#allocation2 + $0x3c0] sm:$0xff] }
 0x4dd   : > { %v1878_v13 = vpop.f32.mrf.mxu1 }
 0x4de   : > { %7094 = vmatprep.mubr.msk.f32.mxu0 %vm707_vm1, %v1878_v13  ;;  %v2305_v13 = vld [vmem:[#allocation2 + $0x3d8] sm:$0xff] }
 0x4df   : > { %v1880_v26 = vpop.f32.mrf.mxu1 }
 0x4e0   : > { %v2304_v26 = vld [vmem:[#allocation2 + $0x3d0] sm:$0xff] }
 0x4e1   : > { %v1883_v32 = vpop.f32.mrf.mxu1 }
 0x4e2   : > { %7095 = vmatmul.mubr.msk.f32.gmra.mxu0 %vm707_vm1, %v1883_v32  ;;  %v2306_v32 = vld [vmem:[#allocation2 + $0x3e0] sm:$0xff] }
 0x4e3   : > { %v1885_v34 = vpop.f32.mrf.mxu1  ;;  %2110 = vmatprep.mubr.f32.mxu0 %v2031_v25  ;;  %v2307_v25 = vld [vmem:[#allocation2 + $0x3e8] sm:$0xff] }
 0x4e4   : > { %v2309_v34 = vld [vmem:[#allocation2 + $0x3f8] sm:$0xff] }
 0x4e6   : > { %2111 = vmatmul.mubr.f32.vlgmr.msra.gmra.mxu0 %v2030_v35  ;;  %v2308_v35 = vld [vmem:[#allocation2 + $0x3f0] sm:$0xff] }
 0x4e7   : > { %2115 = vmatprep.mubr.f32.mxu0 %v2033_v38  ;;  %v6639_v38 = vld [vmem:[%s8701_s2 + $0x1c] sm:$0x7] }
 0x4e8   : > { %7111 = vmatprep.subr.msk.mxu0 %vm732_vm0, %v6639_v38 }
 0x4e9   : > { %7112 = vmatpush3.msk.msra.mxu0 %vm732_vm0, %v6639_v38 }
 0x4ea   : > { %2116 = vmatmul.mubr.f32.gmra.mxu0 %v2032_v39  ;;  %2604 = vmatprep.subr.mxu0 %v7998_v2 }
 0x4eb   : > { %2120 = vmatprep.mubr.f32.mxu0 %v2035_v40 }
 0x4ee   : > { %2121 = vmatmul.mubr.f32.gmra.mxu0 %v2034_v42 }
 0x4ef   : > { %2125 = vmatprep.mubr.f32.mxu0 %v2037_v43 }
 0x4f2   : > { %2126 = vmatmul.mubr.f32.gmra.mxu0 %v2036_v44 }
 0x4f3   : > { %2130 = vmatprep.mubr.f32.mxu0 %v2039_v45 }
 0x4f6   : > { %2131 = vmatmul.mubr.f32.gmra.mxu0 %v2038_v46 }
 0x4f7   : > { %2135 = vmatprep.mubr.f32.mxu0 %v2041_v47 }
 0x4fa   : > { %2136 = vmatmul.mubr.f32.gmra.mxu0 %v2040_v48 }
 0x4fb   : > { %2140 = vmatprep.mubr.f32.mxu0 %v2043_v49 }
 0x4fe   : > { %2141 = vmatmul.mubr.f32.gmra.mxu0 %v2042_v50 }
 0x4ff   : > { %2145 = vmatprep.mubr.f32.mxu0 %v2045_v51 }
 0x502   : > { %2146 = vmatmul.mubr.f32.gmra.mxu0 %v2044_v52 }
 0x58a   : > { %v7087_v54 = vpop.f32.mrf.mxu0 }
 0x58b   : > { %v8201_v55 = vadd.f32 %v7087_v54, %v8160_v3 }
 0x58c   : > { %v1982_v56 = vpop.f32.mrf.mxu0 }
 0x58d   : > { %v8204_v57 = vadd.f32 %v1982_v56, %v8162_v7 }
 0x592   : > { %v7090_v58 = vpop.f32.mrf.mxu0 }
 0x593   : > { %v8207_v59 = vadd.f32 %v7090_v58, %v8169_v24 }
 0x594   : > { %v1992_v60 = vpop.f32.mrf.mxu0 }
 0x595   : > { %v8210_v61 = vadd.f32 %v1992_v60, %v8171_v16 }
 0x59a   : > { %v7093_v62 = vpop.f32.mrf.mxu0 }
 0x59b   : > { %v8213_v63 = vadd.f32 %v7093_v62, %v8174_v5 }
 0x59c   : > { %v2002_v1 = vpop.f32.mrf.mxu0 }
 0x59d   : > { %v8216_v3 = vadd.f32 %v2002_v1, %v8177_v23 }
 0x5a2   : > { %v7096_v4 = vpop.f32.mrf.mxu0 }
 0x5a3   : > { %v8219_v7 = vadd.f32 %v7096_v4, %v8180_v33 }
 0x5a4   : > { %v2012_v10 = vpop.f32.mrf.mxu0 }
 0x5a5   : > { %v8222_v11 = vadd.f32 %v2012_v10, %v8183_v9 }
 0x5a6   : > { %v2112_v12 = vpop.f32.mrf.mxu0 }
 0x5a7   : > { %7099 = vmatprep.mubr.msk.f32.mxu1 %vm707_vm1, %v2112_v12  ;;  %v2559_v12 = vld [vmem:[#allocation2 + $0x408] sm:$0xff] }
 0x5a8   : > { %v2114_v17 = vpop.f32.mrf.mxu0 }
 0x5aa   : > { %v2117_v24 = vpop.f32.mrf.mxu0 }
 0x5ab   : > { %7100 = vmatmul.mubr.msk.f32.vlgmr.msra.gmra.mxu1 %vm707_vm1, %v2117_v24 }
 0x5ac   : > { %v2119_v28 = vpop.f32.mrf.mxu0  ;;  %2341 = vmatpush1.xpose.msra.mxu1 %v7994_v0 }
 0x5ad   : > { %v2558_v28 = vld [vmem:[#allocation2 + $0x400] sm:$0xff] }
 0x5ae   : > { %v2122_v16 = vpop.f32.mrf.mxu0 }
 0x5af   : > { %7102 = vmatprep.mubr.msk.f32.mxu1 %vm707_vm1, %v2122_v16  ;;  %v2561_v16 = vld [vmem:[#allocation2 + $0x418] sm:$0xff] }
 0x5b0   : > { %v2124_v6 = vpop.f32.mrf.mxu0 }
 0x5b1   : > { %v2560_v6 = vld [vmem:[#allocation2 + $0x410] sm:$0xff] }
 0x5b2   : > { %v2127_v5 = vpop.f32.mrf.mxu0 }
 0x5b3   : > { %7103 = vmatmul.mubr.msk.f32.gmra.mxu1 %vm707_vm1, %v2127_v5  ;;  %v2563_v5 = vld [vmem:[#allocation2 + $0x428] sm:$0xff] }
 0x5b4   : > { %v2129_v20 = vpop.f32.mrf.mxu0 }
 0x5b5   : > { %v2562_v20 = vld [vmem:[#allocation2 + $0x420] sm:$0xff] }
 0x5b6   : > { %v2132_v23 = vpop.f32.mrf.mxu0 }
 0x5b7   : > { %7105 = vmatprep.mubr.msk.f32.mxu1 %vm707_vm1, %v2132_v23  ;;  %v2565_v23 = vld [vmem:[#allocation2 + $0x438] sm:$0xff] }
 0x5b8   : > { %v2134_v29 = vpop.f32.mrf.mxu0 }
 0x5b9   : > { %v2564_v29 = vld [vmem:[#allocation2 + $0x430] sm:$0xff] }
 0x5ba   : > { %v2137_v33 = vpop.f32.mrf.mxu0 }
 0x5bb   : > { %7106 = vmatmul.mubr.msk.f32.gmra.mxu1 %vm707_vm1, %v2137_v33  ;;  %v2567_v33 = vld [vmem:[#allocation2 + $0x448] sm:$0xff] }
 0x5bc   : > { %v2139_v19 = vpop.f32.mrf.mxu0 }
 0x5bd   : > { %v2566_v19 = vld [vmem:[#allocation2 + $0x440] sm:$0xff] }
 0x5be   : > { %v2142_v9 = vpop.f32.mrf.mxu0 }
 0x5bf   : > { %7108 = vmatprep.mubr.msk.f32.mxu1 %vm707_vm1, %v2142_v9  ;;  %v2569_v9 = vld [vmem:[#allocation2 + $0x458] sm:$0xff] }
 0x5c0   : > { %v2144_v0 = vpop.f32.mrf.mxu0 }
 0x5c1   : > { %v2568_v0 = vld [vmem:[#allocation2 + $0x450] sm:$0xff] }
 0x5c2   : > { %v2147_v18 = vpop.f32.mrf.mxu0 }
 0x5c3   : > { %7109 = vmatmul.mubr.msk.f32.gmra.mxu1 %vm707_vm1, %v2147_v18  ;;  %v2570_v18 = vld [vmem:[#allocation2 + $0x460] sm:$0xff] }
 0x5c4   : > { %v2149_v30 = vpop.f32.mrf.mxu0  ;;  %2374 = vmatprep.mubr.f32.mxu1 %v2295_v8  ;;  %v2571_v8 = vld [vmem:[#allocation2 + $0x468] sm:$0xff] }
 0x5c5   : > { %v2573_v30 = vld [vmem:[#allocation2 + $0x478] sm:$0xff] }
 0x5c7   : > { %2375 = vmatmul.mubr.f32.vlgmr.msra.gmra.mxu1 %v2294_v14  ;;  %v2572_v14 = vld [vmem:[#allocation2 + $0x470] sm:$0xff] }
 0x5c8   : > { %2379 = vmatprep.mubr.f32.mxu1 %v2297_v15  ;;  %v6649_v15 = vld [vmem:[%s8701_s2 + $0x20] sm:$0x7] }
 0x5c9   : > { %7125 = vmatprep.subr.msk.mxu1 %vm732_vm0, %v6649_v15 }
 0x5ca   : > { %7126 = vmatpush3.msk.msra.mxu1 %vm732_vm0, %v6649_v15 }
 0x5cb   : > { %2380 = vmatmul.mubr.f32.gmra.mxu1 %v2296_v37 }
 0x5cc   : > { %2384 = vmatprep.mubr.f32.mxu1 %v2299_v27 }
 0x5cf   : > { %2385 = vmatmul.mubr.f32.gmra.mxu1 %v2298_v21 }
 0x5d0   : > { %2389 = vmatprep.mubr.f32.mxu1 %v2301_v36 }
 0x5d3   : > { %2390 = vmatmul.mubr.f32.gmra.mxu1 %v2300_v22 }
 0x5d4   : > { %2394 = vmatprep.mubr.f32.mxu1 %v2303_v31 }
 0x5d7   : > { %2395 = vmatmul.mubr.f32.gmra.mxu1 %v2302_v41 }
 0x5d8   : > { %2399 = vmatprep.mubr.f32.mxu1 %v2305_v13 }
 0x5db   : > { %2400 = vmatmul.mubr.f32.gmra.mxu1 %v2304_v26 }
 0x5dc   : > { %2404 = vmatprep.mubr.f32.mxu1 %v2307_v25 }
 0x5df   : > { %2405 = vmatmul.mubr.f32.gmra.mxu1 %v2306_v32 }
 0x5e0   : > { %2409 = vmatprep.mubr.f32.mxu1 %v2309_v34 }
 0x5e3   : > { %2410 = vmatmul.mubr.f32.gmra.mxu1 %v2308_v35 }
 0x66b   : > { %v7101_v39 = vpop.f32.mrf.mxu1 }
 0x66c   : > { %v8240_v40 = vadd.f32 %v7101_v39, %v8201_v55 }
 0x66d   : > { %v2246_v42 = vpop.f32.mrf.mxu1 }
 0x66e   : > { %v8243_v43 = vadd.f32 %v2246_v42, %v8204_v57 }
 0x673   : > { %v7104_v44 = vpop.f32.mrf.mxu1 }
 0x674   : > { %v8246_v45 = vadd.f32 %v7104_v44, %v8207_v59  ;;  %v7584_v59 = vld [vmem:[%s7991_s30] sm:$0x77] }
 0x675   : > { %v2256_v46 = vpop.f32.mrf.mxu1 }
 0x676   : > { %v8249_v47 = vadd.f32 %v2256_v46, %v8210_v61 }
 0x67b   : > { %v7107_v48 = vpop.f32.mrf.mxu1 }
 0x67c   : > { %v8252_v2 = vadd.f32 %v7107_v48, %v8213_v63 }
 0x67d   : > { %v2266_v49 = vpop.f32.mrf.mxu1 }
 0x67e   : > { %v8255_v50 = vadd.f32 %v2266_v49, %v8216_v3 }
 0x683   : > { %v7110_v51 = vpop.f32.mrf.mxu1 }
 0x684   : > { %v8258_v52 = vadd.f32 %v7110_v51, %v8219_v7 }
 0x685   : > { %v2276_v53 = vpop.f32.mrf.mxu1 }
 0x686   : > { %v8261_v54 = vadd.f32 %v2276_v53, %v8222_v11 }
 0x687   : > { %v2376_v55 = vpop.f32.mrf.mxu1 }
 0x688   : > { %7113 = vmatprep.mubr.msk.f32.mxu0 %vm707_vm1, %v2376_v55 }
 0x689   : > { %v2378_v56 = vpop.f32.mrf.mxu1 }
 0x68b   : > { %v2381_v57 = vpop.f32.mrf.mxu1 }
 0x68c   : > { %7114 = vmatmul.mubr.msk.f32.vlgmr.msra.gmra.mxu0 %vm707_vm1, %v2381_v57  ;;  %v3026_v57 = vld [vmem:[#allocation5 + $0x10] sm:$0xff] }
 0x68d   : > { %v2383_v58 = vpop.f32.mrf.mxu1  ;;  %2605 = vmatpush1.xpose.msra.mxu0 %v7584_v59 }
 0x68e   : > { %v2934_v58 = vld [vmem:[#allocation5] sm:$0xff] }
 0x68f   : > { %v2386_v60 = vpop.f32.mrf.mxu1 }
 0x690   : > { %7116 = vmatprep.mubr.msk.f32.mxu0 %vm707_vm1, %v2386_v60  ;;  %v6659_v60 = vld [vmem:[%s8702_s3] ss:$0 sm:$0xff] }
 0x691   : > { %v2388_v61 = vpop.f32.mrf.mxu1 }
 0x693   : > { %v2391_v62 = vpop.f32.mrf.mxu1 }
 0x694   : > { %7117 = vmatmul.mubr.msk.f32.gmra.mxu0 %vm707_vm1, %v2391_v62 }
 0x695   : > { %v2393_v63 = vpop.f32.mrf.mxu1 }
 0x697   : > { %v2396_v1 = vpop.f32.mrf.mxu1 }
 0x698   : > { %7119 = vmatprep.mubr.msk.f32.mxu0 %vm707_vm1, %v2396_v1 }
 0x699   : > { %v2398_v3 = vpop.f32.mrf.mxu1 }
 0x69b   : > { %v2401_v4 = vpop.f32.mrf.mxu1 }
 0x69c   : > { %7120 = vmatmul.mubr.msk.f32.gmra.mxu0 %vm707_vm1, %v2401_v4 }
 0x69d   : > { %v2403_v7 = vpop.f32.mrf.mxu1 }
 0x69f   : > { %v2406_v10 = vpop.f32.mrf.mxu1 }
 0x6a0   : > { %7122 = vmatprep.mubr.msk.f32.mxu0 %vm707_vm1, %v2406_v10 }
 0x6a1   : > { %v2408_v11 = vpop.f32.mrf.mxu1 }
 0x6a3   : > { %v2411_v17 = vpop.f32.mrf.mxu1 }
 0x6a4   : > { %7123 = vmatmul.mubr.msk.f32.gmra.mxu0 %vm707_vm1, %v2411_v17 }
 0x6a5   : > { %v2413_v24 = vpop.f32.mrf.mxu1  ;;  %2638 = vmatprep.mubr.f32.mxu0 %v2559_v12 }
 0x6a8   : > { %2639 = vmatmul.mubr.f32.vlgmr.msra.gmra.mxu0 %v2558_v28 }
 0x6a9   : > { %2643 = vmatprep.mubr.f32.mxu0 %v2561_v16 }
 0x6ac   : > { %2644 = vmatmul.mubr.f32.gmra.mxu0 %v2560_v6 }
 0x6ad   : > { %2648 = vmatprep.mubr.f32.mxu0 %v2563_v5 }
 0x6b0   : > { %2649 = vmatmul.mubr.f32.gmra.mxu0 %v2562_v20 }
 0x6b1   : > { %2653 = vmatprep.mubr.f32.mxu0 %v2565_v23 }
 0x6b4   : > { %2654 = vmatmul.mubr.f32.gmra.mxu0 %v2564_v29 }
 0x6b5   : > { %2658 = vmatprep.mubr.f32.mxu0 %v2567_v33 }
 0x6b8   : > { %2659 = vmatmul.mubr.f32.gmra.mxu0 %v2566_v19 }
 0x6b9   : > { %2663 = vmatprep.mubr.f32.mxu0 %v2569_v9 }
 0x6bc   : > { %2664 = vmatmul.mubr.f32.gmra.mxu0 %v2568_v0 }
 0x6bd   : > { %2668 = vmatprep.mubr.f32.mxu0 %v2571_v8 }
 0x6c0   : > { %2669 = vmatmul.mubr.f32.gmra.mxu0 %v2570_v18 }
 0x6c1   : > { %2673 = vmatprep.mubr.f32.mxu0 %v2573_v30 }
 0x6c4   : > { %2674 = vmatmul.mubr.f32.gmra.mxu0 %v2572_v14 }
 0x6c5   : > { %7174 = vmatprep.mubr.msk.f32.mxu0 %vm2836_vm2, %v3026_v57 }
 0x74c   : > { %v7115_v37 = vpop.f32.mrf.mxu0 }
 0x74d   : > { %v2550_v27 = vadd.f32 %v7115_v37, %v8240_v40 }
 0x74e   : > { %v2510_v21 = vpop.f32.mrf.mxu0 }
 0x74f   : > { %v2549_v36 = vadd.f32 %v2510_v21, %v8243_v43 }
 0x754   : > { %v7118_v22 = vpop.f32.mrf.mxu0 }
 0x755   : > { %v2552_v31 = vadd.f32 %v7118_v22, %v8246_v45 }
 0x756   : > { %v2520_v41 = vpop.f32.mrf.mxu0 }
 0x757   : > { %v2551_v13 = vadd.f32 %v2520_v41, %v8249_v47 }
 0x75c   : > { %v7121_v26 = vpop.f32.mrf.mxu0 }
 0x75d   : > { %v8282_v25 = vadd.f32 %v7121_v26, %v8252_v2 }
 0x75e   : > { %v2530_v32 = vpop.f32.mrf.mxu0 }
 0x75f   : > { %v8285_v34 = vadd.f32 %v2530_v32, %v8255_v50 }
 0x764   : > { %v7124_v35 = vpop.f32.mrf.mxu0 }
 0x765   : > { %v8288_v38 = vadd.f32 %v7124_v35, %v8258_v52 }
 0x766   : > { %v2540_v39 = vpop.f32.mrf.mxu0 }
 0x767   : > { %v8291_v40 = vadd.f32 %v2540_v39, %v8261_v54 }
 0x768   : > { %v2640_v42 = vpop.f32.mrf.mxu0 }
 0x769   : > { %7127 = vmatprep.mubr.msk.f32.mxu1 %vm707_vm1, %v2640_v42 }
 0x76a   : > { %v2642_v43 = vpop.f32.mrf.mxu0 }
 0x76c   : > { %v2645_v44 = vpop.f32.mrf.mxu0 }
 0x76d   : > { %7128 = vmatmul.mubr.msk.f32.vlgmr.msra.gmra.mxu1 %vm707_vm1, %v2645_v44 }
 0x76e   : > { %v2647_v45 = vpop.f32.mrf.mxu0 }
 0x770   : > { %v2650_v46 = vpop.f32.mrf.mxu0 }
 0x771   : > { %7130 = vmatprep.mubr.msk.f32.mxu1 %vm707_vm1, %v2650_v46 }
 0x772   : > { %v2652_v47 = vpop.f32.mrf.mxu0 }
 0x774   : > { %v2655_v48 = vpop.f32.mrf.mxu0 }
 0x775   : > { %7131 = vmatmul.mubr.msk.f32.gmra.mxu1 %vm707_vm1, %v2655_v48 }
 0x776   : > { %v2657_v2 = vpop.f32.mrf.mxu0 }
 0x778   : > { %v2660_v49 = vpop.f32.mrf.mxu0 }
 0x779   : > { %7133 = vmatprep.mubr.msk.f32.mxu1 %vm707_vm1, %v2660_v49 }
 0x77a   : > { %v2662_v50 = vpop.f32.mrf.mxu0 }
 0x77c   : > { %v2665_v51 = vpop.f32.mrf.mxu0 }
 0x77d   : > { %7134 = vmatmul.mubr.msk.f32.gmra.mxu1 %vm707_vm1, %v2665_v51 }
 0x77e   : > { %v2667_v52 = vpop.f32.mrf.mxu0 }
 0x780   : > { %v2670_v53 = vpop.f32.mrf.mxu0 }
 0x781   : > { %7136 = vmatprep.mubr.msk.f32.mxu1 %vm707_vm1, %v2670_v53 }
 0x782   : > { %v2672_v54 = vpop.f32.mrf.mxu0 }
 0x784   : > { %v2675_v55 = vpop.f32.mrf.mxu0 }
 0x785   : > { %7137 = vmatmul.mubr.msk.f32.gmra.mxu1 %vm707_vm1, %v2675_v55 }
 0x786   : > { %v2677_v56 = vpop.f32.mrf.mxu0  ;;  %7155 = vmatprep.mubr.msk.f32.mxu1 %vm2836_vm2, %v2934_v58 }
 0x82d   : > { %v7129_v59 = vpop.f32.mrf.mxu1 }
 0x82e   : > { %v2814_v61 = vadd.f32 %v7129_v59, %v2550_v27 }
 0x82f   : > { %v2774_v62 = vpop.f32.mrf.mxu1 }
 0x830   : > { %v8306_v63 = vadd.f32 %v6659_v60, %v2814_v61  ;;  %v2813_v1 = vadd.f32 %v2774_v62, %v2549_v36 }
 0x832   : > { %v2861_v3 = vmul.f32 %v8306_v63, %v8306_v63  ;;  %v8310_v4 = vadd.f32 %v6659_v60, %v2813_v1  ;;  %v2838_v7 = vsel %vm2836_vm2, %v8306_v63, 0.0 }
 0x834   : > { %v2837_v10 = vsel %vm2836_vm2, %v8310_v4, 0.0  ;;  %v2860_v11 = vmul.f32 %v8310_v4, %v8310_v4  ;;  %v2869_v24 = vsel %vm2836_vm2, %v2861_v3, 0.0 }
 0x835   : > { %v2839_v12 = vadd.f32 %v2838_v7, %v2837_v10  ;;  %v7132_v17 = vpop.f32.mrf.mxu1 }
 0x836   : > { %v2868_v28 = vsel %vm2836_vm2, %v2860_v11, 0.0  ;;  %v2816_v16 = vadd.f32 %v7132_v17, %v2552_v31 }
 0x837   : > { %v2870_v6 = vadd.f32 %v2869_v24, %v2868_v28  ;;  %v2784_v5 = vpop.f32.mrf.mxu1 }
 0x838   : > { %v8320_v20 = vadd.f32 %v6659_v60, %v2816_v16  ;;  %v2815_v23 = vadd.f32 %v2784_v5, %v2551_v13 }
 0x83a   : > { %v8322_v29 = vadd.f32 %v6659_v60, %v2815_v23  ;;  %v2863_v33 = vmul.f32 %v8320_v20, %v8320_v20  ;;  %v2842_v18 = vsel %vm2836_vm2, %v8320_v20, 0.0 }
 0x83c   : > { %v2840_v19 = vsel %vm2836_vm2, %v8322_v29, 0.0  ;;  %v2862_v9 = vmul.f32 %v8322_v29, %v8322_v29  ;;  %v2873_v21 = vsel %vm2836_vm2, %v2863_v33, 0.0 }
 0x83d   : > { %v2841_v0 = vadd.f32 %v2840_v19, %v2839_v12  ;;  %v7135_v8 = vpop.f32.mrf.mxu1 }
 0x83e   : > { %v2871_v30 = vsel %vm2836_vm2, %v2862_v9, 0.0  ;;  %v2818_v14 = vadd.f32 %v7135_v8, %v8282_v25 }
 0x83f   : > { %v2872_v15 = vadd.f32 %v2871_v30, %v2870_v6  ;;  %v2794_v37 = vpop.f32.mrf.mxu1  ;;  %v2843_v27 = vadd.f32 %v2842_v18, %v2841_v0 }
 0x840   : > { %v8335_v36 = vadd.f32 %v6659_v60, %v2818_v14  ;;  %v2817_v22 = vadd.f32 %v2794_v37, %v8285_v34 }
 0x841   : > { %v2874_v31 = vadd.f32 %v2873_v21, %v2872_v15 }
 0x842   : > { %v2832_v41 = vadd.f32 %v6659_v60, %v2817_v22  ;;  %v2865_v13 = vmul.f32 %v8335_v36, %v8335_v36  ;;  %v2846_v25 = vsel %vm2836_vm2, %v8335_v36, 0.0 }
 0x844   : > { %v2844_v26 = vsel %vm2836_vm2, %v2832_v41, 0.0  ;;  %v2864_v32 = vmul.f32 %v2832_v41, %v2832_v41  ;;  %v2877_v46 = vsel %vm2836_vm2, %v2865_v13, 0.0 }
 0x845   : > { %v2845_v35 = vadd.f32 %v2844_v26, %v2843_v27  ;;  %v7138_v39 = vpop.f32.mrf.mxu1 }
 0x846   : > { %v2875_v42 = vsel %vm2836_vm2, %v2864_v32, 0.0  ;;  %v2820_v43 = vadd.f32 %v7138_v39, %v8288_v38 }
 0x847   : > { %v2876_v44 = vadd.f32 %v2875_v42, %v2874_v31  ;;  %v2804_v45 = vpop.f32.mrf.mxu1  ;;  %v2847_v34 = vadd.f32 %v2846_v25, %v2845_v35 }
 0x848   : > { %v2835_v47 = vadd.f32 %v6659_v60, %v2820_v43  ;;  %v2819_v48 = vadd.f32 %v2804_v45, %v8291_v40 }
 0x849   : > { %v2878_v2 = vadd.f32 %v2877_v46, %v2876_v44 }
 0x84a   : > { %v2834_v49 = vadd.f32 %v6659_v60, %v2819_v48  ;;  %v2867_v50 = vmul.f32 %v2835_v47, %v2835_v47  ;;  %v2850_v54 = vsel %vm2836_vm2, %v2835_v47, 0.0  ;;  %v3117_v48 = vld [vmem:[#allocation7 + $0x78] sm:$0xff] }
 0x84c   : > { %v2848_v51 = vsel %vm2836_vm2, %v2834_v49, 0.0  ;;  %v2866_v52 = vmul.f32 %v2834_v49, %v2834_v49  ;;  %v2881_v57 = vsel %vm2836_vm2, %v2867_v50, 0.0  ;;  %v3115_v50 = vld [vmem:[#allocation7 + $0x68] sm:$0xff] }
 0x84d   : > { %v2849_v53 = vadd.f32 %v2848_v51, %v2847_v34  ;;  %v3114_v51 = vld [vmem:[#allocation7 + $0x60] sm:$0xff] }
 0x84e   : > { %v2879_v55 = vsel %vm2836_vm2, %v2866_v52, 0.0  ;;  %v3113_v52 = vld [vmem:[#allocation7 + $0x58] sm:$0xff] }
 0x84f   : > { %v2851_v38 = vadd.f32 %v2850_v54, %v2849_v53  ;;  %v2880_v56 = vadd.f32 %v2879_v55, %v2878_v2  ;;  %v2935_v2 = vld [vmem:[#allocation5 + $0x8] sm:$0xff]  ;;  %v3112_v53 = vld [vmem:[#allocation7 + $0x50] sm:$0xff]  ;;  %v3111_v54 = vld [vmem:[#allocation7 + $0x48] sm:$0xff] }
 0x850   : > { %v3110_v55 = vld [vmem:[#allocation7 + $0x40] sm:$0xff] }
 0x851   : > { %v2852_v58 = vrot.slane %v2851_v38, 4  ;;  %v2882_v59 = vadd.f32 %v2881_v57, %v2880_v56  ;;  %v3023_v56 = vld [vmem:[#allocation7 + $0x30] sm:$0xff]  ;;  %v3022_v57 = vld [vmem:[#allocation7 + $0x28] sm:$0xff] }
 0x853   : > { %v2853_v61 = vadd.f32 %v2852_v58, %v2851_v38  ;;  %v2883_v62 = vrot.slane %v2882_v59, 4  ;;  %v3024_v38 = vld [vmem:[#allocation7 + $0x38] sm:$0xff]  ;;  %v3021_v58 = vld [vmem:[#allocation7 + $0x20] sm:$0xff] }
 0x855   : > { %v2854_v40 = vrot.slane %v2853_v61, 2  ;;  %v2884_v1 = vadd.f32 %v2883_v62, %v2882_v59  ;;  %v3020_v59 = vld [vmem:[#allocation7 + $0x18] sm:$0xff]  ;;  %v3018_v62 = vld [vmem:[#allocation7 + $0x8] sm:$0xff] }
 0x857   : > { %v2855_v60 = vadd.f32 %v2854_v40, %v2853_v61  ;;  %v2885_v3 = vrot.slane %v2884_v1, 2  ;;  %v3019_v61 = vld [vmem:[#allocation7 + $0x10] sm:$0xff]  ;;  %v3017_v40 = vld [vmem:[#allocation7] sm:$0xff] }
 0x859   : > { %v2856_v7 = vrot.slane %v2855_v60, 1  ;;  %v2886_v10 = vadd.f32 %v2885_v3, %v2884_v1  ;;  %v3372_v1 = vld [vmem:[#allocation7 + $0xb8] sm:$0xff] }
 0x85b   : > { %v2857_v11 = vadd.f32 %v2856_v7, %v2855_v60  ;;  %v2887_v12 = vrot.slane %v2886_v10, 1 }
 0x85d   : > { %v2859_v17 = vmul.f32 0.015625, %v2857_v11  ;;  %v2888_v24 = vadd.f32 %v2887_v12, %v2886_v10  ;;  %v3281_v11 = vld [vmem:[#allocation5 + $0x20] sm:$0xff] }
 0x85e   : > { %v3371_v12 = vld [vmem:[#allocation7 + $0xb0] sm:$0xff] }
 0x85f   : > { %v2889_v28 = vmul.f32 0.015625, %v2888_v24  ;;  %v2890_v16 = vmul.f32 %v2859_v17, %v2859_v17  ;;  %v2892_v6 = vsub.f32 %v8310_v4, %v2859_v17  ;;  %v2893_v5 = vsub.f32 %v8306_v63, %v2859_v17  ;;  %v3369_v24 = vld [vmem:[#allocation7 + $0xa0] sm:$0xff] }
 0x860   : > { %v2894_v23 = vsub.f32 %v8322_v29, %v2859_v17  ;;  %v2895_v33 = vsub.f32 %v8320_v20, %v2859_v17  ;;  %v2896_v19 = vsub.f32 %v2832_v41, %v2859_v17  ;;  %v2897_v9 = vsub.f32 %v8335_v36, %v2859_v17 }
 0x861   : > { %v2891_v0 = vsub.f32 %v2889_v28, %v2890_v16  ;;  %v2898_v8 = vsub.f32 %v2834_v49, %v2859_v17  ;;  %v2899_v18 = vsub.f32 %v2835_v47, %v2859_v17  ;;  %v3027_v47 = vld [vmem:[#allocation5 + $0x18] sm:$0xff]  ;;  %v3116_v49 = vld [vmem:[#allocation7 + $0x70] sm:$0xff]  ;;  %v3282_v28 = vld [vmem:[#allocation5 + $0x28] sm:$0xff] }
 0x862   : > { %v3370_v17 = vld [vmem:[#allocation7 + $0xa8] sm:$0xff]  ;;  %v3457_v16 = vld [vmem:[#allocation5 + $0x30] sm:$0xff] }
 0x863   : > { %v2900_v30 = vadd.f32 1e-05, %v2891_v0  ;;  %v3368_v0 = vld [vmem:[#allocation7 + $0x98] sm:$0xff] }
 0x865   : > { %7580 = vrsqrt.f32 %v2900_v30  ;;  %v4161_v30 = vld [vmem:[#allocation5 + $0x70] sm:$0xff] }
 0x872   : > { %v7581_v14 = vpop.eup %7580 }
 0x873   : > { %v2902_v15 = vmul.f32 %v7581_v14, %v2892_v6  ;;  %v2903_v37 = vmul.f32 %v7581_v14, %v2893_v5  ;;  %v2904_v27 = vmul.f32 %v7581_v14, %v2894_v23  ;;  %v2905_v21 = vmul.f32 %v7581_v14, %v2895_v33  ;;  %v3458_v6 = vld [vmem:[#allocation5 + $0x38] sm:$0xff]  ;;  %v3633_v5 = vld [vmem:[#allocation5 + $0x40] sm:$0xff]  ;;  %v3634_v23 = vld [vmem:[#allocation5 + $0x48] sm:$0xff] }
 0x874   : > { %v2906_v4 = vmul.f32 %v7581_v14, %v2896_v19  ;;  %v2907_v22 = vmul.f32 %v7581_v14, %v2897_v9  ;;  %v2908_v63 = vmul.f32 %v7581_v14, %v2898_v8  ;;  %v2909_v31 = vmul.f32 %v7581_v14, %v2899_v18  ;;  %v3809_v33 = vld [vmem:[#allocation5 + $0x50] sm:$0xff]  ;;  %v3810_v19 = vld [vmem:[#allocation5 + $0x58] sm:$0xff]  ;;  %v3985_v9 = vld [vmem:[#allocation5 + $0x60] sm:$0xff] }
 0x875   : > { %v2921_v32 = vmul.f32 0.2, %v2905_v21  ;;  %vm2913_vm7 = vcmp.ge.f32.partialorder %v2905_v21, 0.0  ;;  %v2920_v39 = vmul.f32 0.2, %v2904_v27  ;;  %vm2912_vm8 = vcmp.ge.f32.partialorder %v2904_v27, 0.0 }
 0x876   : > { %vm2917_vm3 = vcmp.ge.f32.partialorder %v2909_v31, 0.0  ;;  %v2924_v29 = vmul.f32 0.2, %v2908_v63  ;;  %v2925_v20 = vmul.f32 0.2, %v2909_v31  ;;  %vm2916_vm4 = vcmp.ge.f32.partialorder %v2908_v63, 0.0 }
 0x877   : > { %v2923_v41 = vmul.f32 0.2, %v2907_v22  ;;  %vm2915_vm5 = vcmp.ge.f32.partialorder %v2907_v22, 0.0  ;;  %v2922_v13 = vmul.f32 0.2, %v2906_v4  ;;  %vm2914_vm6 = vcmp.ge.f32.partialorder %v2906_v4, 0.0 }
 0x878   : > { %v8356_v36 = vsel %vm2917_vm3, %v2909_v31, %v2925_v20  ;;  %v8360_v26 = vsel %vm2916_vm4, %v2908_v63, %v2924_v29  ;;  %v2919_v42 = vmul.f32 0.2, %v2903_v37  ;;  %v8378_v43 = vsel %vm2913_vm7, %v2905_v21, %v2921_v32  ;;  %v3367_v8 = vld [vmem:[#allocation7 + $0x90] sm:$0xff]  ;;  %v3986_v18 = vld [vmem:[#allocation5 + $0x68] sm:$0xff]  ;;  %v3366_v14 = vld [vmem:[#allocation7 + $0x88] sm:$0xff] }
 0x879   : > { %7139 = vmatprep.subr.mxu1 %v8356_v36  ;;  %7158 = vmatprep.subr.mxu0 %v8356_v36  ;;  %v8366_v35 = vsel %vm2915_vm5, %v2907_v22, %v2923_v41  ;;  %v8372_v25 = vsel %vm2914_vm6, %v2906_v4, %v2922_v13  ;;  %vm2911_vm9 = vcmp.ge.f32.partialorder %v2903_v37, 0.0  ;;  %v2918_v44 = vmul.f32 0.2, %v2902_v15  ;;  %v4337_v21 = vld [vmem:[#allocation5 + $0x80] sm:$0xff]  ;;  %v4338_v4 = vld [vmem:[#allocation5 + $0x88] sm:$0xff]  ;;  %v3546_v41 = vld [vmem:[#allocation7 + $0xe8] sm:$0xff] }
 0x87a   : > { %7140 = vmatpush3.msra.mxu1 %v8356_v36  ;;  %7159 = vmatpush3.msra.mxu0 %v8356_v36  ;;  %v8384_v45 = vsel %vm2912_vm8, %v2904_v27, %v2920_v39  ;;  %vm2910_vm10 = vcmp.ge.f32.partialorder %v2902_v15, 0.0  ;;  %v8390_v34 = vsel %vm2911_vm9, %v2903_v37, %v2919_v42  ;;  %v3548_v37 = vld [vmem:[#allocation7 + $0xf8] sm:$0xff]  ;;  %v4162_v27 = vld [vmem:[#allocation5 + $0x78] sm:$0xff]  ;;  %v3547_v20 = vld [vmem:[#allocation7 + $0xf0] sm:$0xff] }
 0x87b   : > { %7141 = vmatprep.subr.mxu1 %v8360_v26  ;;  %7160 = vmatprep.subr.mxu0 %v8360_v26  ;;  %v8396_v46 = vsel %vm2910_vm10, %v2902_v15, %v2918_v44  ;;  %v3365_v15 = vld [vmem:[#allocation7 + $0x80] sm:$0xff]  ;;  %v3544_v13 = vld [vmem:[#allocation7 + $0xd8] sm:$0xff]  ;;  %v3542_v32 = vld [vmem:[#allocation7 + $0xc8] sm:$0xff] }
 0x87c   : > { %7142 = vmatpush3.msra.mxu1 %v8360_v26  ;;  %7161 = vmatpush3.msra.mxu0 %v8360_v26  ;;  %v3722_v44 = vld [vmem:[#allocation7 + $0x128] sm:$0xff] }
 0x87d   : > { %7143 = vmatprep.subr.mxu1 %v8366_v35  ;;  %7162 = vmatprep.subr.mxu0 %v8366_v35 }
 0x87e   : > { %7144 = vmatpush3.msra.mxu1 %v8366_v35  ;;  %7163 = vmatpush3.msra.mxu0 %v8366_v35 }
 0x87f   : > { %7145 = vmatprep.subr.mxu1 %v8372_v25  ;;  %7164 = vmatprep.subr.mxu0 %v8372_v25 }
 0x880   : > { %7146 = vmatpush3.msra.mxu1 %v8372_v25  ;;  %7165 = vmatpush3.msra.mxu0 %v8372_v25 }
 0x881   : > { %7147 = vmatprep.subr.mxu1 %v8378_v43  ;;  %7166 = vmatprep.subr.mxu0 %v8378_v43 }
 0x882   : > { %7148 = vmatpush3.msra.mxu1 %v8378_v43  ;;  %7167 = vmatpush3.msra.mxu0 %v8378_v43 }
 0x883   : > { %7149 = vmatprep.subr.mxu1 %v8384_v45  ;;  %7168 = vmatprep.subr.mxu0 %v8384_v45 }
 0x884   : > { %7150 = vmatpush3.msra.mxu1 %v8384_v45  ;;  %7169 = vmatpush3.msra.mxu0 %v8384_v45 }
 0x885   : > { %7151 = vmatprep.subr.mxu1 %v8390_v34  ;;  %7170 = vmatprep.subr.mxu0 %v8390_v34 }
 0x886   : > { %7152 = vmatpush3.msra.mxu1 %v8390_v34  ;;  %7171 = vmatpush3.msra.mxu0 %v8390_v34 }
 0x887   : > { %7153 = vmatprep.subr.mxu1 %v8396_v46  ;;  %7172 = vmatprep.subr.mxu0 %v8396_v46 }
 0x888   : > { %7154 = vmatpush3.msra.mxu1 %v8396_v46  ;;  %7173 = vmatpush3.msra.mxu0 %v8396_v46 }
 0x889   : > { %7175 = vmatmul.mubr.msk.f32.vlgmr.msra.gmra.mxu0 %vm2836_vm2, %v3027_v47  ;;  %7177 = vmatprep.subr.mxu1 %v3117_v48  ;;  %v3718_v47 = vld [vmem:[#allocation7 + $0x108] sm:$0xff] }
 0x88a   : > { %7156 = vmatmul.mubr.msk.f32.vlgmr.msra.gmra.mxu1 %vm2836_vm2, %v2935_v2  ;;  %7196 = vmatprep.subr.mxu0 %v3024_v38 }
 0x88b   : > { %7178 = vmatpush3.msra.mxu1 %v3117_v48  ;;  %7197 = vmatpush3.msra.mxu0 %v3024_v38  ;;  %v3717_v48 = vld [vmem:[#allocation7 + $0x100] sm:$0xff]  ;;  %v3894_v38 = vld [vmem:[#allocation7 + $0x148] sm:$0xff] }
 0x88c   : > { %7179 = vmatprep.subr.mxu1 %v3116_v49  ;;  %7198 = vmatprep.subr.mxu0 %v3023_v56 }
 0x88d   : > { %7180 = vmatpush3.msra.mxu1 %v3116_v49  ;;  %7199 = vmatpush3.msra.mxu0 %v3023_v56  ;;  %v3900_v49 = vld [vmem:[#allocation7 + $0x178] sm:$0xff]  ;;  %v3893_v56 = vld [vmem:[#allocation7 + $0x140] sm:$0xff] }
 0x88e   : > { %7181 = vmatprep.subr.mxu1 %v3115_v50  ;;  %7200 = vmatprep.subr.mxu0 %v3022_v57 }
 0x88f   : > { %7182 = vmatpush3.msra.mxu1 %v3115_v50  ;;  %7201 = vmatpush3.msra.mxu0 %v3022_v57 }
 0x890   : > { %7183 = vmatprep.subr.mxu1 %v3114_v51  ;;  %7202 = vmatprep.subr.mxu0 %v3021_v58 }
 0x891   : > { %7184 = vmatpush3.msra.mxu1 %v3114_v51  ;;  %7203 = vmatpush3.msra.mxu0 %v3021_v58  ;;  %v3899_v51 = vld [vmem:[#allocation7 + $0x170] sm:$0xff]  ;;  %v4076_v58 = vld [vmem:[#allocation7 + $0x1b8] sm:$0xff] }
 0x892   : > { %7185 = vmatprep.subr.mxu1 %v3113_v52  ;;  %7204 = vmatprep.subr.mxu0 %v3020_v59 }
 0x893   : > { %7186 = vmatpush3.msra.mxu1 %v3113_v52  ;;  %7205 = vmatpush3.msra.mxu0 %v3020_v59  ;;  %v3898_v52 = vld [vmem:[#allocation7 + $0x168] sm:$0xff] }
 0x894   : > { %7187 = vmatprep.subr.mxu1 %v3112_v53  ;;  %7206 = vmatprep.subr.mxu0 %v3019_v61 }
 0x895   : > { %7188 = vmatpush3.msra.mxu1 %v3112_v53  ;;  %7207 = vmatpush3.msra.mxu0 %v3019_v61  ;;  %v3897_v53 = vld [vmem:[#allocation7 + $0x160] sm:$0xff]  ;;  %v4075_v61 = vld [vmem:[#allocation7 + $0x1b0] sm:$0xff] }
 0x896   : > { %7189 = vmatprep.subr.mxu1 %v3111_v54  ;;  %7208 = vmatprep.subr.mxu0 %v3018_v62 }
 0x897   : > { %7190 = vmatpush3.msra.mxu1 %v3111_v54  ;;  %7209 = vmatpush3.msra.mxu0 %v3018_v62  ;;  %v3896_v54 = vld [vmem:[#allocation7 + $0x158] sm:$0xff]  ;;  %v4074_v62 = vld [vmem:[#allocation7 + $0x1a8] sm:$0xff] }
 0x898   : > { %7191 = vmatprep.subr.mxu1 %v3110_v55  ;;  %7210 = vmatprep.subr.mxu0 %v3017_v40 }
 0x899   : > { %7192 = vmatpush3.msra.mxu1 %v3110_v55  ;;  %7211 = vmatpush3.msra.mxu0 %v3017_v40  ;;  %v3895_v55 = vld [vmem:[#allocation7 + $0x150] sm:$0xff]  ;;  %v4073_v40 = vld [vmem:[#allocation7 + $0x1a0] sm:$0xff] }
 0x89a   : > { %7215 = vmatprep.subr.mxu1 %v8356_v36  ;;  %7234 = vmatprep.subr.mxu0 %v3372_v1 }
 0x949   : > { %v7176_v60 = vpop.f32.mrf.mxu0 }
 0x94a   : > { %v7157_v3 = vpop.f32.mrf.mxu1 }
 0x94b   : > { %v3100_v7 = vpop.f32.mrf.mxu0 }
 0x94c   : > { %7193 = vmatprep.mubr.msk.f32.mxu1 %vm2836_vm2, %v3100_v7  ;;  %v3008_v10 = vpop.f32.mrf.mxu1  ;;  %v4069_v7 = vld [vmem:[#allocation7 + $0x180] sm:$0xff] }
 0x94d   : > { %7194 = vmatmul.mubr.msk.f32.vlgmr.msra.gmra.mxu1 %vm2836_vm2, %v7176_v60  ;;  %7212 = vmatprep.mubr.msk.f32.mxu0 %vm2836_vm2, %v3008_v10  ;;  %v4071_v60 = vld [vmem:[#allocation7 + $0x190] sm:$0xff] }
 0x94e   : > { %7216 = vmatpush3.msra.mxu1 %v8356_v36  ;;  %7213 = vmatmul.mubr.msk.f32.vlgmr.msra.gmra.mxu0 %vm2836_vm2, %v7157_v3  ;;  %v4070_v3 = vld [vmem:[#allocation7 + $0x188] sm:$0xff] }
 0x94f   : > { %7217 = vmatprep.subr.mxu1 %v8360_v26  ;;  %7231 = vmatprep.mubr.msk.f32.mxu1 %vm2836_vm2, %v3281_v11  ;;  %v4252_v11 = vld [vmem:[#allocation7 + $0x1f8] sm:$0xff] }
 0x950   : > { %7218 = vmatpush3.msra.mxu1 %v8360_v26  ;;  %7235 = vmatpush3.msra.mxu0 %v3372_v1  ;;  %v4072_v1 = vld [vmem:[#allocation7 + $0x198] sm:$0xff] }
 0x951   : > { %7219 = vmatprep.subr.mxu1 %v8366_v35  ;;  %7236 = vmatprep.subr.mxu0 %v3371_v12 }
 0x952   : > { %7220 = vmatpush3.msra.mxu1 %v8366_v35  ;;  %7237 = vmatpush3.msra.mxu0 %v3371_v12 }
 0x953   : > { %7221 = vmatprep.subr.mxu1 %v8372_v25  ;;  %7238 = vmatprep.subr.mxu0 %v3370_v17 }
 0x954   : > { %7222 = vmatpush3.msra.mxu1 %v8372_v25  ;;  %7239 = vmatpush3.msra.mxu0 %v3370_v17  ;;  %v4251_v17 = vld [vmem:[#allocation7 + $0x1f0] sm:$0xff] }
 0x955   : > { %7223 = vmatprep.subr.mxu1 %v8378_v43  ;;  %7240 = vmatprep.subr.mxu0 %v3369_v24 }
 0x956   : > { %7224 = vmatpush3.msra.mxu1 %v8378_v43  ;;  %7241 = vmatpush3.msra.mxu0 %v3369_v24  ;;  %v4250_v24 = vld [vmem:[#allocation7 + $0x1e8] sm:$0xff] }
 0x957   : > { %7225 = vmatprep.subr.mxu1 %v8384_v45  ;;  %7242 = vmatprep.subr.mxu0 %v3368_v0 }
 0x958   : > { %7226 = vmatpush3.msra.mxu1 %v8384_v45  ;;  %7243 = vmatpush3.msra.mxu0 %v3368_v0  ;;  %v4427_v0 = vld [vmem:[#allocation7 + $0x230] sm:$0xff] }
 0x959   : > { %7227 = vmatprep.subr.mxu1 %v8390_v34  ;;  %7244 = vmatprep.subr.mxu0 %v3367_v8 }
 0x95a   : > { %7228 = vmatpush3.msra.mxu1 %v8390_v34  ;;  %7245 = vmatpush3.msra.mxu0 %v3367_v8  ;;  %v4426_v8 = vld [vmem:[#allocation7 + $0x228] sm:$0xff] }
 0x95b   : > { %7229 = vmatprep.subr.mxu1 %v8396_v46  ;;  %7246 = vmatprep.subr.mxu0 %v3366_v14 }
 0x95c   : > { %7230 = vmatpush3.msra.mxu1 %v8396_v46  ;;  %7247 = vmatpush3.msra.mxu0 %v3366_v14  ;;  %v4423_v14 = vld [vmem:[#allocation7 + $0x210] sm:$0xff] }
 0x95d   : > { %7232 = vmatmul.mubr.msk.f32.vlgmr.msra.gmra.mxu1 %vm2836_vm2, %v3282_v28  ;;  %7253 = vmatprep.subr.mxu1 %v8356_v36  ;;  %v4249_v28 = vld [vmem:[#allocation7 + $0x1e0] sm:$0xff] }
 0x95e   : > { %7254 = vmatpush3.msra.mxu1 %v8356_v36  ;;  %7269 = vmatprep.mubr.msk.f32.mxu1 %vm2836_vm2, %v3457_v16  ;;  %v4248_v16 = vld [vmem:[#allocation7 + $0x1d8] sm:$0xff] }
 0x95f   : > { %7255 = vmatprep.subr.mxu1 %v8360_v26  ;;  %7248 = vmatprep.subr.mxu0 %v3365_v15 }
 0x960   : > { %7256 = vmatpush3.msra.mxu1 %v8360_v26  ;;  %7249 = vmatpush3.msra.mxu0 %v3365_v15  ;;  %v4422_v15 = vld [vmem:[#allocation7 + $0x208] sm:$0xff] }
 0x961   : > { %7257 = vmatprep.subr.mxu1 %v8366_v35  ;;  %7272 = vmatprep.subr.mxu0 %v3548_v37 }
 0x962   : > { %7258 = vmatpush3.msra.mxu1 %v8366_v35 }
 0x963   : > { %7259 = vmatprep.subr.mxu1 %v8372_v25 }
 0x964   : > { %7260 = vmatpush3.msra.mxu1 %v8372_v25 }
 0x965   : > { %7261 = vmatprep.subr.mxu1 %v8378_v43 }
 0x966   : > { %7262 = vmatpush3.msra.mxu1 %v8378_v43 }
 0x967   : > { %7263 = vmatprep.subr.mxu1 %v8384_v45 }
 0x968   : > { %7264 = vmatpush3.msra.mxu1 %v8384_v45 }
 0x969   : > { %7265 = vmatprep.subr.mxu1 %v8390_v34 }
 0x96a   : > { %7266 = vmatpush3.msra.mxu1 %v8390_v34 }
 0x96b   : > { %7267 = vmatprep.subr.mxu1 %v8396_v46 }
 0x96c   : > { %7268 = vmatpush3.msra.mxu1 %v8396_v46 }
 0x96d   : > { %7270 = vmatmul.mubr.msk.f32.vlgmr.msra.gmra.mxu1 %vm2836_vm2, %v3458_v6  ;;  %7291 = vmatprep.subr.mxu1 %v8356_v36  ;;  %v4247_v6 = vld [vmem:[#allocation7 + $0x1d0] sm:$0xff] }
 0x96e   : > { %7292 = vmatpush3.msra.mxu1 %v8356_v36  ;;  %7307 = vmatprep.mubr.msk.f32.mxu1 %vm2836_vm2, %v3633_v5  ;;  %v4246_v5 = vld [vmem:[#allocation7 + $0x1c8] sm:$0xff] }
 0x96f   : > { %7293 = vmatprep.subr.mxu1 %v8360_v26 }
 0x970   : > { %7294 = vmatpush3.msra.mxu1 %v8360_v26 }
 0x971   : > { %7295 = vmatprep.subr.mxu1 %v8366_v35 }
 0x972   : > { %7296 = vmatpush3.msra.mxu1 %v8366_v35 }
 0x973   : > { %7297 = vmatprep.subr.mxu1 %v8372_v25 }
 0x974   : > { %7298 = vmatpush3.msra.mxu1 %v8372_v25 }
 0x975   : > { %7299 = vmatprep.subr.mxu1 %v8378_v43 }
 0x976   : > { %7300 = vmatpush3.msra.mxu1 %v8378_v43 }
 0x977   : > { %7301 = vmatprep.subr.mxu1 %v8384_v45 }
 0x978   : > { %7302 = vmatpush3.msra.mxu1 %v8384_v45 }
 0x979   : > { %7303 = vmatprep.subr.mxu1 %v8390_v34 }
 0x97a   : > { %7304 = vmatpush3.msra.mxu1 %v8390_v34 }
 0x97b   : > { %7305 = vmatprep.subr.mxu1 %v8396_v46 }
 0x97c   : > { %7306 = vmatpush3.msra.mxu1 %v8396_v46 }
 0x97d   : > { %7308 = vmatmul.mubr.msk.f32.vlgmr.msra.gmra.mxu1 %vm2836_vm2, %v3634_v23  ;;  %7329 = vmatprep.subr.mxu1 %v8356_v36  ;;  %v4245_v23 = vld [vmem:[#allocation7 + $0x1c0] sm:$0xff] }
 0x97e   : > { %7330 = vmatpush3.msra.mxu1 %v8356_v36  ;;  %7345 = vmatprep.mubr.msk.f32.mxu1 %vm2836_vm2, %v3809_v33 }
 0x97f   : > { %7331 = vmatprep.subr.mxu1 %v8360_v26 }
 0x980   : > { %7332 = vmatpush3.msra.mxu1 %v8360_v26 }
 0x981   : > { %7333 = vmatprep.subr.mxu1 %v8366_v35 }
 0x982   : > { %7334 = vmatpush3.msra.mxu1 %v8366_v35 }
 0x983   : > { %7335 = vmatprep.subr.mxu1 %v8372_v25 }
 0x984   : > { %7336 = vmatpush3.msra.mxu1 %v8372_v25 }
 0x985   : > { %7337 = vmatprep.subr.mxu1 %v8378_v43 }
 0x986   : > { %7338 = vmatpush3.msra.mxu1 %v8378_v43 }
 0x987   : > { %7339 = vmatprep.subr.mxu1 %v8384_v45 }
 0x988   : > { %7340 = vmatpush3.msra.mxu1 %v8384_v45 }
 0x989   : > { %7341 = vmatprep.subr.mxu1 %v8390_v34 }
 0x98a   : > { %7342 = vmatpush3.msra.mxu1 %v8390_v34 }
 0x98b   : > { %7343 = vmatprep.subr.mxu1 %v8396_v46 }
 0x98c   : > { %7344 = vmatpush3.msra.mxu1 %v8396_v46 }
 0x98d   : > { %7346 = vmatmul.mubr.msk.f32.vlgmr.msra.gmra.mxu1 %vm2836_vm2, %v3810_v19  ;;  %7367 = vmatprep.subr.mxu1 %v8356_v36  ;;  %v4428_v19 = vld [vmem:[#allocation7 + $0x238] sm:$0xff] }
 0x98e   : > { %7368 = vmatpush3.msra.mxu1 %v8356_v36  ;;  %7383 = vmatprep.mubr.msk.f32.mxu1 %vm2836_vm2, %v3985_v9 }
 0x98f   : > { %7369 = vmatprep.subr.mxu1 %v8360_v26 }
 0x990   : > { %7370 = vmatpush3.msra.mxu1 %v8360_v26 }
 0x991   : > { %7371 = vmatprep.subr.mxu1 %v8366_v35 }
 0x992   : > { %7372 = vmatpush3.msra.mxu1 %v8366_v35 }
 0x993   : > { %7373 = vmatprep.subr.mxu1 %v8372_v25 }
 0x994   : > { %7374 = vmatpush3.msra.mxu1 %v8372_v25 }
 0x995   : > { %7375 = vmatprep.subr.mxu1 %v8378_v43 }
 0x996   : > { %7376 = vmatpush3.msra.mxu1 %v8378_v43 }
 0x997   : > { %7377 = vmatprep.subr.mxu1 %v8384_v45 }
 0x998   : > { %7378 = vmatpush3.msra.mxu1 %v8384_v45 }
 0x999   : > { %7379 = vmatprep.subr.mxu1 %v8390_v34 }
 0x99a   : > { %7380 = vmatpush3.msra.mxu1 %v8390_v34 }
 0x99b   : > { %7381 = vmatprep.subr.mxu1 %v8396_v46 }
 0x99c   : > { %7382 = vmatpush3.msra.mxu1 %v8396_v46 }
 0x99d   : > { %7384 = vmatmul.mubr.msk.f32.vlgmr.msra.gmra.mxu1 %vm2836_vm2, %v3986_v18  ;;  %7405 = vmatprep.subr.mxu1 %v8356_v36  ;;  %v4425_v18 = vld [vmem:[#allocation7 + $0x220] sm:$0xff] }
 0x99e   : > { %7406 = vmatpush3.msra.mxu1 %v8356_v36  ;;  %7421 = vmatprep.mubr.msk.f32.mxu1 %vm2836_vm2, %v4161_v30  ;;  %v4424_v30 = vld [vmem:[#allocation7 + $0x218] sm:$0xff] }
 0x99f   : > { %7407 = vmatprep.subr.mxu1 %v8360_v26 }
 0x9a0   : > { %7408 = vmatpush3.msra.mxu1 %v8360_v26 }
 0x9a1   : > { %7409 = vmatprep.subr.mxu1 %v8366_v35 }
 0x9a2   : > { %7410 = vmatpush3.msra.mxu1 %v8366_v35 }
 0x9a3   : > { %7411 = vmatprep.subr.mxu1 %v8372_v25 }
 0x9a4   : > { %7412 = vmatpush3.msra.mxu1 %v8372_v25 }
 0x9a5   : > { %7413 = vmatprep.subr.mxu1 %v8378_v43 }
 0x9a6   : > { %7414 = vmatpush3.msra.mxu1 %v8378_v43 }
 0x9a7   : > { %7415 = vmatprep.subr.mxu1 %v8384_v45 }
 0x9a8   : > { %7416 = vmatpush3.msra.mxu1 %v8384_v45 }
 0x9a9   : > { %7417 = vmatprep.subr.mxu1 %v8390_v34 }
 0x9aa   : > { %7418 = vmatpush3.msra.mxu1 %v8390_v34 }
 0x9ab   : > { %7419 = vmatprep.subr.mxu1 %v8396_v46 }
 0x9ac   : > { %7420 = vmatpush3.msra.mxu1 %v8396_v46 }
 0x9ad   : > { %7422 = vmatmul.mubr.msk.f32.vlgmr.msra.gmra.mxu1 %vm2836_vm2, %v4162_v27  ;;  %7443 = vmatprep.subr.mxu1 %v8356_v36 }
 0x9ae   : > { %7444 = vmatpush3.msra.mxu1 %v8356_v36  ;;  %7459 = vmatprep.mubr.msk.f32.mxu1 %vm2836_vm2, %v4337_v21  ;;  %v3545_v36 = vld [vmem:[#allocation7 + $0xe0] sm:$0xff] }
 0x9af   : > { %7445 = vmatprep.subr.mxu1 %v8360_v26 }
 0x9b0   : > { %7446 = vmatpush3.msra.mxu1 %v8360_v26  ;;  %v3543_v26 = vld [vmem:[#allocation7 + $0xd0] sm:$0xff] }
 0x9b1   : > { %7447 = vmatprep.subr.mxu1 %v8366_v35 }
 0x9b2   : > { %7448 = vmatpush3.msra.mxu1 %v8366_v35  ;;  %v3541_v35 = vld [vmem:[#allocation7 + $0xc0] sm:$0xff] }
 0x9b3   : > { %7449 = vmatprep.subr.mxu1 %v8372_v25 }
 0x9b4   : > { %7450 = vmatpush3.msra.mxu1 %v8372_v25  ;;  %v3724_v25 = vld [vmem:[#allocation7 + $0x138] sm:$0xff] }
 0x9b5   : > { %7451 = vmatprep.subr.mxu1 %v8378_v43 }
 0x9b6   : > { %7452 = vmatpush3.msra.mxu1 %v8378_v43  ;;  %v3723_v43 = vld [vmem:[#allocation7 + $0x130] sm:$0xff] }
 0x9b7   : > { %7453 = vmatprep.subr.mxu1 %v8384_v45 }
 0x9b8   : > { %7454 = vmatpush3.msra.mxu1 %v8384_v45  ;;  %v3721_v45 = vld [vmem:[#allocation7 + $0x120] sm:$0xff] }
 0x9b9   : > { %7455 = vmatprep.subr.mxu1 %v8390_v34 }
 0x9ba   : > { %7456 = vmatpush3.msra.mxu1 %v8390_v34  ;;  %v3720_v34 = vld [vmem:[#allocation7 + $0x118] sm:$0xff] }
 0x9bb   : > { %7457 = vmatprep.subr.mxu1 %v8396_v46 }
 0x9bc   : > { %7458 = vmatpush3.msra.mxu1 %v8396_v46  ;;  %v3719_v46 = vld [vmem:[#allocation7 + $0x110] sm:$0xff] }
 0x9bd   : > { %7460 = vmatmul.mubr.msk.f32.vlgmr.msra.gmra.mxu1 %vm2836_vm2, %v4338_v4  ;;  %v4574_v4 = vld [vmem:[#allocation8 + $0x78] sm:$0xff] }
 0x9be   : > { %4594 = vmatprep.subr.mxu1 %v4574_v4 }
 0xa0d   : > { %v8536_v22 = vpop.f32.mrf.mxu1 }
 0xa0f   : > { %v8538_v63 = vpop.f32.mrf.mxu1 }
 0xa1d   : > { %v7233_v31 = vpop.f32.mrf.mxu1 }
 0xa1f   : > { %v3355_v29 = vpop.f32.mrf.mxu1 }
 0xa20   : > { %7250 = vmatprep.mubr.msk.f32.mxu0 %vm2836_vm2, %v3355_v29  ;;  %v4572_v29 = vld [vmem:[#allocation8 + $0x68] sm:$0xff] }
 0xa21   : > { %7251 = vmatmul.mubr.msk.f32.vlgmr.msra.gmra.mxu0 %vm2836_vm2, %v7233_v31  ;;  %v4573_v31 = vld [vmem:[#allocation8 + $0x70] sm:$0xff] }
 0xa22   : > { %7273 = vmatpush3.msra.mxu0 %v3548_v37  ;;  %v4421_v37 = vld [vmem:[#allocation7 + $0x200] sm:$0xff]  ;;  %4595 = vmatpush1.msra.mxu1 %v4573_v31 }
 0xa23   : > { %7274 = vmatprep.subr.mxu0 %v3547_v20  ;;  %4596 = vmatprep.subr.mxu1 %v4572_v29 }
 0xa24   : > { %7275 = vmatpush3.msra.mxu0 %v3547_v20  ;;  %v4684_v20 = vld [vmem:[#allocation8 + $0xf8] sm:$0xff] }
 0xa25   : > { %7276 = vmatprep.subr.mxu0 %v3546_v41 }
 0xa26   : > { %7277 = vmatpush3.msra.mxu0 %v3546_v41  ;;  %v4571_v41 = vld [vmem:[#allocation8 + $0x60] sm:$0xff] }
 0xa27   : > { %7278 = vmatprep.subr.mxu0 %v3545_v36  ;;  %4597 = vmatpush1.msra.mxu1 %v4571_v41 }
 0xa28   : > { %7279 = vmatpush3.msra.mxu0 %v3545_v36  ;;  %v4683_v36 = vld [vmem:[#allocation8 + $0xf0] sm:$0xff] }
 0xa29   : > { %7280 = vmatprep.subr.mxu0 %v3544_v13 }
 0xa2a   : > { %7281 = vmatpush3.msra.mxu0 %v3544_v13  ;;  %v4570_v13 = vld [vmem:[#allocation8 + $0x58] sm:$0xff] }
 0xa2b   : > { %7282 = vmatprep.subr.mxu0 %v3543_v26  ;;  %4598 = vmatprep.subr.mxu1 %v4570_v13 }
 0xa2c   : > { %7283 = vmatpush3.msra.mxu0 %v3543_v26  ;;  %v4682_v26 = vld [vmem:[#allocation8 + $0xe8] sm:$0xff] }
 0xa2d   : > { %v7271_v39 = vpop.f32.mrf.mxu1  ;;  %7284 = vmatprep.subr.mxu0 %v3542_v32 }
 0xa2e   : > { %7285 = vmatpush3.msra.mxu0 %v3542_v32  ;;  %v4569_v32 = vld [vmem:[#allocation8 + $0x50] sm:$0xff] }
 0xa2f   : > { %v3531_v42 = vpop.f32.mrf.mxu1  ;;  %7286 = vmatprep.subr.mxu0 %v3541_v35  ;;  %4599 = vmatpush1.msra.mxu1 %v4569_v32 }
 0xa30   : > { %7287 = vmatpush3.msra.mxu0 %v3541_v35  ;;  %7288 = vmatprep.mubr.msk.f32.mxu0 %vm2836_vm2, %v3531_v42  ;;  %v4681_v35 = vld [vmem:[#allocation8 + $0xe0] sm:$0xff] }
 0xa31   : > { %7289 = vmatmul.mubr.msk.f32.vlgmr.msra.gmra.mxu0 %vm2836_vm2, %v7271_v39  ;;  %7310 = vmatprep.subr.mxu0 %v3724_v25  ;;  %v4568_v39 = vld [vmem:[#allocation8 + $0x48] sm:$0xff]  ;;  %v4567_v42 = vld [vmem:[#allocation8 + $0x40] sm:$0xff] }
 0xa32   : > { %7311 = vmatpush3.msra.mxu0 %v3724_v25  ;;  %v4680_v25 = vld [vmem:[#allocation8 + $0xd8] sm:$0xff]  ;;  %4600 = vmatprep.subr.mxu1 %v4568_v39 }
 0xa33   : > { %7312 = vmatprep.subr.mxu0 %v3723_v43  ;;  %4601 = vmatpush1.msra.mxu1 %v4567_v42 }
 0xa34   : > { %7313 = vmatpush3.msra.mxu0 %v3723_v43  ;;  %v4679_v43 = vld [vmem:[#allocation8 + $0xd0] sm:$0xff] }
 0xa35   : > { %7314 = vmatprep.subr.mxu0 %v3722_v44 }
 0xa36   : > { %7315 = vmatpush3.msra.mxu0 %v3722_v44  ;;  %v4566_v44 = vld [vmem:[#allocation8 + $0x38] sm:$0xff] }
 0xa37   : > { %7316 = vmatprep.subr.mxu0 %v3721_v45  ;;  %4602 = vmatprep.subr.mxu1 %v4566_v44 }
 0xa38   : > { %7317 = vmatpush3.msra.mxu0 %v3721_v45  ;;  %v4678_v45 = vld [vmem:[#allocation8 + $0xc8] sm:$0xff] }
 0xa39   : > { %7318 = vmatprep.subr.mxu0 %v3720_v34 }
 0xa3a   : > { %7319 = vmatpush3.msra.mxu0 %v3720_v34  ;;  %v4565_v34 = vld [vmem:[#allocation8 + $0x30] sm:$0xff] }
 0xa3b   : > { %7320 = vmatprep.subr.mxu0 %v3719_v46  ;;  %4603 = vmatpush1.msra.mxu1 %v4565_v34 }
 0xa3c   : > { %7321 = vmatpush3.msra.mxu0 %v3719_v46  ;;  %v4677_v46 = vld [vmem:[#allocation8 + $0xc0] sm:$0xff] }
 0xa3d   : > { %v7309_v2 = vpop.f32.mrf.mxu1  ;;  %7322 = vmatprep.subr.mxu0 %v3718_v47 }
 0xa3e   : > { %7323 = vmatpush3.msra.mxu0 %v3718_v47  ;;  %v4564_v47 = vld [vmem:[#allocation8 + $0x28] sm:$0xff] }
 0xa3f   : > { %v3707_v50 = vpop.f32.mrf.mxu1  ;;  %7324 = vmatprep.subr.mxu0 %v3717_v48  ;;  %4604 = vmatprep.subr.mxu1 %v4564_v47 }
 0xa40   : > { %7325 = vmatpush3.msra.mxu0 %v3717_v48  ;;  %7326 = vmatprep.mubr.msk.f32.mxu0 %vm2836_vm2, %v3707_v50  ;;  %v4676_v48 = vld [vmem:[#allocation8 + $0xb8] sm:$0xff] }
 0xa41   : > { %7327 = vmatmul.mubr.msk.f32.vlgmr.msra.gmra.mxu0 %vm2836_vm2, %v7309_v2  ;;  %7348 = vmatprep.subr.mxu0 %v3900_v49  ;;  %v4563_v2 = vld [vmem:[#allocation8 + $0x20] sm:$0xff]  ;;  %v4562_v50 = vld [vmem:[#allocation8 + $0x18] sm:$0xff] }
 0xa42   : > { %7349 = vmatpush3.msra.mxu0 %v3900_v49  ;;  %v4675_v49 = vld [vmem:[#allocation8 + $0xb0] sm:$0xff]  ;;  %4605 = vmatpush1.msra.mxu1 %v4563_v2 }
 0xa43   : > { %7350 = vmatprep.subr.mxu0 %v3899_v51  ;;  %4606 = vmatprep.subr.mxu1 %v4562_v50 }
 0xa44   : > { %7351 = vmatpush3.msra.mxu0 %v3899_v51  ;;  %v4674_v51 = vld [vmem:[#allocation8 + $0xa8] sm:$0xff] }
 0xa45   : > { %7352 = vmatprep.subr.mxu0 %v3898_v52 }
 0xa46   : > { %7353 = vmatpush3.msra.mxu0 %v3898_v52  ;;  %v4561_v52 = vld [vmem:[#allocation8 + $0x10] sm:$0xff] }
 0xa47   : > { %7354 = vmatprep.subr.mxu0 %v3897_v53  ;;  %4607 = vmatpush1.msra.mxu1 %v4561_v52 }
 0xa48   : > { %7355 = vmatpush3.msra.mxu0 %v3897_v53  ;;  %v4673_v53 = vld [vmem:[#allocation8 + $0xa0] sm:$0xff] }
 0xa49   : > { %7356 = vmatprep.subr.mxu0 %v3896_v54 }
 0xa4a   : > { %7357 = vmatpush3.msra.mxu0 %v3896_v54  ;;  %v4560_v54 = vld [vmem:[#allocation8 + $0x8] sm:$0xff] }
 0xa4b   : > { %7358 = vmatprep.subr.mxu0 %v3895_v55  ;;  %4608 = vmatprep.subr.mxu1 %v4560_v54 }
 0xa4c   : > { %7359 = vmatpush3.msra.mxu0 %v3895_v55  ;;  %v4672_v55 = vld [vmem:[#allocation8 + $0x98] sm:$0xff] }
 0xa4d   : > { %v7347_v57 = vpop.f32.mrf.mxu1  ;;  %7360 = vmatprep.subr.mxu0 %v3894_v38 }
 0xa4e   : > { %7361 = vmatpush3.msra.mxu0 %v3894_v38  ;;  %v4559_v38 = vld [vmem:[#allocation8] sm:$0xff] }
 0xa4f   : > { %v3883_v59 = vpop.f32.mrf.mxu1  ;;  %7362 = vmatprep.subr.mxu0 %v3893_v56  ;;  %4609 = vmatpush1.msra.mxu1 %v4559_v38 }
 0xa50   : > { %7363 = vmatpush3.msra.mxu0 %v3893_v56  ;;  %7364 = vmatprep.mubr.msk.f32.mxu0 %vm2836_vm2, %v3883_v59  ;;  %v4671_v56 = vld [vmem:[#allocation8 + $0x90] sm:$0xff]  ;;  %v7798_v59 = vmov 0.0  }
 0xa51   : > { %7365 = vmatmul.mubr.msk.f32.vlgmr.msra.gmra.mxu0 %vm2836_vm2, %v7347_v57  ;;  %7386 = vmatprep.subr.mxu0 %v4076_v58  ;;  %v4670_v57 = vld [vmem:[#allocation8 + $0x88] sm:$0xff] }
 0xa52   : > { %7387 = vmatpush3.msra.mxu0 %v4076_v58  ;;  %v4794_v58 = vld [vmem:[#allocation8 + $0x178] sm:$0xff]  ;;  %4642 = vmatprep.mubr.f32.mxu1 %v7798_v59 }
 0xa53   : > { %7388 = vmatprep.subr.mxu0 %v4075_v61  ;;  %4814 = vmatprep.subr.mxu1 %v4794_v58 }
 0xa54   : > { %7389 = vmatpush3.msra.mxu0 %v4075_v61  ;;  %v4669_v61 = vld [vmem:[#allocation8 + $0x80] sm:$0xff] }
 0xa55   : > { %7390 = vmatprep.subr.mxu0 %v4074_v62 }
 0xa56   : > { %7391 = vmatpush3.msra.mxu0 %v4074_v62  ;;  %v4904_v62 = vld [vmem:[#allocation8 + $0x1f8] sm:$0xff] }
 0xa57   : > { %7392 = vmatprep.subr.mxu0 %v4073_v40 }
 0xa58   : > { %7393 = vmatpush3.msra.mxu0 %v4073_v40  ;;  %v7214_v40 = vpop.f32.mrf.mxu0 }
 0xa59   : > { %7394 = vmatprep.subr.mxu0 %v4072_v1 }
 0xa5a   : > { %7395 = vmatpush3.msra.mxu0 %v4072_v1  ;;  %v3271_v1 = vpop.f32.mrf.mxu0 }
 0xa5b   : > { %7396 = vmatprep.subr.mxu0 %v4071_v60 }
 0xa5c   : > { %7397 = vmatpush3.msra.mxu0 %v4071_v60 }
 0xa5d   : > { %v7385_v10 = vpop.f32.mrf.mxu1  ;;  %7398 = vmatprep.subr.mxu0 %v4070_v3 }
 0xa5e   : > { %7399 = vmatpush3.msra.mxu0 %v4070_v3 }
 0xa5f   : > { %v4059_v12 = vpop.f32.mrf.mxu1  ;;  %7400 = vmatprep.subr.mxu0 %v4069_v7 }
 0xa60   : > { %7401 = vmatpush3.msra.mxu0 %v4069_v7  ;;  %7402 = vmatprep.mubr.msk.f32.mxu0 %vm2836_vm2, %v4059_v12 }
 0xa61   : > { %7403 = vmatmul.mubr.msk.f32.vlgmr.msra.gmra.mxu0 %vm2836_vm2, %v7385_v10  ;;  %7424 = vmatprep.subr.mxu0 %v4252_v11 }
 0xa62   : > { %7425 = vmatpush3.msra.mxu0 %v4252_v11 }
 0xa63   : > { %7426 = vmatprep.subr.mxu0 %v4251_v17 }
 0xa64   : > { %7427 = vmatpush3.msra.mxu0 %v4251_v17 }
 0xa65   : > { %7428 = vmatprep.subr.mxu0 %v4250_v24 }
 0xa66   : > { %7429 = vmatpush3.msra.mxu0 %v4250_v24 }
 0xa67   : > { %7430 = vmatprep.subr.mxu0 %v4249_v28 }
 0xa68   : > { %7431 = vmatpush3.msra.mxu0 %v4249_v28  ;;  %v3277_v28 = vadd.f32 %v7214_v40, %v8536_v22  ;;  %v6696_v22 = vld [vmem:[%s8705_s6] ss:$0 sm:$0xff] }
 0xa69   : > { %7432 = vmatprep.subr.mxu0 %v4248_v16 }
 0xa6a   : > { %7433 = vmatpush3.msra.mxu0 %v4248_v16 }
 0xa6b   : > { %7434 = vmatprep.subr.mxu0 %v4247_v6 }
 0xa6c   : > { %7435 = vmatpush3.msra.mxu0 %v4247_v6  ;;  %v3272_v6 = vadd.f32 %v3271_v1, %v8538_v63 }
 0xa6d   : > { %v7423_v33 = vpop.f32.mrf.mxu1  ;;  %7436 = vmatprep.subr.mxu0 %v4246_v5 }
 0xa6e   : > { %7437 = vmatpush3.msra.mxu0 %v4246_v5 }
 0xa6f   : > { %v4235_v9 = vpop.f32.mrf.mxu1  ;;  %7438 = vmatprep.subr.mxu0 %v4245_v23 }
 0xa70   : > { %7439 = vmatpush3.msra.mxu0 %v4245_v23  ;;  %7440 = vmatprep.mubr.msk.f32.mxu0 %vm2836_vm2, %v4235_v9 }
 0xa71   : > { %7441 = vmatmul.mubr.msk.f32.vlgmr.msra.gmra.mxu0 %vm2836_vm2, %v7423_v33  ;;  %7462 = vmatprep.subr.mxu0 %v4428_v19 }
 0xa72   : > { %7463 = vmatpush3.msra.mxu0 %v4428_v19 }
 0xa73   : > { %7464 = vmatprep.subr.mxu0 %v4427_v0 }
 0xa74   : > { %7465 = vmatpush3.msra.mxu0 %v4427_v0 }
 0xa75   : > { %7466 = vmatprep.subr.mxu0 %v4426_v8 }
 0xa76   : > { %7467 = vmatpush3.msra.mxu0 %v4426_v8 }
 0xa77   : > { %7468 = vmatprep.subr.mxu0 %v4425_v18 }
 0xa78   : > { %7469 = vmatpush3.msra.mxu0 %v4425_v18 }
 0xa79   : > { %7470 = vmatprep.subr.mxu0 %v4424_v30 }
 0xa7a   : > { %7471 = vmatpush3.msra.mxu0 %v4424_v30 }
 0xa7b   : > { %7472 = vmatprep.subr.mxu0 %v4423_v14 }
 0xa7c   : > { %7473 = vmatpush3.msra.mxu0 %v4423_v14 }
 0xa7d   : > { %v7461_v27 = vpop.f32.mrf.mxu1  ;;  %7474 = vmatprep.subr.mxu0 %v4422_v15 }
 0xa7e   : > { %7475 = vmatpush3.msra.mxu0 %v4422_v15 }
 0xa7f   : > { %v4411_v21 = vpop.f32.mrf.mxu1  ;;  %7476 = vmatprep.subr.mxu0 %v4421_v37 }
 0xa80   : > { %7477 = vmatpush3.msra.mxu0 %v4421_v37  ;;  %7478 = vmatprep.mubr.msk.f32.mxu0 %vm2836_vm2, %v4411_v21 }
 0xa81   : > { %7479 = vmatmul.mubr.msk.f32.vlgmr.msra.gmra.mxu0 %vm2836_vm2, %v7461_v27  ;;  %4704 = vmatprep.subr.mxu0 %v4684_v20 }
 0xa82   : > { %4705 = vmatpush1.msra.mxu0 %v4683_v36  ;;  %4752 = vmatprep.mubr.f32.mxu0 %v7798_v59 }
 0xa83   : > { %4706 = vmatprep.subr.mxu0 %v4682_v26 }
 0xa84   : > { %4707 = vmatpush1.msra.mxu0 %v4681_v35 }
 0xa85   : > { %4708 = vmatprep.subr.mxu0 %v4680_v25 }
 0xa86   : > { %4709 = vmatpush1.msra.mxu0 %v4679_v43 }
 0xa87   : > { %4710 = vmatprep.subr.mxu0 %v4678_v45 }
 0xa88   : > { %4711 = vmatpush1.msra.mxu0 %v4677_v46 }
 0xa89   : > { %4712 = vmatprep.subr.mxu0 %v4676_v48 }
 0xa8a   : > { %4713 = vmatpush1.msra.mxu0 %v4675_v49 }
 0xa8b   : > { %4714 = vmatprep.subr.mxu0 %v4674_v51 }
 0xa8c   : > { %4715 = vmatpush1.msra.mxu0 %v4673_v53 }
 0xa8d   : > { %4716 = vmatprep.subr.mxu0 %v4672_v55 }
 0xa8e   : > { %4717 = vmatpush1.msra.mxu0 %v4671_v56 }
 0xa8f   : > { %4718 = vmatprep.subr.mxu0 %v4670_v57 }
 0xa90   : > { %4719 = vmatpush1.msra.mxu0 %v4669_v61 }
 0xa91   : > { %4924 = vmatprep.subr.mxu0 %v4904_v62 }
 0xae1   : > { %v7252_v60 = vpop.f32.mrf.mxu0 }
 0xae2   : > { %v3455_v5 = vadd.f32 %v7252_v60, %v3277_v28  ;;  %v4902_v28 = vld [vmem:[#allocation8 + $0x1e8] sm:$0xff] }
 0xae3   : > { %v3445_v3 = vpop.f32.mrf.mxu0 }
 0xae4   : > { %v3454_v23 = vadd.f32 %v3445_v3, %v3272_v6  ;;  %v4793_v3 = vld [vmem:[#allocation8 + $0x170] sm:$0xff]  ;;  %v4901_v6 = vld [vmem:[#allocation8 + $0x1e0] sm:$0xff] }
 0xaf1   : > { %v7290_v7 = vpop.f32.mrf.mxu0 }
 0xaf2   : > { %v3631_v33 = vadd.f32 %v7290_v7, %v3455_v5  ;;  %v4788_v5 = vld [vmem:[#allocation8 + $0x148] sm:$0xff] }
 0xaf3   : > { %v3621_v10 = vpop.f32.mrf.mxu0 }
 0xaf4   : > { %v3630_v9 = vadd.f32 %v3621_v10, %v3454_v23  ;;  %v4792_v10 = vld [vmem:[#allocation8 + $0x168] sm:$0xff]  ;;  %v4900_v23 = vld [vmem:[#allocation8 + $0x1d8] sm:$0xff] }
 0xb01   : > { %v7328_v11 = vpop.f32.mrf.mxu0 }
 0xb02   : > { %v3807_v0 = vadd.f32 %v7328_v11, %v3631_v33  ;;  %v4787_v33 = vld [vmem:[#allocation8 + $0x140] sm:$0xff] }
 0xb03   : > { %v3797_v12 = vpop.f32.mrf.mxu0 }
 0xb04   : > { %v3806_v18 = vadd.f32 %v3797_v12, %v3630_v9  ;;  %v4791_v12 = vld [vmem:[#allocation8 + $0x160] sm:$0xff]  ;;  %v4786_v9 = vld [vmem:[#allocation8 + $0x138] sm:$0xff] }
 0xb11   : > { %v7366_v17 = vpop.f32.mrf.mxu0 }
 0xb12   : > { %v3983_v30 = vadd.f32 %v7366_v17, %v3807_v0  ;;  %v4903_v17 = vld [vmem:[#allocation8 + $0x1f0] sm:$0xff]  ;;  %v4898_v0 = vld [vmem:[#allocation8 + $0x1c8] sm:$0xff] }
 0xb13   : > { %v3973_v24 = vpop.f32.mrf.mxu0 }
 0xb14   : > { %v3982_v14 = vadd.f32 %v3973_v24, %v3806_v18  ;;  %v4790_v24 = vld [vmem:[#allocation8 + $0x158] sm:$0xff]  ;;  %v4897_v18 = vld [vmem:[#allocation8 + $0x1c0] sm:$0xff] }
 0xb21   : > { %v7404_v16 = vpop.f32.mrf.mxu0 }
 0xb22   : > { %v4159_v15 = vadd.f32 %v7404_v16, %v3983_v30  ;;  %v4789_v16 = vld [vmem:[#allocation8 + $0x150] sm:$0xff]  ;;  %v4784_v30 = vld [vmem:[#allocation8 + $0x128] sm:$0xff] }
 0xb23   : > { %v4149_v19 = vpop.f32.mrf.mxu0 }
 0xb24   : > { %v4158_v27 = vadd.f32 %v4149_v19, %v3982_v14  ;;  %v4899_v19 = vld [vmem:[#allocation8 + $0x1d0] sm:$0xff]  ;;  %v4896_v14 = vld [vmem:[#allocation8 + $0x1b8] sm:$0xff] }
 0xb31   : > { %v7442_v8 = vpop.f32.mrf.mxu0 }
 0xb32   : > { %v4335_v21 = vadd.f32 %v7442_v8, %v4159_v15  ;;  %v4785_v8 = vld [vmem:[#allocation8 + $0x130] sm:$0xff]  ;;  %v4783_v15 = vld [vmem:[#allocation8 + $0x120] sm:$0xff] }
 0xb33   : > { %v4325_v37 = vpop.f32.mrf.mxu0 }
 0xb34   : > { %v4334_v63 = vadd.f32 %v4325_v37, %v4158_v27  ;;  %v4895_v37 = vld [vmem:[#allocation8 + $0x1b0] sm:$0xff]  ;;  %v4782_v27 = vld [vmem:[#allocation8 + $0x118] sm:$0xff] }
 0xb41   : > { %v7480_v4 = vpop.f32.mrf.mxu0 }
 0xb42   : > { %v4511_v31 = vadd.f32 %v7480_v4, %v4335_v21  ;;  %v4894_v21 = vld [vmem:[#allocation8 + $0x1a8] sm:$0xff]  ;;  %v4781_v4 = vld [vmem:[#allocation8 + $0x110] sm:$0xff] }
 0xb43   : > { %v4501_v29 = vpop.f32.mrf.mxu0 }
 0xb44   : > { %v4520_v20 = vadd.f32 %v6696_v22, %v4511_v31  ;;  %v4510_v41 = vadd.f32 %v4501_v29, %v4334_v63  ;;  %v4780_v63 = vld [vmem:[#allocation8 + $0x108] sm:$0xff]  ;;  %v4892_v31 = vld [vmem:[#allocation8 + $0x198] sm:$0xff]  ;;  %v4779_v29 = vld [vmem:[#allocation8 + $0x100] sm:$0xff] }
 0xb46   : > { %v4533_v36 = vmul.f32 %v4520_v20, %v4520_v20  ;;  %v4519_v13 = vadd.f32 %v6696_v22, %v4510_v41  ;;  %v4522_v26 = vsel %vm2836_vm2, %v4520_v20, 0.0  ;;  %v4893_v22 = vld [vmem:[#allocation8 + $0x1a0] sm:$0xff]  ;;  %v4890_v41 = vld [vmem:[#allocation8 + $0x188] sm:$0xff] }
 0xb48   : > { %v4521_v32 = vsel %vm2836_vm2, %v4519_v13, 0.0  ;;  %v4532_v35 = vmul.f32 %v4519_v13, %v4519_v13  ;;  %v4535_v25 = vsel %vm2836_vm2, %v4533_v36, 0.0 }
 0xb49   : > { %v4523_v39 = vadd.f32 %v4522_v26, %v4521_v32  ;;  %v4889_v26 = vld [vmem:[#allocation8 + $0x180] sm:$0xff]  ;;  %v5013_v32 = vld [vmem:[#allocation8 + $0x270] sm:$0xff] }
 0xb4a   : > { %v4534_v42 = vsel %vm2836_vm2, %v4532_v35, 0.0  ;;  %v5012_v35 = vld [vmem:[#allocation8 + $0x268] sm:$0xff] }
 0xb4b   : > { %v4524_v43 = vrot.slane %v4523_v39, 4  ;;  %v4536_v44 = vadd.f32 %v4535_v25, %v4534_v42  ;;  %v5124_v25 = vld [vmem:[#allocation8 + $0x2f8] sm:$0xff]  ;;  %v5011_v42 = vld [vmem:[#allocation8 + $0x260] sm:$0xff] }
 0xb4d   : > { %v4525_v45 = vadd.f32 %v4524_v43, %v4523_v39  ;;  %v4537_v34 = vrot.slane %v4536_v44, 4  ;;  %v5123_v43 = vld [vmem:[#allocation8 + $0x2f0] sm:$0xff] }
 0xb4f   : > { %v4526_v46 = vrot.slane %v4525_v45, 2  ;;  %v4538_v47 = vadd.f32 %v4537_v34, %v4536_v44  ;;  %v5010_v44 = vld [vmem:[#allocation8 + $0x258] sm:$0xff]  ;;  %v5009_v34 = vld [vmem:[#allocation8 + $0x250] sm:$0xff] }
 0xb51   : > { %v4527_v48 = vadd.f32 %v4526_v46, %v4525_v45  ;;  %v4539_v2 = vrot.slane %v4538_v47, 2  ;;  %v5122_v45 = vld [vmem:[#allocation8 + $0x2e8] sm:$0xff]  ;;  %v5121_v46 = vld [vmem:[#allocation8 + $0x2e0] sm:$0xff] }
 0xb53   : > { %v4528_v49 = vrot.slane %v4527_v48, 1  ;;  %v4540_v50 = vadd.f32 %v4539_v2, %v4538_v47  ;;  %v5008_v47 = vld [vmem:[#allocation8 + $0x248] sm:$0xff]  ;;  %v5007_v2 = vld [vmem:[#allocation8 + $0x240] sm:$0xff] }
 0xb55   : > { %v4529_v51 = vadd.f32 %v4528_v49, %v4527_v48  ;;  %v4541_v52 = vrot.slane %v4540_v50, 1  ;;  %v5120_v48 = vld [vmem:[#allocation8 + $0x2d8] sm:$0xff]  ;;  %v5119_v49 = vld [vmem:[#allocation8 + $0x2d0] sm:$0xff] }
 0xb57   : > { %v4531_v53 = vmul.f32 0.0625, %v4529_v51  ;;  %v4542_v54 = vadd.f32 %v4541_v52, %v4540_v50  ;;  %v5006_v50 = vld [vmem:[#allocation8 + $0x238] sm:$0xff]  ;;  %v5118_v51 = vld [vmem:[#allocation8 + $0x2c8] sm:$0xff]  ;;  %v5005_v52 = vld [vmem:[#allocation8 + $0x230] sm:$0xff] }
 0xb59   : > { %v4543_v55 = vmul.f32 0.0625, %v4542_v54  ;;  %v4544_v38 = vmul.f32 %v4531_v53, %v4531_v53  ;;  %v4546_v56 = vsub.f32 %v4519_v13, %v4531_v53  ;;  %v4547_v57 = vsub.f32 %v4520_v20, %v4531_v53  ;;  %v4891_v20 = vld [vmem:[#allocation8 + $0x190] sm:$0xff]  ;;  %v5014_v13 = vld [vmem:[#allocation8 + $0x278] sm:$0xff]  ;;  %v5117_v53 = vld [vmem:[#allocation8 + $0x2c0] sm:$0xff] }
 0xb5a   : > { %v5004_v54 = vld [vmem:[#allocation8 + $0x228] sm:$0xff] }
 0xb5b   : > { %v4545_v58 = vsub.f32 %v4543_v55, %v4544_v38  ;;  %v5116_v55 = vld [vmem:[#allocation8 + $0x2b8] sm:$0xff]  ;;  %v5003_v38 = vld [vmem:[#allocation8 + $0x220] sm:$0xff] }
 0xb5d   : > { %v4548_v61 = vadd.f32 1e-05, %v4545_v58  ;;  %v5114_v58 = vld [vmem:[#allocation8 + $0x2a8] sm:$0xff] }
 0xb5f   : > { %7582 = vrsqrt.f32 %v4548_v61  ;;  %v5001_v61 = vld [vmem:[#allocation8 + $0x210] sm:$0xff] }
 0xb6c   : > { %v7583_v62 = vpop.eup %7582 }
 0xb6d   : > { %v4550_v40 = vmul.f32 %v7583_v62, %v4546_v56  ;;  %v8565_v1 = vmul.f32 %v7583_v62, %v4547_v57  ;;  %v5115_v56 = vld [vmem:[#allocation8 + $0x2b0] sm:$0xff]  ;;  %v5002_v57 = vld [vmem:[#allocation8 + $0x218] sm:$0xff]  ;;  %v5113_v62 = vld [vmem:[#allocation8 + $0x2a0] sm:$0xff] }
 0xb6f   : > { %vm4552_vm11 = vcmp.ge.f32.partialorder %v4550_v40, 0.0  ;;  %v4554_v60 = vmul.f32 0.2, %v4550_v40  ;;  %vm4553_vm12 = vcmp.ge.f32.partialorder %v8565_v1, 0.0 }
 0xb71   : > { %v8567_v7 = vsel %vm4552_vm11, %v4550_v40, %v4554_v60  ;;  %v5000_v40 = vld [vmem:[#allocation8 + $0x208] sm:$0xff]  ;;  %v5112_v60 = vld [vmem:[#allocation8 + $0x298] sm:$0xff] }
 0xb72   : > { %6697 = vmatmul.mubr.msk.f32.vlgmr.msra.gmra.mxu1 %vm2836_vm2, %v8567_v7  ;;  %v4685_v11 = vrot.slane %v8567_v7, 1  ;;  %v4795_v36 = vrot.slane %v8567_v7, 2  ;;  %v4905_v39 = vrot.slane %v8567_v7, 3 }
 0xb73   : > { %4815 = vmatpush1.msra.mxu1 %v4793_v3  ;;  %4862 = vmatprep.mubr.f32.mxu1 %v7798_v59  ;;  %v4999_v3 = vld [vmem:[#allocation8 + $0x200] sm:$0xff] }
 0xb74   : > { %4816 = vmatprep.subr.mxu1 %v4792_v10  ;;  %6698 = vmatmul.mubr.msk.f32.vlgmr.msra.gmra.mxu0 %vm2836_vm2, %v4685_v11  ;;  %v5111_v10 = vld [vmem:[#allocation8 + $0x290] sm:$0xff]  ;;  %v5110_v11 = vld [vmem:[#allocation8 + $0x288] sm:$0xff] }
 0xb75   : > { %4817 = vmatpush1.msra.mxu1 %v4791_v12  ;;  %4925 = vmatpush1.msra.mxu0 %v4903_v17  ;;  %v5015_v12 = vrot.slane %v8567_v7, 4  ;;  %v5234_v17 = vld [vmem:[#allocation8 + $0x378] sm:$0xff] }
 0xb76   : > { %4818 = vmatprep.subr.mxu1 %v4790_v24  ;;  %4926 = vmatprep.subr.mxu0 %v4902_v28  ;;  %v5109_v24 = vld [vmem:[#allocation8 + $0x280] sm:$0xff]  ;;  %v5233_v28 = vld [vmem:[#allocation8 + $0x370] sm:$0xff] }
 0xb77   : > { %4819 = vmatpush1.msra.mxu1 %v4789_v16  ;;  %4927 = vmatpush1.msra.mxu0 %v4901_v6  ;;  %v5232_v16 = vld [vmem:[#allocation8 + $0x368] sm:$0xff]  ;;  %v5125_v6 = vrot.slane %v8567_v7, 5 }
 0xb78   : > { %4820 = vmatprep.subr.mxu1 %v4788_v5  ;;  %4928 = vmatprep.subr.mxu0 %v4900_v23  ;;  %v5344_v5 = vld [vmem:[#allocation8 + $0x3f8] sm:$0xff]  ;;  %v5231_v23 = vld [vmem:[#allocation8 + $0x360] sm:$0xff] }
 0xb79   : > { %4821 = vmatpush1.msra.mxu1 %v4787_v33  ;;  %4929 = vmatpush1.msra.mxu0 %v4899_v19  ;;  %v5343_v33 = vld [vmem:[#allocation8 + $0x3f0] sm:$0xff]  ;;  %v5230_v19 = vld [vmem:[#allocation8 + $0x358] sm:$0xff] }
 0xb7a   : > { %4822 = vmatprep.subr.mxu1 %v4786_v9  ;;  %4930 = vmatprep.subr.mxu0 %v4898_v0  ;;  %v5342_v9 = vld [vmem:[#allocation8 + $0x3e8] sm:$0xff]  ;;  %v5229_v0 = vld [vmem:[#allocation8 + $0x350] sm:$0xff] }
 0xb7b   : > { %4823 = vmatpush1.msra.mxu1 %v4785_v8  ;;  %4931 = vmatpush1.msra.mxu0 %v4897_v18  ;;  %v5341_v8 = vld [vmem:[#allocation8 + $0x3e0] sm:$0xff]  ;;  %v5228_v18 = vld [vmem:[#allocation8 + $0x348] sm:$0xff] }
 0xb7c   : > { %4824 = vmatprep.subr.mxu1 %v4784_v30  ;;  %4932 = vmatprep.subr.mxu0 %v4896_v14  ;;  %v5340_v30 = vld [vmem:[#allocation8 + $0x3d8] sm:$0xff]  ;;  %v5227_v14 = vld [vmem:[#allocation8 + $0x340] sm:$0xff] }
 0xb7d   : > { %4825 = vmatpush1.msra.mxu1 %v4783_v15  ;;  %4933 = vmatpush1.msra.mxu0 %v4895_v37  ;;  %v5339_v15 = vld [vmem:[#allocation8 + $0x3d0] sm:$0xff]  ;;  %v5226_v37 = vld [vmem:[#allocation8 + $0x338] sm:$0xff] }
 0xb7e   : > { %4826 = vmatprep.subr.mxu1 %v4782_v27  ;;  %4934 = vmatprep.subr.mxu0 %v4894_v21  ;;  %v5338_v27 = vld [vmem:[#allocation8 + $0x3c8] sm:$0xff]  ;;  %v5225_v21 = vld [vmem:[#allocation8 + $0x330] sm:$0xff] }
 0xb7f   : > { %4827 = vmatpush1.msra.mxu1 %v4781_v4  ;;  %4935 = vmatpush1.msra.mxu0 %v4893_v22  ;;  %v5337_v4 = vld [vmem:[#allocation8 + $0x3c0] sm:$0xff]  ;;  %v5224_v22 = vld [vmem:[#allocation8 + $0x328] sm:$0xff] }
 0xb80   : > { %4828 = vmatprep.subr.mxu1 %v4780_v63  ;;  %4936 = vmatprep.subr.mxu0 %v4892_v31  ;;  %v5336_v63 = vld [vmem:[#allocation8 + $0x3b8] sm:$0xff]  ;;  %v5223_v31 = vld [vmem:[#allocation8 + $0x320] sm:$0xff] }
 0xb81   : > { %4829 = vmatpush1.msra.mxu1 %v4779_v29  ;;  %4937 = vmatpush1.msra.mxu0 %v4891_v20  ;;  %v5335_v29 = vld [vmem:[#allocation8 + $0x3b0] sm:$0xff]  ;;  %v5222_v20 = vld [vmem:[#allocation8 + $0x318] sm:$0xff] }
 0xb82   : > { %6699 = vmatmul.mubr.msk.f32.vlgmr.msra.gmra.mxu1 %vm2836_vm2, %v4795_v36  ;;  %4938 = vmatprep.subr.mxu0 %v4890_v41  ;;  %v5334_v41 = vld [vmem:[#allocation8 + $0x3a8] sm:$0xff]  ;;  %v5221_v36 = vld [vmem:[#allocation8 + $0x310] sm:$0xff] }
 0xb83   : > { %5034 = vmatprep.subr.mxu1 %v5014_v13  ;;  %4939 = vmatpush1.msra.mxu0 %v4889_v26  ;;  %v5333_v13 = vld [vmem:[#allocation8 + $0x3a0] sm:$0xff]  ;;  %v5220_v26 = vld [vmem:[#allocation8 + $0x308] sm:$0xff] }
 0xb84   : > { %4972 = vmatprep.mubr.f32.mxu0 %v7798_v59  ;;  %5035 = vmatpush1.msra.mxu1 %v5013_v32  ;;  %v5332_v32 = vld [vmem:[#allocation8 + $0x398] sm:$0xff] }
 0xb85   : > { %6700 = vmatmul.mubr.msk.f32.vlgmr.msra.gmra.mxu0 %vm2836_vm2, %v4905_v39  ;;  %5036 = vmatprep.subr.mxu1 %v5012_v35  ;;  %v5219_v35 = vld [vmem:[#allocation8 + $0x300] sm:$0xff]  ;;  %v5331_v39 = vld [vmem:[#allocation8 + $0x390] sm:$0xff] }
 0xb86   : > { %5144 = vmatprep.subr.mxu0 %v5124_v25  ;;  %5037 = vmatpush1.msra.mxu1 %v5011_v42  ;;  %v5330_v25 = vld [vmem:[#allocation8 + $0x388] sm:$0xff]  ;;  %v5235_v42 = vrot.slane %v8567_v7, 6 }
 0xb87   : > { %5145 = vmatpush1.msra.mxu0 %v5123_v43  ;;  %5038 = vmatprep.subr.mxu1 %v5010_v44  ;;  %v5454_v43 = vld [vmem:[#allocation8 + $0x478] sm:$0xff]  ;;  %v5329_v44 = vld [vmem:[#allocation8 + $0x380] sm:$0xff] }
 0xb88   : > { %5146 = vmatprep.subr.mxu0 %v5122_v45  ;;  %5039 = vmatpush1.msra.mxu1 %v5009_v34  ;;  %v5453_v45 = vld [vmem:[#allocation8 + $0x470] sm:$0xff]  ;;  %v5452_v34 = vld [vmem:[#allocation8 + $0x468] sm:$0xff] }
 0xb89   : > { %5147 = vmatpush1.msra.mxu0 %v5121_v46  ;;  %5040 = vmatprep.subr.mxu1 %v5008_v47  ;;  %v5345_v46 = vrot.slane %v8567_v7, 7  ;;  %v5564_v47 = vld [vmem:[#allocation8 + $0x4f8] sm:$0xff]  ;;  %v5447_v7 = vld [vmem:[#allocation8 + $0x440] sm:$0xff] }
 0xb8a   : > { %5148 = vmatprep.subr.mxu0 %v5120_v48  ;;  %5041 = vmatpush1.msra.mxu1 %v5007_v2  ;;  %v5451_v48 = vld [vmem:[#allocation8 + $0x460] sm:$0xff]  ;;  %v5563_v2 = vld [vmem:[#allocation8 + $0x4f0] sm:$0xff] }
 0xb8b   : > { %5149 = vmatpush1.msra.mxu0 %v5119_v49  ;;  %5042 = vmatprep.subr.mxu1 %v5006_v50  ;;  %v5450_v49 = vld [vmem:[#allocation8 + $0x458] sm:$0xff]  ;;  %v5562_v50 = vld [vmem:[#allocation8 + $0x4e8] sm:$0xff] }
 0xb8c   : > { %5150 = vmatprep.subr.mxu0 %v5118_v51  ;;  %5043 = vmatpush1.msra.mxu1 %v5005_v52  ;;  %v5449_v51 = vld [vmem:[#allocation8 + $0x450] sm:$0xff]  ;;  %v5561_v52 = vld [vmem:[#allocation8 + $0x4e0] sm:$0xff] }
 0xb8d   : > { %5151 = vmatpush1.msra.mxu0 %v5117_v53  ;;  %5044 = vmatprep.subr.mxu1 %v5004_v54  ;;  %v5448_v53 = vld [vmem:[#allocation8 + $0x448] sm:$0xff]  ;;  %v5560_v54 = vld [vmem:[#allocation8 + $0x4d8] sm:$0xff] }
 0xb8e   : > { %5152 = vmatprep.subr.mxu0 %v5116_v55  ;;  %5045 = vmatpush1.msra.mxu1 %v5003_v38  ;;  %v5559_v55 = vld [vmem:[#allocation8 + $0x4d0] sm:$0xff]  ;;  %v5446_v38 = vld [vmem:[#allocation8 + $0x438] sm:$0xff] }
 0xb8f   : > { %5153 = vmatpush1.msra.mxu0 %v5115_v56  ;;  %5046 = vmatprep.subr.mxu1 %v5002_v57  ;;  %v5558_v56 = vld [vmem:[#allocation8 + $0x4c8] sm:$0xff]  ;;  %v5445_v57 = vld [vmem:[#allocation8 + $0x430] sm:$0xff] }
 0xb90   : > { %5154 = vmatprep.subr.mxu0 %v5114_v58  ;;  %5047 = vmatpush1.msra.mxu1 %v5001_v61  ;;  %v5557_v58 = vld [vmem:[#allocation8 + $0x4c0] sm:$0xff]  ;;  %v5444_v61 = vld [vmem:[#allocation8 + $0x428] sm:$0xff] }
 0xb91   : > { %5155 = vmatpush1.msra.mxu0 %v5113_v62  ;;  %5048 = vmatprep.subr.mxu1 %v5000_v40  ;;  %v5556_v62 = vld [vmem:[#allocation8 + $0x4b8] sm:$0xff]  ;;  %v5443_v40 = vld [vmem:[#allocation8 + $0x420] sm:$0xff] }
 0xb92   : > { %5156 = vmatprep.subr.mxu0 %v5112_v60  ;;  %5049 = vmatpush1.msra.mxu1 %v4999_v3  ;;  %v5555_v60 = vld [vmem:[#allocation8 + $0x4b0] sm:$0xff]  ;;  %v5442_v3 = vld [vmem:[#allocation8 + $0x418] sm:$0xff] }
 0xb93   : > { %5082 = vmatprep.mubr.f32.mxu1 %v7798_v59  ;;  %5157 = vmatpush1.msra.mxu0 %v5111_v10  ;;  %v5554_v10 = vld [vmem:[#allocation8 + $0x4a8] sm:$0xff] }
 0xb94   : > { %6701 = vmatmul.mubr.msk.f32.vlgmr.msra.gmra.mxu1 %vm2836_vm2, %v5015_v12  ;;  %5158 = vmatprep.subr.mxu0 %v5110_v11  ;;  %v5441_v11 = vld [vmem:[#allocation8 + $0x410] sm:$0xff]  ;;  %v5553_v12 = vld [vmem:[#allocation8 + $0x4a0] sm:$0xff] }
 0xb95   : > { %5254 = vmatprep.subr.mxu1 %v5234_v17  ;;  %5159 = vmatpush1.msra.mxu0 %v5109_v24  ;;  %v5440_v17 = vld [vmem:[#allocation8 + $0x408] sm:$0xff]  ;;  %v4555_v24 = vmul.f32 0.2, %v8565_v1 }
 0xb96   : > { %5192 = vmatprep.mubr.f32.mxu0 %v7798_v59  ;;  %5255 = vmatpush1.msra.mxu1 %v5233_v28  ;;  %v5552_v28 = vld [vmem:[#allocation8 + $0x498] sm:$0xff] }
 0xb97   : > { %6702 = vmatmul.mubr.msk.f32.vlgmr.msra.gmra.mxu0 %vm2836_vm2, %v5125_v6  ;;  %5256 = vmatprep.subr.mxu1 %v5232_v16  ;;  %v5439_v16 = vld [vmem:[#allocation8 + $0x400] sm:$0xff]  ;;  %v5551_v6 = vld [vmem:[#allocation8 + $0x490] sm:$0xff] }
 0xb98   : > { %5364 = vmatprep.subr.mxu0 %v5344_v5  ;;  %5257 = vmatpush1.msra.mxu1 %v5231_v23  ;;  %v5550_v5 = vld [vmem:[#allocation8 + $0x488] sm:$0xff]  ;;  %v8594_v23 = vsel %vm4553_vm12, %v8565_v1, %v4555_v24  ;;  %v5783_v1 = vld [vmem:[#allocation8 + $0x5f0] sm:$0xff] }
 0xb99   : > { %5365 = vmatpush1.msra.mxu0 %v5343_v33  ;;  %5258 = vmatprep.subr.mxu1 %v5230_v19  ;;  %v5674_v33 = vld [vmem:[#allocation8 + $0x578] sm:$0xff]  ;;  %v5549_v19 = vld [vmem:[#allocation8 + $0x480] sm:$0xff]  ;;  %v5995_v24 = vld [vmem:[#allocation8 + $0x6b0] sm:$0xff] }
 0xb9a   : > { %5366 = vmatprep.subr.mxu0 %v5342_v9  ;;  %5259 = vmatpush1.msra.mxu1 %v5229_v0  ;;  %v5673_v9 = vld [vmem:[#allocation8 + $0x570] sm:$0xff]  ;;  %v5672_v0 = vld [vmem:[#allocation8 + $0x568] sm:$0xff] }
 0xb9b   : > { %5367 = vmatpush1.msra.mxu0 %v5341_v8  ;;  %5260 = vmatprep.subr.mxu1 %v5228_v18  ;;  %v5565_v8 = vrot.slane %v8594_v23, 1  ;;  %v5784_v18 = vld [vmem:[#allocation8 + $0x5f8] sm:$0xff] }
 0xb9c   : > { %5368 = vmatprep.subr.mxu0 %v5340_v30  ;;  %5261 = vmatpush1.msra.mxu1 %v5227_v14  ;;  %v5671_v30 = vld [vmem:[#allocation8 + $0x560] sm:$0xff]  ;;  %v5670_v14 = vld [vmem:[#allocation8 + $0x558] sm:$0xff] }
 0xb9d   : > { %5369 = vmatpush1.msra.mxu0 %v5339_v15  ;;  %5262 = vmatprep.subr.mxu1 %v5226_v37  ;;  %v5782_v15 = vld [vmem:[#allocation8 + $0x5e8] sm:$0xff]  ;;  %v5669_v37 = vld [vmem:[#allocation8 + $0x550] sm:$0xff] }
 0xb9e   : > { %5370 = vmatprep.subr.mxu0 %v5338_v27  ;;  %5263 = vmatpush1.msra.mxu1 %v5225_v21  ;;  %v5781_v27 = vld [vmem:[#allocation8 + $0x5e0] sm:$0xff]  ;;  %v5668_v21 = vld [vmem:[#allocation8 + $0x548] sm:$0xff] }
 0xb9f   : > { %5371 = vmatpush1.msra.mxu0 %v5337_v4  ;;  %5264 = vmatprep.subr.mxu1 %v5224_v22  ;;  %v5780_v4 = vld [vmem:[#allocation8 + $0x5d8] sm:$0xff]  ;;  %v5667_v22 = vld [vmem:[#allocation8 + $0x540] sm:$0xff] }
 0xba0   : > { %5372 = vmatprep.subr.mxu0 %v5336_v63  ;;  %5265 = vmatpush1.msra.mxu1 %v5223_v31  ;;  %v5779_v63 = vld [vmem:[#allocation8 + $0x5d0] sm:$0xff]  ;;  %v5666_v31 = vld [vmem:[#allocation8 + $0x538] sm:$0xff] }
 0xba1   : > { %5373 = vmatpush1.msra.mxu0 %v5335_v29  ;;  %5266 = vmatprep.subr.mxu1 %v5222_v20  ;;  %v5778_v29 = vld [vmem:[#allocation8 + $0x5c8] sm:$0xff]  ;;  %v5665_v20 = vld [vmem:[#allocation8 + $0x530] sm:$0xff] }
 0xba2   : > { %5374 = vmatprep.subr.mxu0 %v5334_v41  ;;  %5267 = vmatpush1.msra.mxu1 %v5221_v36  ;;  %v5777_v41 = vld [vmem:[#allocation8 + $0x5c0] sm:$0xff]  ;;  %v5664_v36 = vld [vmem:[#allocation8 + $0x528] sm:$0xff] }
 0xba3   : > { %5375 = vmatpush1.msra.mxu0 %v5333_v13  ;;  %5268 = vmatprep.subr.mxu1 %v5220_v26  ;;  %v5776_v13 = vld [vmem:[#allocation8 + $0x5b8] sm:$0xff]  ;;  %v5663_v26 = vld [vmem:[#allocation8 + $0x520] sm:$0xff] }
 0xba4   : > { %5376 = vmatprep.subr.mxu0 %v5332_v32  ;;  %5269 = vmatpush1.msra.mxu1 %v5219_v35  ;;  %v5775_v32 = vld [vmem:[#allocation8 + $0x5b0] sm:$0xff]  ;;  %v5662_v35 = vld [vmem:[#allocation8 + $0x518] sm:$0xff] }
 0xba5   : > { %5302 = vmatprep.mubr.f32.mxu1 %v7798_v59  ;;  %5377 = vmatpush1.msra.mxu0 %v5331_v39  ;;  %v5774_v39 = vld [vmem:[#allocation8 + $0x5a8] sm:$0xff] }
 0xba6   : > { %6703 = vmatmul.mubr.msk.f32.vlgmr.msra.gmra.mxu1 %vm2836_vm2, %v5235_v42  ;;  %5378 = vmatprep.subr.mxu0 %v5330_v25  ;;  %v5661_v25 = vld [vmem:[#allocation8 + $0x510] sm:$0xff]  ;;  %v5773_v42 = vld [vmem:[#allocation8 + $0x5a0] sm:$0xff] }
 0xba7   : > { %5474 = vmatprep.subr.mxu1 %v5454_v43  ;;  %5379 = vmatpush1.msra.mxu0 %v5329_v44  ;;  %v5660_v43 = vld [vmem:[#allocation8 + $0x508] sm:$0xff]  ;;  %v5772_v44 = vld [vmem:[#allocation8 + $0x598] sm:$0xff] }
 0xba8   : > { %5412 = vmatprep.mubr.f32.mxu0 %v7798_v59  ;;  %5475 = vmatpush1.msra.mxu1 %v5453_v45  ;;  %v5659_v45 = vld [vmem:[#allocation8 + $0x500] sm:$0xff] }
 0xba9   : > { %6704 = vmatmul.mubr.msk.f32.vlgmr.msra.gmra.mxu0 %vm2836_vm2, %v5345_v46  ;;  %5476 = vmatprep.subr.mxu1 %v5452_v34  ;;  %v5771_v34 = vld [vmem:[#allocation8 + $0x590] sm:$0xff]  ;;  %v5770_v46 = vld [vmem:[#allocation8 + $0x588] sm:$0xff] }
 0xbaa   : > { %5584 = vmatprep.subr.mxu0 %v5564_v47  ;;  %5477 = vmatpush1.msra.mxu1 %v5451_v48  ;;  %v5675_v47 = vrot.slane %v8594_v23, 2  ;;  %v5894_v48 = vld [vmem:[#allocation8 + $0x678] sm:$0xff] }
 0xbab   : > { %5585 = vmatpush1.msra.mxu0 %v5563_v2  ;;  %5478 = vmatprep.subr.mxu1 %v5450_v49  ;;  %v5769_v2 = vld [vmem:[#allocation8 + $0x580] sm:$0xff]  ;;  %v5893_v49 = vld [vmem:[#allocation8 + $0x670] sm:$0xff] }
 0xbac   : > { %5586 = vmatprep.subr.mxu0 %v5562_v50  ;;  %5479 = vmatpush1.msra.mxu1 %v5449_v51  ;;  %v5892_v50 = vld [vmem:[#allocation8 + $0x668] sm:$0xff]  ;;  %v5785_v51 = vrot.slane %v8594_v23, 3 }
 0xbad   : > { %5587 = vmatpush1.msra.mxu0 %v5561_v52  ;;  %5480 = vmatprep.subr.mxu1 %v5448_v53  ;;  %v6004_v52 = vld [vmem:[#allocation8 + $0x6f8] sm:$0xff]  ;;  %v5891_v53 = vld [vmem:[#allocation8 + $0x660] sm:$0xff] }
 0xbae   : > { %5588 = vmatprep.subr.mxu0 %v5560_v54  ;;  %5481 = vmatpush1.msra.mxu1 %v5447_v7  ;;  %v6003_v54 = vld [vmem:[#allocation8 + $0x6f0] sm:$0xff]  ;;  %v5890_v7 = vld [vmem:[#allocation8 + $0x658] sm:$0xff] }
 0xbaf   : > { %5589 = vmatpush1.msra.mxu0 %v5559_v55  ;;  %5482 = vmatprep.subr.mxu1 %v5446_v38  ;;  %v6002_v55 = vld [vmem:[#allocation8 + $0x6e8] sm:$0xff]  ;;  %v5889_v38 = vld [vmem:[#allocation8 + $0x650] sm:$0xff] }
 0xbb0   : > { %5590 = vmatprep.subr.mxu0 %v5558_v56  ;;  %5483 = vmatpush1.msra.mxu1 %v5445_v57  ;;  %v6001_v56 = vld [vmem:[#allocation8 + $0x6e0] sm:$0xff]  ;;  %v5888_v57 = vld [vmem:[#allocation8 + $0x648] sm:$0xff] }
 0xbb1   : > { %5591 = vmatpush1.msra.mxu0 %v5557_v58  ;;  %5484 = vmatprep.subr.mxu1 %v5444_v61  ;;  %v6000_v58 = vld [vmem:[#allocation8 + $0x6d8] sm:$0xff]  ;;  %v5887_v61 = vld [vmem:[#allocation8 + $0x640] sm:$0xff] }
 0xbb2   : > { %5592 = vmatprep.subr.mxu0 %v5556_v62  ;;  %5485 = vmatpush1.msra.mxu1 %v5443_v40  ;;  %v5999_v62 = vld [vmem:[#allocation8 + $0x6d0] sm:$0xff]  ;;  %v5886_v40 = vld [vmem:[#allocation8 + $0x638] sm:$0xff] }
 0xbb3   : > { %5593 = vmatpush1.msra.mxu0 %v5555_v60  ;;  %5486 = vmatprep.subr.mxu1 %v5442_v3  ;;  %v5998_v60 = vld [vmem:[#allocation8 + $0x6c8] sm:$0xff]  ;;  %v5885_v3 = vld [vmem:[#allocation8 + $0x630] sm:$0xff] }
 0xbb4   : > { %5594 = vmatprep.subr.mxu0 %v5554_v10  ;;  %5487 = vmatpush1.msra.mxu1 %v5441_v11  ;;  %v5997_v10 = vld [vmem:[#allocation8 + $0x6c0] sm:$0xff]  ;;  %v5884_v11 = vld [vmem:[#allocation8 + $0x628] sm:$0xff] }
 0xbb5   : > { %5595 = vmatpush1.msra.mxu0 %v5553_v12  ;;  %5488 = vmatprep.subr.mxu1 %v5440_v17  ;;  %v5996_v12 = vld [vmem:[#allocation8 + $0x6b8] sm:$0xff]  ;;  %v5883_v17 = vld [vmem:[#allocation8 + $0x620] sm:$0xff] }
 0xbb6   : > { %5596 = vmatprep.subr.mxu0 %v5552_v28  ;;  %5489 = vmatpush1.msra.mxu1 %v5439_v16  ;;  %v5882_v28 = vld [vmem:[#allocation8 + $0x618] sm:$0xff]  ;;  %v5994_v16 = vld [vmem:[#allocation8 + $0x6a8] sm:$0xff] }
 0xbb7   : > { %5522 = vmatprep.mubr.f32.mxu1 %v7798_v59  ;;  %5597 = vmatpush1.msra.mxu0 %v5551_v6  ;;  %v5881_v6 = vld [vmem:[#allocation8 + $0x610] sm:$0xff] }
 0xbb8   : > { %6705 = vmatmul.mubr.msk.f32.vlgmr.msra.gmra.mxu1 %vm2836_vm2, %v8594_v23  ;;  %5598 = vmatprep.subr.mxu0 %v5550_v5  ;;  %v5993_v5 = vld [vmem:[#allocation8 + $0x6a0] sm:$0xff] }
 0xbb9   : > { %5694 = vmatprep.subr.mxu1 %v5674_v33  ;;  %5599 = vmatpush1.msra.mxu0 %v5549_v19  ;;  %v5880_v33 = vld [vmem:[#allocation8 + $0x608] sm:$0xff]  ;;  %v5992_v19 = vld [vmem:[#allocation8 + $0x698] sm:$0xff] }
 0xbba   : > { %5632 = vmatprep.mubr.f32.mxu0 %v7798_v59  ;;  %5695 = vmatpush1.msra.mxu1 %v5673_v9  ;;  %v5879_v9 = vld [vmem:[#allocation8 + $0x600] sm:$0xff] }
 0xbbb   : > { %6706 = vmatmul.mubr.msk.f32.vlgmr.msra.gmra.mxu0 %vm2836_vm2, %v5565_v8  ;;  %5696 = vmatprep.subr.mxu1 %v5672_v0  ;;  %v5991_v0 = vld [vmem:[#allocation8 + $0x690] sm:$0xff]  ;;  %v5990_v8 = vld [vmem:[#allocation8 + $0x688] sm:$0xff] }
 0xbbc   : > { %5804 = vmatprep.subr.mxu0 %v5784_v18  ;;  %5697 = vmatpush1.msra.mxu1 %v5671_v30  ;;  %v5895_v18 = vrot.slane %v8594_v23, 4  ;;  %v6114_v30 = vld [vmem:[#allocation8 + $0x778] sm:$0xff] }
 0xbbd   : > { %5805 = vmatpush1.msra.mxu0 %v5783_v1  ;;  %5698 = vmatprep.subr.mxu1 %v5670_v14  ;;  %v5989_v1 = vld [vmem:[#allocation8 + $0x680] sm:$0xff]  ;;  %v6113_v14 = vld [vmem:[#allocation8 + $0x770] sm:$0xff] }
 0xbbe   : > { %5806 = vmatprep.subr.mxu0 %v5782_v15  ;;  %5699 = vmatpush1.msra.mxu1 %v5669_v37  ;;  %v6112_v15 = vld [vmem:[#allocation8 + $0x768] sm:$0xff]  ;;  %v6005_v37 = vrot.slane %v8594_v23, 5 }
 0xbbf   : > { %5807 = vmatpush1.msra.mxu0 %v5781_v27  ;;  %5700 = vmatprep.subr.mxu1 %v5668_v21  ;;  %v6224_v27 = vld [vmem:[#allocation8 + $0x7f8] sm:$0xff]  ;;  %v6111_v21 = vld [vmem:[#allocation8 + $0x760] sm:$0xff] }
 0xbc0   : > { %5808 = vmatprep.subr.mxu0 %v5780_v4  ;;  %5701 = vmatpush1.msra.mxu1 %v5667_v22  ;;  %v6223_v4 = vld [vmem:[#allocation8 + $0x7f0] sm:$0xff]  ;;  %v6110_v22 = vld [vmem:[#allocation8 + $0x758] sm:$0xff] }
 0xbc1   : > { %5809 = vmatpush1.msra.mxu0 %v5779_v63  ;;  %5702 = vmatprep.subr.mxu1 %v5666_v31  ;;  %v6222_v63 = vld [vmem:[#allocation8 + $0x7e8] sm:$0xff]  ;;  %v6109_v31 = vld [vmem:[#allocation8 + $0x750] sm:$0xff] }
 0xbc2   : > { %5810 = vmatprep.subr.mxu0 %v5778_v29  ;;  %5703 = vmatpush1.msra.mxu1 %v5665_v20  ;;  %v6221_v29 = vld [vmem:[#allocation8 + $0x7e0] sm:$0xff]  ;;  %v6108_v20 = vld [vmem:[#allocation8 + $0x748] sm:$0xff] }
 0xbc3   : > { %5811 = vmatpush1.msra.mxu0 %v5777_v41  ;;  %5704 = vmatprep.subr.mxu1 %v5664_v36  ;;  %v6220_v41 = vld [vmem:[#allocation8 + $0x7d8] sm:$0xff]  ;;  %v6107_v36 = vld [vmem:[#allocation8 + $0x740] sm:$0xff] }
 0xbc4   : > { %5812 = vmatprep.subr.mxu0 %v5776_v13  ;;  %5705 = vmatpush1.msra.mxu1 %v5663_v26  ;;  %v6219_v13 = vld [vmem:[#allocation8 + $0x7d0] sm:$0xff]  ;;  %v6106_v26 = vld [vmem:[#allocation8 + $0x738] sm:$0xff] }
 0xbc5   : > { %5813 = vmatpush1.msra.mxu0 %v5775_v32  ;;  %5706 = vmatprep.subr.mxu1 %v5662_v35  ;;  %v6218_v32 = vld [vmem:[#allocation8 + $0x7c8] sm:$0xff]  ;;  %v6105_v35 = vld [vmem:[#allocation8 + $0x730] sm:$0xff] }
 0xbc6   : > { %5814 = vmatprep.subr.mxu0 %v5774_v39  ;;  %5707 = vmatpush1.msra.mxu1 %v5661_v25  ;;  %v6217_v39 = vld [vmem:[#allocation8 + $0x7c0] sm:$0xff]  ;;  %v6104_v25 = vld [vmem:[#allocation8 + $0x728] sm:$0xff] }
 0xbc7   : > { %5815 = vmatpush1.msra.mxu0 %v5773_v42  ;;  %5708 = vmatprep.subr.mxu1 %v5660_v43  ;;  %v6216_v42 = vld [vmem:[#allocation8 + $0x7b8] sm:$0xff]  ;;  %v6103_v43 = vld [vmem:[#allocation8 + $0x720] sm:$0xff] }
 0xbc8   : > { %5816 = vmatprep.subr.mxu0 %v5772_v44  ;;  %5709 = vmatpush1.msra.mxu1 %v5659_v45  ;;  %v6215_v44 = vld [vmem:[#allocation8 + $0x7b0] sm:$0xff]  ;;  %v6102_v45 = vld [vmem:[#allocation8 + $0x718] sm:$0xff] }
 0xbc9   : > { %5742 = vmatprep.mubr.f32.mxu1 %v7798_v59  ;;  %5817 = vmatpush1.msra.mxu0 %v5771_v34  ;;  %v6214_v34 = vld [vmem:[#allocation8 + $0x7a8] sm:$0xff] }
 0xbca   : > { %6707 = vmatmul.mubr.msk.f32.vlgmr.msra.gmra.mxu1 %vm2836_vm2, %v5675_v47  ;;  %5818 = vmatprep.subr.mxu0 %v5770_v46  ;;  %v6101_v46 = vld [vmem:[#allocation8 + $0x710] sm:$0xff]  ;;  %v6213_v47 = vld [vmem:[#allocation8 + $0x7a0] sm:$0xff] }
 0xbcb   : > { %5914 = vmatprep.subr.mxu1 %v5894_v48  ;;  %5819 = vmatpush1.msra.mxu0 %v5769_v2  ;;  %v6100_v48 = vld [vmem:[#allocation8 + $0x708] sm:$0xff]  ;;  %v6212_v2 = vld [vmem:[#allocation8 + $0x798] sm:$0xff] }
 0xbcc   : > { %5852 = vmatprep.mubr.f32.mxu0 %v7798_v59  ;;  %5915 = vmatpush1.msra.mxu1 %v5893_v49  ;;  %v6099_v49 = vld [vmem:[#allocation8 + $0x700] sm:$0xff] }
 0xbcd   : > { %6708 = vmatmul.mubr.msk.f32.vlgmr.msra.gmra.mxu0 %vm2836_vm2, %v5785_v51  ;;  %5916 = vmatprep.subr.mxu1 %v5892_v50  ;;  %v6211_v50 = vld [vmem:[#allocation8 + $0x790] sm:$0xff]  ;;  %v6210_v51 = vld [vmem:[#allocation8 + $0x788] sm:$0xff] }
 0xbce   : > { %6024 = vmatprep.subr.mxu0 %v6004_v52  ;;  %5917 = vmatpush1.msra.mxu1 %v5891_v53  ;;  %v6115_v52 = vrot.slane %v8594_v23, 6  ;;  %v6209_v53 = vld [vmem:[#allocation8 + $0x780] sm:$0xff] }
 0xbcf   : > { %6025 = vmatpush1.msra.mxu0 %v6003_v54  ;;  %5918 = vmatprep.subr.mxu1 %v5890_v7  ;;  %v6225_v54 = vrot.slane %v8594_v23, 7  ;;  %v6352_v7 = vld [vmem:[#allocation10 + $0xf8] sm:$0xff]  ;;  %v6333_v23 = vld [vmem:[#allocation10 + $0x60] sm:$0xff] }
 0xbd0   : > { %6026 = vmatprep.subr.mxu0 %v6002_v55  ;;  %5919 = vmatpush1.msra.mxu1 %v5889_v38  ;;  %v6336_v55 = vld [vmem:[#allocation10 + $0x78] sm:$0xff]  ;;  %v6351_v38 = vld [vmem:[#allocation10 + $0xf0] sm:$0xff] }
 0xbd1   : > { %6027 = vmatpush1.msra.mxu0 %v6001_v56  ;;  %5920 = vmatprep.subr.mxu1 %v5888_v57  ;;  %v6335_v56 = vld [vmem:[#allocation10 + $0x70] sm:$0xff]  ;;  %v6350_v57 = vld [vmem:[#allocation10 + $0xe8] sm:$0xff] }
 0xbd2   : > { %6028 = vmatprep.subr.mxu0 %v6000_v58  ;;  %5921 = vmatpush1.msra.mxu1 %v5887_v61  ;;  %v6334_v58 = vld [vmem:[#allocation10 + $0x68] sm:$0xff]  ;;  %v6349_v61 = vld [vmem:[#allocation10 + $0xe0] sm:$0xff] }
 0xbd3   : > { %6029 = vmatpush1.msra.mxu0 %v5999_v62  ;;  %5922 = vmatprep.subr.mxu1 %v5886_v40  ;;  %v6348_v62 = vld [vmem:[#allocation10 + $0xd8] sm:$0xff]  ;;  %v6347_v40 = vld [vmem:[#allocation10 + $0xd0] sm:$0xff] }
 0xbd4   : > { %6030 = vmatprep.subr.mxu0 %v5998_v60  ;;  %5923 = vmatpush1.msra.mxu1 %v5885_v3  ;;  %v6331_v60 = vld [vmem:[#allocation10 + $0x50] sm:$0xff]  ;;  %v6346_v3 = vld [vmem:[#allocation10 + $0xc8] sm:$0xff] }
 0xbd5   : > { %6031 = vmatpush1.msra.mxu0 %v5997_v10  ;;  %5924 = vmatprep.subr.mxu1 %v5884_v11  ;;  %v6330_v10 = vld [vmem:[#allocation10 + $0x48] sm:$0xff]  ;;  %v6345_v11 = vld [vmem:[#allocation10 + $0xc0] sm:$0xff] }
 0xbd6   : > { %6032 = vmatprep.subr.mxu0 %v5996_v12  ;;  %5925 = vmatpush1.msra.mxu1 %v5883_v17  ;;  %v6329_v12 = vld [vmem:[#allocation10 + $0x40] sm:$0xff]  ;;  %v6344_v17 = vld [vmem:[#allocation10 + $0xb8] sm:$0xff] }
 0xbd7   : > { %6033 = vmatpush1.msra.mxu0 %v5995_v24  ;;  %5926 = vmatprep.subr.mxu1 %v5882_v28  ;;  %v6328_v24 = vld [vmem:[#allocation10 + $0x38] sm:$0xff]  ;;  %v6343_v28 = vld [vmem:[#allocation10 + $0xb0] sm:$0xff] }
 0xbd8   : > { %6034 = vmatprep.subr.mxu0 %v5994_v16  ;;  %5927 = vmatpush1.msra.mxu1 %v5881_v6  ;;  %v6327_v16 = vld [vmem:[#allocation10 + $0x30] sm:$0xff]  ;;  %v6342_v6 = vld [vmem:[#allocation10 + $0xa8] sm:$0xff] }
 0xbd9   : > { %6035 = vmatpush1.msra.mxu0 %v5993_v5  ;;  %5928 = vmatprep.subr.mxu1 %v5880_v33  ;;  %v6326_v5 = vld [vmem:[#allocation10 + $0x28] sm:$0xff]  ;;  %v6341_v33 = vld [vmem:[#allocation10 + $0xa0] sm:$0xff] }
 0xbda   : > { %6036 = vmatprep.subr.mxu0 %v5992_v19  ;;  %5929 = vmatpush1.msra.mxu1 %v5879_v9  ;;  %v6325_v19 = vld [vmem:[#allocation10 + $0x20] sm:$0xff]  ;;  %v6340_v9 = vld [vmem:[#allocation10 + $0x98] sm:$0xff] }
 0xbdb   : > { %5962 = vmatprep.mubr.f32.mxu1 %v7798_v59  ;;  %6037 = vmatpush1.msra.mxu0 %v5991_v0  ;;  %v6324_v0 = vld [vmem:[#allocation10 + $0x18] sm:$0xff] }
 0xbdc   : > { %6709 = vmatmul.mubr.msk.f32.vlgmr.msra.gmra.mxu1 %vm2836_vm2, %v5895_v18  ;;  %6038 = vmatprep.subr.mxu0 %v5990_v8  ;;  %v6339_v8 = vld [vmem:[#allocation10 + $0x90] sm:$0xff] }
 0xbdd   : > { %6134 = vmatprep.subr.mxu1 %v6114_v30  ;;  %6039 = vmatpush1.msra.mxu0 %v5989_v1  ;;  %v6323_v18 = vld [vmem:[#allocation10 + $0x10] sm:$0xff]  ;;  %v6338_v30 = vld [vmem:[#allocation10 + $0x88] sm:$0xff] }
 0xbde   : > { %6072 = vmatprep.mubr.f32.mxu0 %v7798_v59  ;;  %6135 = vmatpush1.msra.mxu1 %v6113_v14  ;;  %v6322_v1 = vld [vmem:[#allocation10 + $0x8] sm:$0xff]  ;;  %v6337_v14 = vld [vmem:[#allocation10 + $0x80] sm:$0xff] }
 0xbdf   : > { %6710 = vmatmul.mubr.msk.f32.vlgmr.msra.gmra.mxu0 %vm2836_vm2, %v6005_v37  ;;  %6136 = vmatprep.subr.mxu1 %v6112_v15  ;;  %v6321_v15 = vld [vmem:[#allocation10] sm:$0xff]  ;;  %v7799_v37 = vmov 1966171168  }
 0xbe0   : > { %6244 = vmatprep.subr.mxu0 %v6224_v27  ;;  %6137 = vmatpush1.msra.mxu1 %v6111_v21  ;;  %v4653_v27 = vunpack.c.l.s4 %v7799_v37  ;;  %v4655_v21 = vlaneseq }
 0xbe1   : > { %6245 = vmatpush1.msra.mxu0 %v6223_v4  ;;  %6138 = vmatprep.subr.mxu1 %v6110_v22 }
 0xbe2   : > { %6246 = vmatprep.subr.mxu0 %v6222_v63  ;;  %6139 = vmatpush1.msra.mxu1 %v6109_v31  ;;  %v4654_v22 = vunpack.c.0.s8 %v4653_v27  ;;  %v8620_v63 = vshrl.u32 %v4655_v21, 7 }
 0xbe3   : > { %6247 = vmatpush1.msra.mxu0 %v6221_v29  ;;  %6140 = vmatprep.subr.mxu1 %v6108_v20 }
 0xbe4   : > { %6248 = vmatprep.subr.mxu0 %v6220_v41  ;;  %6141 = vmatpush1.msra.mxu1 %v6107_v36  ;;  %v8623_v36 = vsub.s32 %v4654_v22, %v8620_v63 }
 0xbe5   : > { %6249 = vmatpush1.msra.mxu0 %v6219_v13  ;;  %6142 = vmatprep.subr.mxu1 %v6106_v26 }
 0xbe6   : > { %6250 = vmatprep.subr.mxu0 %v6218_v32  ;;  %6143 = vmatpush1.msra.mxu1 %v6105_v35 }
 0xbe7   : > { %6251 = vmatpush1.msra.mxu0 %v6217_v39  ;;  %6144 = vmatprep.subr.mxu1 %v6104_v25 }
 0xbe8   : > { %6252 = vmatprep.subr.mxu0 %v6216_v42  ;;  %6145 = vmatpush1.msra.mxu1 %v6103_v43 }
 0xbe9   : > { %6253 = vmatpush1.msra.mxu0 %v6215_v44  ;;  %6146 = vmatprep.subr.mxu1 %v6102_v45 }
 0xbea   : > { %6254 = vmatprep.subr.mxu0 %v6214_v34  ;;  %6147 = vmatpush1.msra.mxu1 %v6101_v46  ;;  %v4558_v34 = vld [vmem:[%s8707_s8] sm:$0x3] }
 0xbeb   : > { %6255 = vmatpush1.msra.mxu0 %v6213_v47  ;;  %6148 = vmatprep.subr.mxu1 %v6100_v48 }
 0xbec   : > { %6256 = vmatprep.subr.mxu0 %v6212_v2  ;;  %6149 = vmatpush1.msra.mxu1 %v6099_v49 }
 0xbed   : > { %6182 = vmatprep.mubr.f32.mxu1 %v7798_v59  ;;  %6257 = vmatpush1.msra.mxu0 %v6211_v50 }
 0xbee   : > { %6711 = vmatmul.mubr.msk.f32.vlgmr.msra.gmra.mxu1 %vm2836_vm2, %v6115_v52  ;;  %6258 = vmatprep.subr.mxu0 %v6210_v51 }
 0xbef   : > { %6259 = vmatpush1.msra.mxu0 %v6209_v53  ;;  %6292 = vmatprep.mubr.f32.mxu0 %v7798_v59  ;;  %v6332_v59 = vld [vmem:[#allocation10 + $0x58] sm:$0xff] }
 0xbf0   : > { %6712 = vmatmul.mubr.msk.f32.vlgmr.msra.gmra.mxu0 %vm2836_vm2, %v6225_v54  ;;  %6978 = vmatprep.subr.mxu1 %v6352_v7 }
 0xbf1   : > { %6979 = vmatpush3.msra.mxu1 %v6336_v55 }
 0xbf2   : > { %6980 = vmatprep.subr.mxu1 %v6351_v38 }
 0xbf3   : > { %6981 = vmatpush3.msra.mxu1 %v6335_v56 }
 0xbf4   : > { %6982 = vmatprep.subr.mxu1 %v6350_v57 }
 0xbf5   : > { %6983 = vmatpush3.msra.mxu1 %v6334_v58 }
 0xbf6   : > { %6984 = vmatprep.subr.mxu1 %v6349_v61 }
 0xbf7   : > { %6985 = vmatpush3.msra.mxu1 %v6333_v23 }
 0xbf8   : > { %6986 = vmatprep.subr.mxu1 %v6348_v62 }
 0xbf9   : > { %6987 = vmatpush3.msra.mxu1 %v6332_v59 }
 0xbfa   : > { %6988 = vmatprep.subr.mxu1 %v6347_v40 }
 0xbfb   : > { %6989 = vmatpush3.msra.mxu1 %v6331_v60 }
 0xbfc   : > { %6990 = vmatprep.subr.mxu1 %v6346_v3 }
 0xbfd   : > { %6991 = vmatpush3.msra.mxu1 %v6330_v10 }
 0xbfe   : > { %6992 = vmatprep.subr.mxu1 %v6345_v11 }
 0xbff   : > { %6993 = vmatpush3.msra.mxu1 %v6329_v12 }
 0xc00   : > { %6994 = vmatprep.subr.mxu1 %v6344_v17 }
 0xc01   : > { %6995 = vmatpush3.msra.mxu1 %v6328_v24 }
 0xc02   : > { %6996 = vmatprep.subr.mxu1 %v6343_v28 }
 0xc03   : > { %6997 = vmatpush3.msra.mxu1 %v6327_v16 }
 0xc04   : > { %6998 = vmatprep.subr.mxu1 %v6342_v6 }
 0xc05   : > { %6999 = vmatpush3.msra.mxu1 %v6326_v5 }
 0xc06   : > { %7000 = vmatprep.subr.mxu1 %v6341_v33 }
 0xc07   : > { %7001 = vmatpush3.msra.mxu1 %v6325_v19 }
 0xc08   : > { %7002 = vmatprep.subr.mxu1 %v6340_v9 }
 0xc09   : > { %7003 = vmatpush3.msra.mxu1 %v6324_v0 }
 0xc0a   : > { %7004 = vmatprep.subr.mxu1 %v6339_v8 }
 0xc0b   : > { %7005 = vmatpush3.msra.mxu1 %v6323_v18 }
 0xc0c   : > { %7006 = vmatprep.subr.mxu1 %v6338_v30 }
 0xc0d   : > { %7007 = vmatpush3.msra.mxu1 %v6322_v1 }
 0xc0e   : > { %7008 = vmatprep.subr.mxu1 %v6337_v14 }
 0xc0f   : > { %7009 = vmatpush3.msra.mxu1 %v6321_v15 }
 0xc32   : > { %v4644_v4 = vpop.f32.mrf.mxu1 }
 0xc34   : > { %v4646_v31 = vpop.f32.mrf.mxu1  ;;  %v4754_v29 = vpop.f32.mrf.mxu0 }
 0xc35   : > { %v4651_v41 = vcombine.low %v4644_v4, %v4646_v31 }
 0xc36   : > { %v4756_v13 = vpop.f32.mrf.mxu0 }
 0xc37   : > { %v4658_v35 = vrot.slane %v4651_v41, %v8623_v36  ;;  %v4761_v39 = vcombine.low %v4754_v29, %v4756_v13 }
 0xc39   : > { %v4665_v44 = vrot.slane %v4658_v35, %v8623_v36  ;;  %v4768_v45 = vrot.slane %v4761_v39, %v8623_v36 }
 0xc3b   : > { %v4667_v50 = vadd.f32 %v4665_v44, %v4558_v34  ;;  %v4775_v51 = vrot.slane %v4768_v45, %v8623_v36 }
 0xc3d   : > { %v4777_v56 = vadd.f32 %v4775_v51, %v4667_v50 }
 0xc42   : > { %v4864_v20 = vpop.f32.mrf.mxu1 }
 0xc44   : > { %v4866_v26 = vpop.f32.mrf.mxu1 }
 0xc45   : > { %v4974_v32 = vpop.f32.mrf.mxu0  ;;  %v4871_v42 = vcombine.low %v4864_v20, %v4866_v26 }
 0xc47   : > { %v4976_v43 = vpop.f32.mrf.mxu0  ;;  %v4878_v48 = vrot.slane %v4871_v42, %v8623_v36 }
 0xc48   : > { %v4981_v2 = vcombine.low %v4974_v32, %v4976_v43 }
 0xc49   : > { %v4885_v54 = vrot.slane %v4878_v48, %v8623_v36 }
 0xc4a   : > { %v4988_v7 = vrot.slane %v4981_v2, %v8623_v36 }
 0xc4b   : > { %v4887_v23 = vadd.f32 %v4885_v54, %v4777_v56 }
 0xc4c   : > { %v4995_v62 = vrot.slane %v4988_v7, %v8623_v36 }
 0xc4e   : > { %v4997_v12 = vadd.f32 %v4995_v62, %v4887_v23 }
 0xc54   : > { %v5084_v25 = vpop.f32.mrf.mxu1 }
 0xc56   : > { %v5086_v46 = vpop.f32.mrf.mxu1 }
 0xc57   : > { %v5194_v47 = vpop.f32.mrf.mxu0  ;;  %v5091_v52 = vcombine.low %v5084_v25, %v5086_v46 }
 0xc59   : > { %v5196_v53 = vpop.f32.mrf.mxu0  ;;  %v5098_v57 = vrot.slane %v5091_v52, %v8623_v36 }
 0xc5a   : > { %v5201_v58 = vcombine.low %v5194_v47, %v5196_v53 }
 0xc5b   : > { %v5105_v60 = vrot.slane %v5098_v57, %v8623_v36 }
 0xc5c   : > { %v5208_v3 = vrot.slane %v5201_v58, %v8623_v36 }
 0xc5d   : > { %v5107_v16 = vadd.f32 %v5105_v60, %v4997_v12 }
 0xc5e   : > { %v5215_v6 = vrot.slane %v5208_v3, %v8623_v36 }
 0xc60   : > { %v5217_v18 = vadd.f32 %v5215_v6, %v5107_v16 }
 0xc66   : > { %v5304_v49 = vpop.f32.mrf.mxu1 }
 0xc68   : > { %v5306_v55 = vpop.f32.mrf.mxu1 }
 0xc69   : > { %v5414_v38 = vpop.f32.mrf.mxu0  ;;  %v5311_v59 = vcombine.low %v5304_v49, %v5306_v55 }
 0xc6b   : > { %v5416_v40 = vpop.f32.mrf.mxu0  ;;  %v5318_v17 = vrot.slane %v5311_v59, %v8623_v36  ;;  %v6357_v59 = vsub.s32 0, %v8620_v63 }
 0xc6c   : > { %v5421_v24 = vcombine.low %v5414_v38, %v5416_v40  ;;  %v6361_v40 = vsub.s32 1, %v8620_v63 }
 0xc6d   : > { %v5325_v19 = vrot.slane %v5318_v17, %v8623_v36  ;;  %v6353_v17 = vld [vmem:[%s8709_s10] sm:$0x1] }
 0xc6e   : > { %v5428_v9 = vrot.slane %v5421_v24, %v8623_v36 }
 0xc6f   : > { %v5327_v15 = vadd.f32 %v5325_v19, %v5217_v18 }
 0xc70   : > { %v5435_v37 = vrot.slane %v5428_v9, %v8623_v36 }
 0xc72   : > { %v5437_v20 = vadd.f32 %v5435_v37, %v5327_v15 }
 0xc78   : > { %v5524_v61 = vpop.f32.mrf.mxu1 }
 0xc7a   : > { %v5526_v10 = vpop.f32.mrf.mxu1 }
 0xc7b   : > { %v5634_v11 = vpop.f32.mrf.mxu0  ;;  %v5531_v5 = vcombine.low %v5524_v61, %v5526_v10 }
 0xc7d   : > { %v5636_v33 = vpop.f32.mrf.mxu0  ;;  %v5538_v30 = vrot.slane %v5531_v5, %v8623_v36 }
 0xc7e   : > { %v5641_v1 = vcombine.low %v5634_v11, %v5636_v33 }
 0xc7f   : > { %v5545_v4 = vrot.slane %v5538_v30, %v8623_v36 }
 0xc80   : > { %v5648_v22 = vrot.slane %v5641_v1, %v8623_v36 }
 0xc81   : > { %v5547_v26 = vadd.f32 %v5545_v4, %v5437_v20 }
 0xc82   : > { %v5655_v32 = vrot.slane %v5648_v22, %v8623_v36 }
 0xc84   : > { %v5657_v43 = vadd.f32 %v5655_v32, %v5547_v26 }
 0xc8a   : > { %v5744_v28 = vpop.f32.mrf.mxu1 }
 0xc8c   : > { %v5746_v0 = vpop.f32.mrf.mxu1 }
 0xc8d   : > { %v5854_v8 = vpop.f32.mrf.mxu0  ;;  %v5751_v27 = vcombine.low %v5744_v28, %v5746_v0 }
 0xc8f   : > { %v5856_v21 = vpop.f32.mrf.mxu0  ;;  %v5758_v41 = vrot.slane %v5751_v27, %v8623_v36 }
 0xc90   : > { %v5861_v13 = vcombine.low %v5854_v8, %v5856_v21 }
 0xc91   : > { %v5765_v25 = vrot.slane %v5758_v41, %v8623_v36 }
 0xc92   : > { %v5868_v42 = vrot.slane %v5861_v13, %v8623_v36 }
 0xc93   : > { %v5767_v34 = vadd.f32 %v5765_v25, %v5657_v43 }
 0xc94   : > { %v5875_v46 = vrot.slane %v5868_v42, %v8623_v36 }
 0xc96   : > { %v5877_v49 = vadd.f32 %v5875_v46, %v5767_v34 }
 0xc9c   : > { %v5964_v14 = vpop.f32.mrf.mxu1 }
 0xc9e   : > { %v5966_v31 = vpop.f32.mrf.mxu1 }
 0xc9f   : > { %v6074_v29 = vpop.f32.mrf.mxu0  ;;  %v5971_v35 = vcombine.low %v5964_v14, %v5966_v31 }
 0xca1   : > { %v6076_v39 = vpop.f32.mrf.mxu0  ;;  %v5978_v44 = vrot.slane %v5971_v35, %v8623_v36 }
 0xca2   : > { %v6081_v45 = vcombine.low %v6074_v29, %v6076_v39 }
 0xca3   : > { %v5985_v47 = vrot.slane %v5978_v44, %v8623_v36 }
 0xca4   : > { %v6088_v48 = vrot.slane %v6081_v45, %v8623_v36 }
 0xca5   : > { %v5987_v52 = vadd.f32 %v5985_v47, %v5877_v49 }
 0xca6   : > { %v6095_v53 = vrot.slane %v6088_v48, %v8623_v36 }
 0xca8   : > { %v6097_v56 = vadd.f32 %v6095_v53, %v5987_v52 }
 0xcae   : > { %v6184_v2 = vpop.f32.mrf.mxu1 }
 0xcb0   : > { %v6186_v50 = vpop.f32.mrf.mxu1  ;;  %v6294_v51 = vpop.f32.mrf.mxu0 }
 0xcb1   : > { %v6191_v54 = vcombine.low %v6184_v2, %v6186_v50 }
 0xcb2   : > { %v6296_v7 = vpop.f32.mrf.mxu0 }
 0xcb3   : > { %v6198_v55 = vrot.slane %v6191_v54, %v8623_v36  ;;  %v6301_v38 = vcombine.low %v6294_v51, %v6296_v7 }
 0xcb5   : > { %v6205_v57 = vrot.slane %v6198_v55, %v8623_v36  ;;  %v6308_v58 = vrot.slane %v6301_v38, %v8623_v36 }
 0xcb7   : > { %v6207_v61 = vadd.f32 %v6205_v57, %v6097_v56  ;;  %v6315_v23 = vrot.slane %v6308_v58, %v8623_v36 }
 0xcb9   : > { %v6317_v62 = vadd.f32 %v6315_v23, %v6207_v61 }
 0xcbb   : > { %vm6318_vm13 = vcmp.ge.f32.partialorder %v6317_v62, 0.0  ;;  %v6319_v60 = vmul.f32 0.2, %v6317_v62 }
 0xcbd   : > { %v6320_v3 = vsel %vm6318_vm13, %v6317_v62, %v6319_v60 }
 0xcbe   : > { %v6358_v10 = vrot.slane %v6320_v3, %v6357_v59  ;;  %v6362_v11 = vrot.slane %v6320_v3, %v6361_v40 }
 0xcc0   : > { %6429 = vmatprep.mubr.f32.mxu1 %v6362_v11 }
 0xcc1   : > { %6430 = vmatmul.mubr.f32.vlgmr.msra.gmra.mxu1 %v6358_v10 }
 0xd81   : > { %v7010_v12 = vpop.f32.mrf.mxu1 }
 0xd83   : > { %v7011_v36 = vpop.f32.mrf.mxu1 }
 0xd84   : > { %v7012_v24 = vadd.f32 %v7011_v36, %v7010_v12 }
 0xd86   : > { %v6432_v63 = vadd.f32 %v7012_v24, %v6353_v17 }
 0xd88   : > { %6435 = vst [vmem:[%s451_s12] sm:$0x1] %v6432_v63 }
 0xd89   : > { %7728 = shalt.err (!%p7725_p13)
}
 0xd8a   : > { %s7729_s29 = scalar_lea.hbm %s6447_s19, 16  ;;  %s7733_s24 = scalar_lea.hbm %s8710_s11, 32 }
 0xd8b   : > { %p7730_p9 = scmp.ne.s32.totalorder %s6447_s19, %s7729_s29  ;;  %p7734_p0 = scmp.lt.s32.totalorder %s6447_s19, %s8710_s11 }
 0xd8c   : > { %p7735_p12 = scmp.lt.s32.totalorder %s7733_s24, %s7729_s29 }
 0xd8d   : > { %p7731_p8 = pnand %p7730_p9, %p7899_p5 }
 0xd8e   : > { %p7736_p10 = por %p7735_p12, %p7734_p0 }
 0xd8f   : > { %p7732_p11 = pneg %p7731_p8 }
 0xd91   : > { %p7737_p2 = pnand %p7736_p10, %p7732_p11 }
 0xd93   : > { %7740 = shalt.err (!%p7737_p2)
}
 0xd94   : > { %7503 = dma.vmem_to_hbm [thread:$0]  (%p7899_p5), %s6450_s26, 16, %s6447_s19, %s6437_s28  }
 0xd95 PF: > { %s8737_s30 = sld [smem:[#allocation19_spill]]  ;;  %p7535_p1 = scmp.ge.s32.totalorder %s7787_s20, 2 }
 0xd96   : > { %s6461_s23 = sand.u32 1, %s7775_s17  }
 0xd97   : > { %s6462_s22 = scalar_lea.sflag [#allocation4], %s6461_s23 }
 0xd9b   : > { %p8738_p3 = scmp.ne.s32.totalorder %s8737_s30, 0 }
 0xd9d   : > { %p7522_p4 = pnand %p7535_p1, %p8738_p3 }
 0xd9f   : > { %p7523_p7 = pneg %p7522_p4 }
 0xda1   : > { %7770 = dma.done.wait (%p7523_p7), %s6462_s22, 16  }
 0xda2   : > { %7772 = vsyncadd (%p7523_p7), %s6462_s22, 4294967280  ;;  %s8739_s20 = sld [smem:[#allocation17_spill]]  ;;  %s8742_s17 = smov %s7779_s18 }
 0xda3   : > { %s8740_s25 = sld [smem:[#allocation16_spill]] }
 0xda4   : > { %s8741_s19 = sld [smem:[#allocation18_spill]] }
 0xda8   : > { %p24_p6 = scmp.ge.s32.totalorder %s8739_s20, 4  }
 0xda9   : > { %s8743_s18 = smov %s8740_s25 }
 0xdaa   :  { %26 = sbr.rel (!%p24_p6) target bundleno = 6 (0x6), region = 167 }
 0xdaf   :  { %6466 = vsyncpa [#allocation3], 1 }
 0xdb0   :  { %6468 = vsyncpa [#allocation3 + $0x1], 1 }
 0xdb1   :  { %6469 = vsyncpa [#allocation6], 1 }
 0xdb2   :  { %6470 = vsyncpa [#allocation9], 1 }
 0xdb3   :  { %6471 = vsyncpa [#allocation4], 1 }
 0xdb4   :  { %6473 = vsyncpa [#allocation4 + $0x1], 1 }

</bundles_post_ra>
